<compile_context>
chip_gen: v7x
topology: tpu7x:2x2x1
jax: 0.10.0
libtpu: 0.0.40
codegen_flags: <defaults>
</compile_context>

<pallas_src>
import jax
import jax.numpy as jnp
from jax.experimental import pallas as pl
from jax.experimental.pallas import tpu as pltpu

# ----------------------------- sizes ----------------------------------------
PROPRIO = 3 + 3 + 3 + 3 + 12 + 12 + 3 * 12 + 2 * 12 + 2 * 12 + 8   # 128
EXTERO = 4 * 52                                                     # 208
EXTERO_PAD = 256
EXTERO_LATENT = 4 * 24                                              # 96
PRIV_LATENT = 24
PRIV = 41
HIDDEN = 50
HP = 128            # padded per-layer hidden width (lane slot)
GS = 128            # per-gate lane slot inside fused GRU slabs
GB_OUT = EXTERO_LATENT + PRIV_LATENT                                # 120
ACTION = 12
OBS_DIM = PROPRIO + EXTERO                                          # 336
OUT_DIM = ACTION + EXTERO + PRIV                                    # 261

N_HEADS = 5                                    # ga, gb, dga, dex, dpr
HEAD_SLOT = 128                                # layer-1/2 per-head lane slot
HEAD3_OFF = (0, 128, 256, 512, 768)            # layer-3 output slot offsets
HEAD3_W = 896                                  # fused layer-3 output lanes

# packed output layout (all offsets 128-aligned)
O_ACT, O_EXTD, O_PRIV, O_H0, O_H1, OUT_PACK = 0, 128, 384, 512, 640, 768


def _round_up(x, m):
    return ((x + m - 1) // m) * m


# ----------------------------- in-kernel math --------------------------------
def _elu(x):
    return jnp.where(x > 0.0, x, jnp.exp(x) - 1.0)


def _sigmoid(x):
    # 1/(1+exp(-x)): exp on EUP, divide replaced by approx reciprocal (EUP).
    return pl.reciprocal(1.0 + jnp.exp(-x), approx=True)


# ----------------------------- kernel ----------------------------------------
def student_policy_kernel(proprio_ref, extero_ref, hidden_ref,
                          ge_w1, ge_b1, ge_w2, ge_b2,
                          g0_wih, g0_bih, g0_whh, g0_bhh,
                          g1_wih, g1_bih, g1_whh, g1_bhh,
                          hw1, hb1, hw2, hb2, hw3, hb3,
                          aw1, ab1, aw2, ab2, aw3, ab3,
                          out_ref):
    f32 = jnp.float32
    bf16 = jnp.bfloat16

    def mm(x_bf, w_ref):
        return jnp.dot(x_bf, w_ref[...], preferred_element_type=f32)

    proprio = proprio_ref[...]                    # (TB, 128) f32
    extero = extero_ref[...]                      # (TB, 256) f32, 208 valid
    hidden = hidden_ref[...]                      # (TB, 256) f32
    h0 = hidden[:, :HP]                           # (TB, 128), 50 valid
    h1 = hidden[:, HP:]                           # (TB, 128), 50 valid
    proprio_bf = proprio.astype(bf16)

    # --- ge: heights encoder 208 -> 128 (ELU) -> 96 (padded to 128) ----------
    t = _elu(mm(extero.astype(bf16), ge_w1) + ge_b1[...])
    extero_lat = mm(t.astype(bf16), ge_w2) + ge_b2[...]     # (TB, 128), 96 valid

    # --- GRU layer 0: x = [proprio | extero_lat], fused gate slabs -----------
    x0_bf = jnp.concatenate([proprio_bf, extero_lat.astype(bf16)], axis=-1)
    gi = mm(x0_bf, g0_wih) + g0_bih[...]                     # (TB, 384)
    gh = mm(h0.astype(bf16), g0_whh) + g0_bhh[...]           # (TB, 384)
    r = _sigmoid(gi[:, :GS] + gh[:, :GS])
    z = _sigmoid(gi[:, GS:2 * GS] + gh[:, GS:2 * GS])
    n = jnp.tanh(gi[:, 2 * GS:] + r * gh[:, 2 * GS:])        # PyTorch GRU form
    h0_new = (1.0 - z) * n + z * h0                          # (TB, 128)

    # --- GRU layer 1: x = h0_new ----------------------------------------------
    gi = mm(h0_new.astype(bf16), g1_wih) + g1_bih[...]
    gh = mm(h1.astype(bf16), g1_whh) + g1_bhh[...]
    r = _sigmoid(gi[:, :GS] + gh[:, :GS])
    z = _sigmoid(gi[:, GS:2 * GS] + gh[:, GS:2 * GS])
    n = jnp.tanh(gi[:, 2 * GS:] + r * gh[:, 2 * GS:])
    h1_new = (1.0 - z) * n + z * h1                          # (TB, 128)
    out_bf = h1_new.astype(bf16)

    # --- five belief heads, fully fused (layer1 / block-diag layer2+3) -------
    hh1 = _elu(mm(out_bf, hw1) + hb1[...])                   # (TB, 640)
    hh2 = _elu(mm(hh1.astype(bf16), hw2) + hb2[...])         # (TB, 640)
    ho = mm(hh2.astype(bf16), hw3) + hb3[...]                # (TB, 896)
    ga_out = ho[:, 0:128]                                    # 96 valid
    gb_out = ho[:, 128:256]                                  # 120 valid
    dga_out = ho[:, 256:512]                                 # 208 valid
    dex_out = ho[:, 512:768]                                 # 208 valid
    dpr_out = ho[:, 768:896]                                 # 41 valid

    alpha = _sigmoid(ga_out)
    extero_att = alpha * extero_lat                          # (TB, 128), 96 valid

    # --- actor MLP: single K=384 first-layer dot ------------------------------
    ax = jnp.concatenate(
        [proprio_bf, gb_out.astype(bf16), extero_att.astype(bf16)], axis=-1)
    m = _elu(mm(ax, aw1) + ab1[...])                         # (TB, 256)
    m = _elu(mm(m.astype(bf16), aw2) + ab2[...])             # (TB, 128)
    action = mm(m.astype(bf16), aw3) + ab3[...]              # (TB, 128), 12 valid

    # --- belief decoder --------------------------------------------------------
    d_alpha = _sigmoid(dga_out)                              # (TB, 256)
    extero_dec = dex_out + d_alpha * extero                  # (TB, 256), 208 valid

    # --- single lane-dense packed output ---------------------------------------
    out_ref[...] = jnp.concatenate(
        [action, extero_dec, dpr_out, h0_new, h1_new], axis=-1)   # (TB, 768)


# ----------------------------- wrapper ----------------------------------------
@jax.jit
def student_policy_forward(obs, h0, h1, params):
    b = obs.shape[0]
    assert obs.shape[1] == OBS_DIM
    bp8 = _round_up(b, 8)
    tb = min(bp8, 512)             # big batch tile; grid >= 2 for large batches
    bp = _round_up(bp8, tb)

    def pad_rows(x):
        return x if x.shape[0] == bp else jnp.pad(x, ((0, bp - x.shape[0]), (0, 0)))

    proprio = pad_rows(obs[:, :PROPRIO])
    extero = pad_rows(jnp.pad(obs[:, PROPRIO:], ((0, 0), (0, EXTERO_PAD - EXTERO))))
    hidden = pad_rows(jnp.concatenate(
        [jnp.pad(h0, ((0, 0), (0, HP - HIDDEN))),
         jnp.pad(h1, ((0, 0), (0, HP - HIDDEN)))], axis=-1))        # (bp, 256)

    grid = (bp // tb,)

    def batch_spec(width):
        return pl.BlockSpec((tb, width), lambda i: (i, 0))

    in_specs = [batch_spec(PROPRIO), batch_spec(EXTERO_PAD), batch_spec(2 * HP)]
    # Weights/biases: full-array blocks, constant index map -> VMEM-resident.
    in_specs += [pl.BlockSpec(p.shape, lambda i: (0, 0)) for p in params]

    packed = pl.pallas_call(
        student_policy_kernel,
        grid=grid,
        in_specs=in_specs,
        out_specs=batch_spec(OUT_PACK),
        out_shape=jax.ShapeDtypeStruct((bp, OUT_PACK), jnp.float32),
        compiler_params=pltpu.CompilerParams(
            dimension_semantics=("parallel",),
            vmem_limit_bytes=48 * 1024 * 1024),
    )(proprio, extero, hidden, *params)

    action = packed[:b, O_ACT:O_ACT + ACTION]
    extero_dec = packed[:b, O_EXTD:O_EXTD + EXTERO]
    priv_dec = packed[:b, O_PRIV:O_PRIV + PRIV]
    h0_new = packed[:b, O_H0:O_H0 + HIDDEN]
    h1_new = packed[:b, O_H1:O_H1 + HIDDEN]

    out = jnp.concatenate([action, extero_dec, priv_dec], axis=-1)
    # matches `.squeeze()` in StudentPolicyJitted.forward; also return the
    # updated GRU hidden states (the PyTorch module mutates a buffer).
    return jnp.squeeze(out), h0_new, h1_new


# ------------------- deterministic synthetic params (PyTorch layout) ----------
def make_raw_params(key):
    keys = iter(jax.random.split(key, 32))

    def linear(fan_in, fan_out):
        kw, kb = jax.random.split(next(keys))
        bound = 1.0 / (fan_in ** 0.5)
        w = jax.random.uniform(kw, (fan_out, fan_in), jnp.float32, -bound, bound)
        b = jax.random.uniform(kb, (fan_out,), jnp.float32, -bound, bound)
        return (w, b)

    def gru_layer(in_size, hid):
        k1, k2, k3, k4 = jax.random.split(next(keys), 4)
        bound = 1.0 / (hid ** 0.5)
        wih = jax.random.uniform(k1, (3 * hid, in_size), jnp.float32, -bound, bound)
        whh = jax.random.uniform(k2, (3 * hid, hid), jnp.float32, -bound, bound)
        bih = jax.random.uniform(k3, (3 * hid,), jnp.float32, -bound, bound)
        bhh = jax.random.uniform(k4, (3 * hid,), jnp.float32, -bound, bound)
        return (wih, whh, bih, bhh)

    raw = {}
    raw["ge"] = [linear(EXTERO, 128), linear(128, EXTERO_LATENT)]
    raw["gru0"] = gru_layer(PROPRIO + EXTERO_LATENT, HIDDEN)
    raw["gru1"] = gru_layer(HIDDEN, HIDDEN)
    raw["ga"] = [linear(HIDDEN, 64), linear(64, 64), linear(64, EXTERO_LATENT)]
    raw["gb"] = [linear(HIDDEN, 64), linear(64, 64), linear(64, GB_OUT)]
    raw["dga"] = [linear(HIDDEN, 64), linear(64, 128), linear(128, EXTERO)]
    raw["dex"] = [linear(HIDDEN, 64), linear(64, 128), linear(128, EXTERO)]
    raw["dpr"] = [linear(HIDDEN, 64), linear(64, 64), linear(64, PRIV)]
    raw["mlp"] = [linear(PROPRIO + GB_OUT, 256), linear(256, 128), linear(128, ACTION)]
    return raw


def pack_params(raw):
    """Fuse / pad / transpose / bf16-cast PyTorch-layout params for the kernel."""
    f32 = jnp.float32
    bf = lambda w: w.astype(jnp.bfloat16)

    def pad2(x, rows, cols):
        out = jnp.zeros((rows, cols), f32)
        return out.at[:x.shape[0], :x.shape[1]].set(x)

    def pack_gate_cols(wT, in_rows):
        # distribute 3*HIDDEN gate columns into 128-aligned gate slots
        out = jnp.zeros((in_rows, 3 * GS), f32)
        for g in range(3):
            out = out.at[:wT.shape[0], g * GS:g * GS + HIDDEN].set(
                wT[:, g * HIDDEN:(g + 1) * HIDDEN])
        return out

    def pack_gate_bias(b):
        out = jnp.zeros((1, 3 * GS), f32)
        for g in range(3):
            out = out.at[0, g * GS:g * GS + HIDDEN].set(b[g * HIDDEN:(g + 1) * HIDDEN])
        return out

    p = []

    # ge: 208 -> 128 (ELU) -> 96, padded to 256/128 lanes
    (w1, b1), (w2, b2) = raw["ge"]
    p += [bf(pad2(w1.T, EXTERO_PAD, 128)), pad2(b1.reshape(1, -1), 1, 128),
          bf(pad2(w2.T, 128, 128)), pad2(b2.reshape(1, -1), 1, 128)]

    # GRU layer 0: x = [proprio(128) | extero_lat(96 -> pad 128)] = 256 lanes;
    # original x rows (0..223) line up (proprio is exactly 128 wide).
    wih, whh, bih, bhh = raw["gru0"]
    bih_comb = bih + jnp.concatenate([bhh[:2 * HIDDEN], jnp.zeros((HIDDEN,), f32)])
    bhh_n = jnp.concatenate([jnp.zeros((2 * HIDDEN,), f32), bhh[2 * HIDDEN:]])
    p += [bf(pack_gate_cols(wih.T, 2 * HP)), pack_gate_bias(bih_comb),
          bf(pack_gate_cols(whh.T, HP)), pack_gate_bias(bhh_n)]

    # GRU layer 1: x = h0_new (padded to 128)
    wih, whh, bih, bhh = raw["gru1"]
    bih_comb = bih + jnp.concatenate([bhh[:2 * HIDDEN], jnp.zeros((HIDDEN,), f32)])
    bhh_n = jnp.concatenate([jnp.zeros((2 * HIDDEN,), f32), bhh[2 * HIDDEN:]])
    p += [bf(pack_gate_cols(wih.T, HP)), pack_gate_bias(bih_comb),
          bf(pack_gate_cols(whh.T, HP)), pack_gate_bias(bhh_n)]

    # Belief heads: fused layer-1 (128, 640), block-diag layer-2 (640, 640),
    # block-diag layer-3 (640, 896) with 128-aligned output slots.
    heads = [raw["ga"], raw["gb"], raw["dga"], raw["dex"], raw["dpr"]]
    hw1 = jnp.zeros((HP, N_HEADS * HEAD_SLOT), f32)
    hb1 = jnp.zeros((1, N_HEADS * HEAD_SLOT), f32)
    hw2 = jnp.zeros((N_HEADS * HEAD_SLOT, N_HEADS * HEAD_SLOT), f32)
    hb2 = jnp.zeros((1, N_HEADS * HEAD_SLOT), f32)
    hw3 = jnp.zeros((N_HEADS * HEAD_SLOT, HEAD3_W), f32)
    hb3 = jnp.zeros((1, HEAD3_W), f32)
    for hd, layers in enumerate(heads):
        (w1, b1), (w2, b2), (w3, b3) = layers
        s = hd * HEAD_SLOT
        hw1 = hw1.at[:HIDDEN, s:s + w1.shape[0]].set(w1.T)
        hb1 = hb1.at[0, s:s + w1.shape[0]].set(b1)
        hw2 = hw2.at[s:s + w2.shape[1], s:s + w2.shape[0]].set(w2.T)
        hb2 = hb2.at[0, s:s + w2.shape[0]].set(b2)
        o = HEAD3_OFF[hd]
        hw3 = hw3.at[s:s + w3.shape[1], o:o + w3.shape[0]].set(w3.T)
        hb3 = hb3.at[0, o:o + w3.shape[0]].set(b3)
    p += [bf(hw1), hb1, bf(hw2), hb2, bf(hw3), hb3]

    # Actor MLP: lane-concat [proprio(128) | gb_out(120->128) | extero_att(96->128)]
    (w1, b1), (w2, b2), (w3, b3) = raw["mlp"]
    w1t = w1.T                                              # (248, 256)
    aw1 = jnp.zeros((3 * 128, 256), f32)
    aw1 = aw1.at[:PROPRIO, :].set(w1t[:PROPRIO, :])
    aw1 = aw1.at[128:128 + GB_OUT, :].set(w1t[PROPRIO:, :])
    aw1 = aw1.at[256:256 + EXTERO_LATENT, :].set(
        w1t[PROPRIO:PROPRIO + EXTERO_LATENT, :])            # belief[:96] += ext_att
    ab1 = b1.reshape(1, -1).astype(f32)
    aw2 = w2.T.astype(f32)                                  # (256, 128) exact
    ab2 = b2.reshape(1, -1).astype(f32)
    aw3 = pad2(w3.T, 128, 128)                              # 12 valid output cols
    ab3 = pad2(b3.reshape(1, -1), 1, 128)
    p += [bf(aw1), ab1, bf(aw2), ab2, bf(aw3), ab3]
    return tuple(p)


# ----------------------------- pure-JAX reference ------------------------------
def _reference_forward(obs, h0, h1, raw):
    """Mirrors the PyTorch module math (bf16 matmul operands, f32 accumulate)."""
    bf16 = jnp.bfloat16

    def lin(x, wb):
        w, b = wb
        return jnp.dot(x.astype(bf16), w.T.astype(bf16),
                       preferred_element_type=jnp.float32) + b

    def elu(x):
        return jnp.where(x > 0.0, x, jnp.exp(x) - 1.0)

    def sig(x):
        return 1.0 / (1.0 + jnp.exp(-x))

    def mlp3(x, layers):
        x = elu(lin(x, layers[0]))
        x = elu(lin(x, layers[1]))
        return lin(x, layers[2])

    def gru(x, h, prm):
        wih, whh, bih, bhh = prm
        gi = jnp.dot(x.astype(bf16), wih.T.astype(bf16),
                     preferred_element_type=jnp.float32) + bih
        gh = jnp.dot(h.astype(bf16), whh.T.astype(bf16),
                     preferred_element_type=jnp.float32) + bhh
        H = HIDDEN
        r = sig(gi[:, :H] + gh[:, :H])
        z = sig(gi[:, H:2 * H] + gh[:, H:2 * H])
        n = jnp.tanh(gi[:, 2 * H:] + r * gh[:, 2 * H:])
        return (1.0 - z) * n + z * h

    proprio = obs[:, :PROPRIO]
    extero = obs[:, PROPRIO:]
    extero_lat = lin(elu(lin(extero, raw["ge"][0])), raw["ge"][1])
    rnn_in = jnp.concatenate([proprio, extero_lat], axis=-1)
    h0n = gru(rnn_in, h0, raw["gru0"])
    h1n = gru(h0n, h1, raw["gru1"])
    output = h1n
    alpha = sig(mlp3(output, raw["ga"]))
    extero_att = alpha * extero_lat
    belief = mlp3(output, raw["gb"])
    belief = belief.at[:, :EXTERO_LATENT].add(extero_att)
    mlp_in = jnp.concatenate([proprio, belief], axis=-1)
    action = mlp3(mlp_in, raw["mlp"])
    d_alpha = sig(mlp3(output, raw["dga"]))
    ext_dec = mlp3(output, raw["dex"]) + d_alpha * extero
    priv_dec = mlp3(output, raw["dpr"])
    out = jnp.concatenate([action, ext_dec, priv_dec], axis=-1)
    return jnp.squeeze(out), h0n, h1n


# ----------------------------- main --------------------------------------------
if __name__ == "__main__":
    B = 8  # small stand-in for n_envs=1024
    key = jax.random.PRNGKey(0)
    k_obs, k_param = jax.random.split(key)

    observation = jax.random.normal(k_obs, (B, OBS_DIM), jnp.float32)
    h0 = jnp.zeros((B, HIDDEN), jnp.float32)   # init_hidden() == zeros, layer 0
    h1 = jnp.zeros((B, HIDDEN), jnp.float32)   # layer 1
    raw = make_raw_params(k_param)
    params = pack_params(raw)

    out, h0_new, h1_new = student_policy_forward(observation, h0, h1, params)
    out = jax.block_until_ready(out)

    ref_out, ref_h0, ref_h1 = _reference_forward(observation, h0, h1, raw)

    assert out.shape == (B, OUT_DIM), out.shape
    for got, ref in ((out, ref_out), (h0_new, ref_h0), (h1_new, ref_h1)):
        err = float(jnp.max(jnp.abs(got - ref)))
        assert jnp.allclose(got, ref, atol=2e-2, rtol=2e-2), err

    print("KERNEL_OK")
</pallas_src>

<mosaic_0001>
module attributes {stable_mosaic.version = 11 : i64} {
  func.func @student_policy_kernel(%arg0: i32, %arg1: memref<8x128xf32, #tpu.memory_space<vmem>>, %arg2: memref<8x256xf32, #tpu.memory_space<vmem>>, %arg3: memref<8x256xf32, #tpu.memory_space<vmem>>, %arg4: memref<256x128xbf16, #tpu.memory_space<vmem>>, %arg5: memref<1x128xf32, #tpu.memory_space<vmem>>, %arg6: memref<128x128xbf16, #tpu.memory_space<vmem>>, %arg7: memref<1x128xf32, #tpu.memory_space<vmem>>, %arg8: memref<256x384xbf16, #tpu.memory_space<vmem>>, %arg9: memref<1x384xf32, #tpu.memory_space<vmem>>, %arg10: memref<128x384xbf16, #tpu.memory_space<vmem>>, %arg11: memref<1x384xf32, #tpu.memory_space<vmem>>, %arg12: memref<128x384xbf16, #tpu.memory_space<vmem>>, %arg13: memref<1x384xf32, #tpu.memory_space<vmem>>, %arg14: memref<128x384xbf16, #tpu.memory_space<vmem>>, %arg15: memref<1x384xf32, #tpu.memory_space<vmem>>, %arg16: memref<128x640xbf16, #tpu.memory_space<vmem>>, %arg17: memref<1x640xf32, #tpu.memory_space<vmem>>, %arg18: memref<640x640xbf16, #tpu.memory_space<vmem>>, %arg19: memref<1x640xf32, #tpu.memory_space<vmem>>, %arg20: memref<640x896xbf16, #tpu.memory_space<vmem>>, %arg21: memref<1x896xf32, #tpu.memory_space<vmem>>, %arg22: memref<384x256xbf16, #tpu.memory_space<vmem>>, %arg23: memref<1x256xf32, #tpu.memory_space<vmem>>, %arg24: memref<256x128xbf16, #tpu.memory_space<vmem>>, %arg25: memref<1x128xf32, #tpu.memory_space<vmem>>, %arg26: memref<128x128xbf16, #tpu.memory_space<vmem>>, %arg27: memref<1x128xf32, #tpu.memory_space<vmem>>, %arg28: memref<8x768xf32, #tpu.memory_space<vmem>>) attributes {dimension_semantics = [#tpu.dimension_semantics<parallel>], iteration_bounds = array<i64: 1>, scalar_prefetch = 0 : i64, scratch_operands = 0 : i64, tpu.core_type = #tpu.core_type<tc>, window_params = [{transform_indices = @transform_0, window_bounds = array<i64: 8, 128>}, {transform_indices = @transform_1, window_bounds = array<i64: 8, 256>}, {transform_indices = @transform_2, window_bounds = array<i64: 8, 256>}, {pipeline_mode = #tpu.pipeline_mode<synchronous>, transform_indices = @transform_3, window_bounds = array<i64: 256, 128>}, {pipeline_mode = #tpu.pipeline_mode<synchronous>, transform_indices = @transform_4, window_bounds = array<i64: 1, 128>}, {pipeline_mode = #tpu.pipeline_mode<synchronous>, transform_indices = @transform_5, window_bounds = array<i64: 128, 128>}, {pipeline_mode = #tpu.pipeline_mode<synchronous>, transform_indices = @transform_6, window_bounds = array<i64: 1, 128>}, {pipeline_mode = #tpu.pipeline_mode<synchronous>, transform_indices = @transform_7, window_bounds = array<i64: 256, 384>}, {pipeline_mode = #tpu.pipeline_mode<synchronous>, transform_indices = @transform_8, window_bounds = array<i64: 1, 384>}, {pipeline_mode = #tpu.pipeline_mode<synchronous>, transform_indices = @transform_9, window_bounds = array<i64: 128, 384>}, {pipeline_mode = #tpu.pipeline_mode<synchronous>, transform_indices = @transform_10, window_bounds = array<i64: 1, 384>}, {pipeline_mode = #tpu.pipeline_mode<synchronous>, transform_indices = @transform_11, window_bounds = array<i64: 128, 384>}, {pipeline_mode = #tpu.pipeline_mode<synchronous>, transform_indices = @transform_12, window_bounds = array<i64: 1, 384>}, {pipeline_mode = #tpu.pipeline_mode<synchronous>, transform_indices = @transform_13, window_bounds = array<i64: 128, 384>}, {pipeline_mode = #tpu.pipeline_mode<synchronous>, transform_indices = @transform_14, window_bounds = array<i64: 1, 384>}, {pipeline_mode = #tpu.pipeline_mode<synchronous>, transform_indices = @transform_15, window_bounds = array<i64: 128, 640>}, {pipeline_mode = #tpu.pipeline_mode<synchronous>, transform_indices = @transform_16, window_bounds = array<i64: 1, 640>}, {pipeline_mode = #tpu.pipeline_mode<synchronous>, transform_indices = @transform_17, window_bounds = array<i64: 640, 640>}, {pipeline_mode = #tpu.pipeline_mode<synchronous>, transform_indices = @transform_18, window_bounds = array<i64: 1, 640>}, {pipeline_mode = #tpu.pipeline_mode<synchronous>, transform_indices = @transform_19, window_bounds = array<i64: 640, 896>}, {pipeline_mode = #tpu.pipeline_mode<synchronous>, transform_indices = @transform_20, window_bounds = array<i64: 1, 896>}, {pipeline_mode = #tpu.pipeline_mode<synchronous>, transform_indices = @transform_21, window_bounds = array<i64: 384, 256>}, {pipeline_mode = #tpu.pipeline_mode<synchronous>, transform_indices = @transform_22, window_bounds = array<i64: 1, 256>}, {pipeline_mode = #tpu.pipeline_mode<synchronous>, transform_indices = @transform_23, window_bounds = array<i64: 256, 128>}, {pipeline_mode = #tpu.pipeline_mode<synchronous>, transform_indices = @transform_24, window_bounds = array<i64: 1, 128>}, {pipeline_mode = #tpu.pipeline_mode<synchronous>, transform_indices = @transform_25, window_bounds = array<i64: 128, 128>}, {pipeline_mode = #tpu.pipeline_mode<synchronous>, transform_indices = @transform_26, window_bounds = array<i64: 1, 128>}, {transform_indices = @transform_27, window_bounds = array<i64: 8, 768>}]} {
    %c0 = arith.constant 0 : index
    %c0_0 = arith.constant 0 : index
    %0 = vector.load %arg1[%c0, %c0_0] : memref<8x128xf32, #tpu.memory_space<vmem>>, vector<8x128xf32>
    %c0_1 = arith.constant 0 : index
    %c0_2 = arith.constant 0 : index
    %1 = vector.load %arg2[%c0_1, %c0_2] : memref<8x256xf32, #tpu.memory_space<vmem>>, vector<8x256xf32>
    %c0_3 = arith.constant 0 : index
    %c0_4 = arith.constant 0 : index
    %2 = vector.load %arg3[%c0_3, %c0_4] : memref<8x256xf32, #tpu.memory_space<vmem>>, vector<8x256xf32>
    %3 = vector.extract_strided_slice %2 {offsets = [0, 0], sizes = [8, 128], strides = [1, 1]} : vector<8x256xf32> to vector<8x128xf32>
    %4 = vector.extract_strided_slice %2 {offsets = [0, 128], sizes = [8, 128], strides = [1, 1]} : vector<8x256xf32> to vector<8x128xf32>
    %5 = arith.truncf %0 : vector<8x128xf32> to vector<8x128xbf16>
    %6 = arith.truncf %1 : vector<8x256xf32> to vector<8x256xbf16>
    %c0_5 = arith.constant 0 : index
    %c0_6 = arith.constant 0 : index
    %7 = vector.load %arg4[%c0_5, %c0_6] : memref<256x128xbf16, #tpu.memory_space<vmem>>, vector<256x128xbf16>
    %cst = arith.constant dense<0.000000e+00> : vector<8x128xf32>
    %8 = tpu.matmul %6, %7, %cst {dimension_numbers = #tpu.dot_dimension_numbers<[1], [0], [0], [1], [0, 0, 1, 1], [], []>} : vector<8x256xbf16>, vector<256x128xbf16>, vector<8x128xf32> -> vector<8x128xf32>
    %c0_7 = arith.constant 0 : index
    %c0_8 = arith.constant 0 : index
    %9 = vector.load %arg5[%c0_7, %c0_8] : memref<1x128xf32, #tpu.memory_space<vmem>>, vector<1x128xf32>
    %10 = vector.broadcast %9 : vector<1x128xf32> to vector<8x128xf32>
    %11 = arith.addf %8, %10 : vector<8x128xf32>
    %cst_9 = arith.constant 0.000000e+00 : f32
    %12 = vector.broadcast %cst_9 : f32 to vector<8x128xf32>
    %13 = arith.cmpf ogt, %11, %12 : vector<8x128xf32>
    %14 = math.exp %11 : vector<8x128xf32>
    %cst_10 = arith.constant 1.000000e+00 : f32
    %15 = vector.broadcast %cst_10 : f32 to vector<8x128xf32>
    %16 = arith.subf %14, %15 : vector<8x128xf32>
    %17 = arith.select %13, %11, %16 : vector<8x128xi1>, vector<8x128xf32>
    %18 = arith.truncf %17 : vector<8x128xf32> to vector<8x128xbf16>
    %c0_11 = arith.constant 0 : index
    %c0_12 = arith.constant 0 : index
    %19 = vector.load %arg6[%c0_11, %c0_12] : memref<128x128xbf16, #tpu.memory_space<vmem>>, vector<128x128xbf16>
    %cst_13 = arith.constant dense<0.000000e+00> : vector<8x128xf32>
    %20 = tpu.matmul %18, %19, %cst_13 {dimension_numbers = #tpu.dot_dimension_numbers<[1], [0], [0], [1], [0, 0, 1, 1], [], []>} : vector<8x128xbf16>, vector<128x128xbf16>, vector<8x128xf32> -> vector<8x128xf32>
    %c0_14 = arith.constant 0 : index
    %c0_15 = arith.constant 0 : index
    %21 = vector.load %arg7[%c0_14, %c0_15] : memref<1x128xf32, #tpu.memory_space<vmem>>, vector<1x128xf32>
    %22 = vector.broadcast %21 : vector<1x128xf32> to vector<8x128xf32>
    %23 = arith.addf %20, %22 : vector<8x128xf32>
    %24 = arith.truncf %23 : vector<8x128xf32> to vector<8x128xbf16>
    %25 = tpu.concatenate %5, %24 in 1 : vector<8x128xbf16>, vector<8x128xbf16> -> vector<8x256xbf16>
    %c0_16 = arith.constant 0 : index
    %c0_17 = arith.constant 0 : index
    %26 = vector.load %arg8[%c0_16, %c0_17] : memref<256x384xbf16, #tpu.memory_space<vmem>>, vector<256x384xbf16>
    %cst_18 = arith.constant dense<0.000000e+00> : vector<8x384xf32>
    %27 = tpu.matmul %25, %26, %cst_18 {dimension_numbers = #tpu.dot_dimension_numbers<[1], [0], [0], [1], [0, 0, 1, 1], [], []>} : vector<8x256xbf16>, vector<256x384xbf16>, vector<8x384xf32> -> vector<8x384xf32>
    %c0_19 = arith.constant 0 : index
    %c0_20 = arith.constant 0 : index
    %28 = vector.load %arg9[%c0_19, %c0_20] : memref<1x384xf32, #tpu.memory_space<vmem>>, vector<1x384xf32>
    %29 = vector.broadcast %28 : vector<1x384xf32> to vector<8x384xf32>
    %30 = arith.addf %27, %29 : vector<8x384xf32>
    %31 = arith.truncf %3 : vector<8x128xf32> to vector<8x128xbf16>
    %c0_21 = arith.constant 0 : index
    %c0_22 = arith.constant 0 : index
    %32 = vector.load %arg10[%c0_21, %c0_22] : memref<128x384xbf16, #tpu.memory_space<vmem>>, vector<128x384xbf16>
    %cst_23 = arith.constant dense<0.000000e+00> : vector<8x384xf32>
    %33 = tpu.matmul %31, %32, %cst_23 {dimension_numbers = #tpu.dot_dimension_numbers<[1], [0], [0], [1], [0, 0, 1, 1], [], []>} : vector<8x128xbf16>, vector<128x384xbf16>, vector<8x384xf32> -> vector<8x384xf32>
    %c0_24 = arith.constant 0 : index
    %c0_25 = arith.constant 0 : index
    %34 = vector.load %arg11[%c0_24, %c0_25] : memref<1x384xf32, #tpu.memory_space<vmem>>, vector<1x384xf32>
    %35 = vector.broadcast %34 : vector<1x384xf32> to vector<8x384xf32>
    %36 = arith.addf %33, %35 : vector<8x384xf32>
    %37 = vector.extract_strided_slice %30 {offsets = [0, 0], sizes = [8, 128], strides = [1, 1]} : vector<8x384xf32> to vector<8x128xf32>
    %38 = vector.extract_strided_slice %36 {offsets = [0, 0], sizes = [8, 128], strides = [1, 1]} : vector<8x384xf32> to vector<8x128xf32>
    %39 = arith.addf %37, %38 : vector<8x128xf32>
    %cst_26 = arith.constant 0.000000e+00 : f32
    %40 = vector.broadcast %cst_26 : f32 to vector<8x128xf32>
    %41 = arith.subf %40, %39 : vector<8x128xf32>
    %42 = math.exp %41 : vector<8x128xf32>
    %cst_27 = arith.constant 1.000000e+00 : f32
    %43 = vector.broadcast %cst_27 : f32 to vector<8x128xf32>
    %44 = arith.addf %43, %42 : vector<8x128xf32>
    %45 = tpu.reciprocal %44 {approx = true} : vector<8x128xf32> -> vector<8x128xf32>
    %46 = vector.extract_strided_slice %30 {offsets = [0, 128], sizes = [8, 128], strides = [1, 1]} : vector<8x384xf32> to vector<8x128xf32>
    %47 = vector.extract_strided_slice %36 {offsets = [0, 128], sizes = [8, 128], strides = [1, 1]} : vector<8x384xf32> to vector<8x128xf32>
    %48 = arith.addf %46, %47 : vector<8x128xf32>
    %cst_28 = arith.constant 0.000000e+00 : f32
    %49 = vector.broadcast %cst_28 : f32 to vector<8x128xf32>
    %50 = arith.subf %49, %48 : vector<8x128xf32>
    %51 = math.exp %50 : vector<8x128xf32>
    %cst_29 = arith.constant 1.000000e+00 : f32
    %52 = vector.broadcast %cst_29 : f32 to vector<8x128xf32>
    %53 = arith.addf %52, %51 : vector<8x128xf32>
    %54 = tpu.reciprocal %53 {approx = true} : vector<8x128xf32> -> vector<8x128xf32>
    %55 = vector.extract_strided_slice %30 {offsets = [0, 256], sizes = [8, 128], strides = [1, 1]} : vector<8x384xf32> to vector<8x128xf32>
    %56 = vector.extract_strided_slice %36 {offsets = [0, 256], sizes = [8, 128], strides = [1, 1]} : vector<8x384xf32> to vector<8x128xf32>
    %57 = arith.mulf %45, %56 : vector<8x128xf32>
    %58 = arith.addf %55, %57 : vector<8x128xf32>
    %59 = math.tanh %58 : vector<8x128xf32>
    %cst_30 = arith.constant 1.000000e+00 : f32
    %60 = vector.broadcast %cst_30 : f32 to vector<8x128xf32>
    %61 = arith.subf %60, %54 : vector<8x128xf32>
    %62 = arith.mulf %61, %59 : vector<8x128xf32>
    %63 = arith.mulf %54, %3 : vector<8x128xf32>
    %64 = arith.addf %62, %63 : vector<8x128xf32>
    %65 = arith.truncf %64 : vector<8x128xf32> to vector<8x128xbf16>
    %c0_31 = arith.constant 0 : index
    %c0_32 = arith.constant 0 : index
    %66 = vector.load %arg12[%c0_31, %c0_32] : memref<128x384xbf16, #tpu.memory_space<vmem>>, vector<128x384xbf16>
    %cst_33 = arith.constant dense<0.000000e+00> : vector<8x384xf32>
    %67 = tpu.matmul %65, %66, %cst_33 {dimension_numbers = #tpu.dot_dimension_numbers<[1], [0], [0], [1], [0, 0, 1, 1], [], []>} : vector<8x128xbf16>, vector<128x384xbf16>, vector<8x384xf32> -> vector<8x384xf32>
    %c0_34 = arith.constant 0 : index
    %c0_35 = arith.constant 0 : index
    %68 = vector.load %arg13[%c0_34, %c0_35] : memref<1x384xf32, #tpu.memory_space<vmem>>, vector<1x384xf32>
    %69 = vector.broadcast %68 : vector<1x384xf32> to vector<8x384xf32>
    %70 = arith.addf %67, %69 : vector<8x384xf32>
    %71 = arith.truncf %4 : vector<8x128xf32> to vector<8x128xbf16>
    %c0_36 = arith.constant 0 : index
    %c0_37 = arith.constant 0 : index
    %72 = vector.load %arg14[%c0_36, %c0_37] : memref<128x384xbf16, #tpu.memory_space<vmem>>, vector<128x384xbf16>
    %cst_38 = arith.constant dense<0.000000e+00> : vector<8x384xf32>
    %73 = tpu.matmul %71, %72, %cst_38 {dimension_numbers = #tpu.dot_dimension_numbers<[1], [0], [0], [1], [0, 0, 1, 1], [], []>} : vector<8x128xbf16>, vector<128x384xbf16>, vector<8x384xf32> -> vector<8x384xf32>
    %c0_39 = arith.constant 0 : index
    %c0_40 = arith.constant 0 : index
    %74 = vector.load %arg15[%c0_39, %c0_40] : memref<1x384xf32, #tpu.memory_space<vmem>>, vector<1x384xf32>
    %75 = vector.broadcast %74 : vector<1x384xf32> to vector<8x384xf32>
    %76 = arith.addf %73, %75 : vector<8x384xf32>
    %77 = vector.extract_strided_slice %70 {offsets = [0, 0], sizes = [8, 128], strides = [1, 1]} : vector<8x384xf32> to vector<8x128xf32>
    %78 = vector.extract_strided_slice %76 {offsets = [0, 0], sizes = [8, 128], strides = [1, 1]} : vector<8x384xf32> to vector<8x128xf32>
    %79 = arith.addf %77, %78 : vector<8x128xf32>
    %cst_41 = arith.constant 0.000000e+00 : f32
    %80 = vector.broadcast %cst_41 : f32 to vector<8x128xf32>
    %81 = arith.subf %80, %79 : vector<8x128xf32>
    %82 = math.exp %81 : vector<8x128xf32>
    %cst_42 = arith.constant 1.000000e+00 : f32
    %83 = vector.broadcast %cst_42 : f32 to vector<8x128xf32>
    %84 = arith.addf %83, %82 : vector<8x128xf32>
    %85 = tpu.reciprocal %84 {approx = true} : vector<8x128xf32> -> vector<8x128xf32>
    %86 = vector.extract_strided_slice %70 {offsets = [0, 128], sizes = [8, 128], strides = [1, 1]} : vector<8x384xf32> to vector<8x128xf32>
    %87 = vector.extract_strided_slice %76 {offsets = [0, 128], sizes = [8, 128], strides = [1, 1]} : vector<8x384xf32> to vector<8x128xf32>
    %88 = arith.addf %86, %87 : vector<8x128xf32>
    %cst_43 = arith.constant 0.000000e+00 : f32
    %89 = vector.broadcast %cst_43 : f32 to vector<8x128xf32>
    %90 = arith.subf %89, %88 : vector<8x128xf32>
    %91 = math.exp %90 : vector<8x128xf32>
    %cst_44 = arith.constant 1.000000e+00 : f32
    %92 = vector.broadcast %cst_44 : f32 to vector<8x128xf32>
    %93 = arith.addf %92, %91 : vector<8x128xf32>
    %94 = tpu.reciprocal %93 {approx = true} : vector<8x128xf32> -> vector<8x128xf32>
    %95 = vector.extract_strided_slice %70 {offsets = [0, 256], sizes = [8, 128], strides = [1, 1]} : vector<8x384xf32> to vector<8x128xf32>
    %96 = vector.extract_strided_slice %76 {offsets = [0, 256], sizes = [8, 128], strides = [1, 1]} : vector<8x384xf32> to vector<8x128xf32>
    %97 = arith.mulf %85, %96 : vector<8x128xf32>
    %98 = arith.addf %95, %97 : vector<8x128xf32>
    %99 = math.tanh %98 : vector<8x128xf32>
    %cst_45 = arith.constant 1.000000e+00 : f32
    %100 = vector.broadcast %cst_45 : f32 to vector<8x128xf32>
    %101 = arith.subf %100, %94 : vector<8x128xf32>
    %102 = arith.mulf %101, %99 : vector<8x128xf32>
    %103 = arith.mulf %94, %4 : vector<8x128xf32>
    %104 = arith.addf %102, %103 : vector<8x128xf32>
    %105 = arith.truncf %104 : vector<8x128xf32> to vector<8x128xbf16>
    %c0_46 = arith.constant 0 : index
    %c0_47 = arith.constant 0 : index
    %106 = vector.load %arg16[%c0_46, %c0_47] : memref<128x640xbf16, #tpu.memory_space<vmem>>, vector<128x640xbf16>
    %cst_48 = arith.constant dense<0.000000e+00> : vector<8x640xf32>
    %107 = tpu.matmul %105, %106, %cst_48 {dimension_numbers = #tpu.dot_dimension_numbers<[1], [0], [0], [1], [0, 0, 1, 1], [], []>} : vector<8x128xbf16>, vector<128x640xbf16>, vector<8x640xf32> -> vector<8x640xf32>
    %c0_49 = arith.constant 0 : index
    %c0_50 = arith.constant 0 : index
    %108 = vector.load %arg17[%c0_49, %c0_50] : memref<1x640xf32, #tpu.memory_space<vmem>>, vector<1x640xf32>
    %109 = vector.broadcast %108 : vector<1x640xf32> to vector<8x640xf32>
    %110 = arith.addf %107, %109 : vector<8x640xf32>
    %cst_51 = arith.constant 0.000000e+00 : f32
    %111 = vector.broadcast %cst_51 : f32 to vector<8x640xf32>
    %112 = arith.cmpf ogt, %110, %111 : vector<8x640xf32>
    %113 = math.exp %110 : vector<8x640xf32>
    %cst_52 = arith.constant 1.000000e+00 : f32
    %114 = vector.broadcast %cst_52 : f32 to vector<8x640xf32>
    %115 = arith.subf %113, %114 : vector<8x640xf32>
    %116 = arith.select %112, %110, %115 : vector<8x640xi1>, vector<8x640xf32>
    %117 = arith.truncf %116 : vector<8x640xf32> to vector<8x640xbf16>
    %c0_53 = arith.constant 0 : index
    %c0_54 = arith.constant 0 : index
    %118 = vector.load %arg18[%c0_53, %c0_54] : memref<640x640xbf16, #tpu.memory_space<vmem>>, vector<640x640xbf16>
    %cst_55 = arith.constant dense<0.000000e+00> : vector<8x640xf32>
    %119 = tpu.matmul %117, %118, %cst_55 {dimension_numbers = #tpu.dot_dimension_numbers<[1], [0], [0], [1], [0, 0, 1, 1], [], []>} : vector<8x640xbf16>, vector<640x640xbf16>, vector<8x640xf32> -> vector<8x640xf32>
    %c0_56 = arith.constant 0 : index
    %c0_57 = arith.constant 0 : index
    %120 = vector.load %arg19[%c0_56, %c0_57] : memref<1x640xf32, #tpu.memory_space<vmem>>, vector<1x640xf32>
    %121 = vector.broadcast %120 : vector<1x640xf32> to vector<8x640xf32>
    %122 = arith.addf %119, %121 : vector<8x640xf32>
    %cst_58 = arith.constant 0.000000e+00 : f32
    %123 = vector.broadcast %cst_58 : f32 to vector<8x640xf32>
    %124 = arith.cmpf ogt, %122, %123 : vector<8x640xf32>
    %125 = math.exp %122 : vector<8x640xf32>
    %cst_59 = arith.constant 1.000000e+00 : f32
    %126 = vector.broadcast %cst_59 : f32 to vector<8x640xf32>
    %127 = arith.subf %125, %126 : vector<8x640xf32>
    %128 = arith.select %124, %122, %127 : vector<8x640xi1>, vector<8x640xf32>
    %129 = arith.truncf %128 : vector<8x640xf32> to vector<8x640xbf16>
    %c0_60 = arith.constant 0 : index
    %c0_61 = arith.constant 0 : index
    %130 = vector.load %arg20[%c0_60, %c0_61] : memref<640x896xbf16, #tpu.memory_space<vmem>>, vector<640x896xbf16>
    %cst_62 = arith.constant dense<0.000000e+00> : vector<8x896xf32>
    %131 = tpu.matmul %129, %130, %cst_62 {dimension_numbers = #tpu.dot_dimension_numbers<[1], [0], [0], [1], [0, 0, 1, 1], [], []>} : vector<8x640xbf16>, vector<640x896xbf16>, vector<8x896xf32> -> vector<8x896xf32>
    %c0_63 = arith.constant 0 : index
    %c0_64 = arith.constant 0 : index
    %132 = vector.load %arg21[%c0_63, %c0_64] : memref<1x896xf32, #tpu.memory_space<vmem>>, vector<1x896xf32>
    %133 = vector.broadcast %132 : vector<1x896xf32> to vector<8x896xf32>
    %134 = arith.addf %131, %133 : vector<8x896xf32>
    %135 = vector.extract_strided_slice %134 {offsets = [0, 0], sizes = [8, 128], strides = [1, 1]} : vector<8x896xf32> to vector<8x128xf32>
    %136 = vector.extract_strided_slice %134 {offsets = [0, 128], sizes = [8, 128], strides = [1, 1]} : vector<8x896xf32> to vector<8x128xf32>
    %137 = vector.extract_strided_slice %134 {offsets = [0, 256], sizes = [8, 256], strides = [1, 1]} : vector<8x896xf32> to vector<8x256xf32>
    %138 = vector.extract_strided_slice %134 {offsets = [0, 512], sizes = [8, 256], strides = [1, 1]} : vector<8x896xf32> to vector<8x256xf32>
    %139 = vector.extract_strided_slice %134 {offsets = [0, 768], sizes = [8, 128], strides = [1, 1]} : vector<8x896xf32> to vector<8x128xf32>
    %cst_65 = arith.constant 0.000000e+00 : f32
    %140 = vector.broadcast %cst_65 : f32 to vector<8x128xf32>
    %141 = arith.subf %140, %135 : vector<8x128xf32>
    %142 = math.exp %141 : vector<8x128xf32>
    %cst_66 = arith.constant 1.000000e+00 : f32
    %143 = vector.broadcast %cst_66 : f32 to vector<8x128xf32>
    %144 = arith.addf %143, %142 : vector<8x128xf32>
    %145 = tpu.reciprocal %144 {approx = true} : vector<8x128xf32> -> vector<8x128xf32>
    %146 = arith.mulf %145, %23 : vector<8x128xf32>
    %147 = arith.truncf %136 : vector<8x128xf32> to vector<8x128xbf16>
    %148 = arith.truncf %146 : vector<8x128xf32> to vector<8x128xbf16>
    %149 = tpu.concatenate %5, %147, %148 in 1 : vector<8x128xbf16>, vector<8x128xbf16>, vector<8x128xbf16> -> vector<8x384xbf16>
    %c0_67 = arith.constant 0 : index
    %c0_68 = arith.constant 0 : index
    %150 = vector.load %arg22[%c0_67, %c0_68] : memref<384x256xbf16, #tpu.memory_space<vmem>>, vector<384x256xbf16>
    %cst_69 = arith.constant dense<0.000000e+00> : vector<8x256xf32>
    %151 = tpu.matmul %149, %150, %cst_69 {dimension_numbers = #tpu.dot_dimension_numbers<[1], [0], [0], [1], [0, 0, 1, 1], [], []>} : vector<8x384xbf16>, vector<384x256xbf16>, vector<8x256xf32> -> vector<8x256xf32>
    %c0_70 = arith.constant 0 : index
    %c0_71 = arith.constant 0 : index
    %152 = vector.load %arg23[%c0_70, %c0_71] : memref<1x256xf32, #tpu.memory_space<vmem>>, vector<1x256xf32>
    %153 = vector.broadcast %152 : vector<1x256xf32> to vector<8x256xf32>
    %154 = arith.addf %151, %153 : vector<8x256xf32>
    %cst_72 = arith.constant 0.000000e+00 : f32
    %155 = vector.broadcast %cst_72 : f32 to vector<8x256xf32>
    %156 = arith.cmpf ogt, %154, %155 : vector<8x256xf32>
    %157 = math.exp %154 : vector<8x256xf32>
    %cst_73 = arith.constant 1.000000e+00 : f32
    %158 = vector.broadcast %cst_73 : f32 to vector<8x256xf32>
    %159 = arith.subf %157, %158 : vector<8x256xf32>
    %160 = arith.select %156, %154, %159 : vector<8x256xi1>, vector<8x256xf32>
    %161 = arith.truncf %160 : vector<8x256xf32> to vector<8x256xbf16>
    %c0_74 = arith.constant 0 : index
    %c0_75 = arith.constant 0 : index
    %162 = vector.load %arg24[%c0_74, %c0_75] : memref<256x128xbf16, #tpu.memory_space<vmem>>, vector<256x128xbf16>
    %cst_76 = arith.constant dense<0.000000e+00> : vector<8x128xf32>
    %163 = tpu.matmul %161, %162, %cst_76 {dimension_numbers = #tpu.dot_dimension_numbers<[1], [0], [0], [1], [0, 0, 1, 1], [], []>} : vector<8x256xbf16>, vector<256x128xbf16>, vector<8x128xf32> -> vector<8x128xf32>
    %c0_77 = arith.constant 0 : index
    %c0_78 = arith.constant 0 : index
    %164 = vector.load %arg25[%c0_77, %c0_78] : memref<1x128xf32, #tpu.memory_space<vmem>>, vector<1x128xf32>
    %165 = vector.broadcast %164 : vector<1x128xf32> to vector<8x128xf32>
    %166 = arith.addf %163, %165 : vector<8x128xf32>
    %cst_79 = arith.constant 0.000000e+00 : f32
    %167 = vector.broadcast %cst_79 : f32 to vector<8x128xf32>
    %168 = arith.cmpf ogt, %166, %167 : vector<8x128xf32>
    %169 = math.exp %166 : vector<8x128xf32>
    %cst_80 = arith.constant 1.000000e+00 : f32
    %170 = vector.broadcast %cst_80 : f32 to vector<8x128xf32>
    %171 = arith.subf %169, %170 : vector<8x128xf32>
    %172 = arith.select %168, %166, %171 : vector<8x128xi1>, vector<8x128xf32>
    %173 = arith.truncf %172 : vector<8x128xf32> to vector<8x128xbf16>
    %c0_81 = arith.constant 0 : index
    %c0_82 = arith.constant 0 : index
    %174 = vector.load %arg26[%c0_81, %c0_82] : memref<128x128xbf16, #tpu.memory_space<vmem>>, vector<128x128xbf16>
    %cst_83 = arith.constant dense<0.000000e+00> : vector<8x128xf32>
    %175 = tpu.matmul %173, %174, %cst_83 {dimension_numbers = #tpu.dot_dimension_numbers<[1], [0], [0], [1], [0, 0, 1, 1], [], []>} : vector<8x128xbf16>, vector<128x128xbf16>, vector<8x128xf32> -> vector<8x128xf32>
    %c0_84 = arith.constant 0 : index
    %c0_85 = arith.constant 0 : index
    %176 = vector.load %arg27[%c0_84, %c0_85] : memref<1x128xf32, #tpu.memory_space<vmem>>, vector<1x128xf32>
    %177 = vector.broadcast %176 : vector<1x128xf32> to vector<8x128xf32>
    %178 = arith.addf %175, %177 : vector<8x128xf32>
    %cst_86 = arith.constant 0.000000e+00 : f32
    %179 = vector.broadcast %cst_86 : f32 to vector<8x256xf32>
    %180 = arith.subf %179, %137 : vector<8x256xf32>
    %181 = math.exp %180 : vector<8x256xf32>
    %cst_87 = arith.constant 1.000000e+00 : f32
    %182 = vector.broadcast %cst_87 : f32 to vector<8x256xf32>
    %183 = arith.addf %182, %181 : vector<8x256xf32>
    %184 = tpu.reciprocal %183 {approx = true} : vector<8x256xf32> -> vector<8x256xf32>
    %185 = arith.mulf %184, %1 : vector<8x256xf32>
    %186 = arith.addf %138, %185 : vector<8x256xf32>
    %187 = tpu.concatenate %178, %186, %139, %64, %104 in 1 : vector<8x128xf32>, vector<8x256xf32>, vector<8x128xf32>, vector<8x128xf32>, vector<8x128xf32> -> vector<8x768xf32>
    %c0_88 = arith.constant 0 : index
    %c0_89 = arith.constant 0 : index
    %188 = vector.load %arg28[%c0_88, %c0_89] : memref<8x768xf32, #tpu.memory_space<vmem>>, vector<8x768xf32>
    tpu.vector_store %arg28[%c0_88, %c0_89], %187 {strides = array<i32>} : memref<8x768xf32, #tpu.memory_space<vmem>>, vector<8x768xf32>,
    return
  }
  func.func @transform_0(%arg0: i32) -> (i32, i32) {
    %c0_i32 = arith.constant 0 : i32
    %c0_i32_0 = arith.constant 0 : i32
    return %arg0, %c0_i32 : i32, i32
  }
  func.func @transform_1(%arg0: i32) -> (i32, i32) {
    %c0_i32 = arith.constant 0 : i32
    %c0_i32_0 = arith.constant 0 : i32
    return %arg0, %c0_i32 : i32, i32
  }
  func.func @transform_2(%arg0: i32) -> (i32, i32) {
    %c0_i32 = arith.constant 0 : i32
    %c0_i32_0 = arith.constant 0 : i32
    return %arg0, %c0_i32 : i32, i32
  }
  func.func @transform_3(%arg0: i32) -> (i32, i32) {
    %c0_i32 = arith.constant 0 : i32
    %c0_i32_0 = arith.constant 0 : i32
    %c0_i32_1 = arith.constant 0 : i32
    return %c0_i32, %c0_i32_0 : i32, i32
  }
  func.func @transform_4(%arg0: i32) -> (i32, i32) {
    %c0_i32 = arith.constant 0 : i32
    %c0_i32_0 = arith.constant 0 : i32
    %c0_i32_1 = arith.constant 0 : i32
    return %c0_i32, %c0_i32_0 : i32, i32
  }
  func.func @transform_5(%arg0: i32) -> (i32, i32) {
    %c0_i32 = arith.constant 0 : i32
    %c0_i32_0 = arith.constant 0 : i32
    %c0_i32_1 = arith.constant 0 : i32
    return %c0_i32, %c0_i32_0 : i32, i32
  }
  func.func @transform_6(%arg0: i32) -> (i32, i32) {
    %c0_i32 = arith.constant 0 : i32
    %c0_i32_0 = arith.constant 0 : i32
    %c0_i32_1 = arith.constant 0 : i32
    return %c0_i32, %c0_i32_0 : i32, i32
  }
  func.func @transform_7(%arg0: i32) -> (i32, i32) {
    %c0_i32 = arith.constant 0 : i32
    %c0_i32_0 = arith.constant 0 : i32
    %c0_i32_1 = arith.constant 0 : i32
    return %c0_i32, %c0_i32_0 : i32, i32
  }
  func.func @transform_8(%arg0: i32) -> (i32, i32) {
    %c0_i32 = arith.constant 0 : i32
    %c0_i32_0 = arith.constant 0 : i32
    %c0_i32_1 = arith.constant 0 : i32
    return %c0_i32, %c0_i32_0 : i32, i32
  }
  func.func @transform_9(%arg0: i32) -> (i32, i32) {
    %c0_i32 = arith.constant 0 : i32
    %c0_i32_0 = arith.constant 0 : i32
    %c0_i32_1 = arith.constant 0 : i32
    return %c0_i32, %c0_i32_0 : i32, i32
  }
  func.func @transform_10(%arg0: i32) -> (i32, i32) {
    %c0_i32 = arith.constant 0 : i32
    %c0_i32_0 = arith.constant 0 : i32
    %c0_i32_1 = arith.constant 0 : i32
    return %c0_i32, %c0_i32_0 : i32, i32
  }
  func.func @transform_11(%arg0: i32) -> (i32, i32) {
    %c0_i32 = arith.constant 0 : i32
    %c0_i32_0 = arith.constant 0 : i32
    %c0_i32_1 = arith.constant 0 : i32
    return %c0_i32, %c0_i32_0 : i32, i32
  }
  func.func @transform_12(%arg0: i32) -> (i32, i32) {
    %c0_i32 = arith.constant 0 : i32
    %c0_i32_0 = arith.constant 0 : i32
    %c0_i32_1 = arith.constant 0 : i32
    return %c0_i32, %c0_i32_0 : i32, i32
  }
  func.func @transform_13(%arg0: i32) -> (i32, i32) {
    %c0_i32 = arith.constant 0 : i32
    %c0_i32_0 = arith.constant 0 : i32
    %c0_i32_1 = arith.constant 0 : i32
    return %c0_i32, %c0_i32_0 : i32, i32
  }
  func.func @transform_14(%arg0: i32) -> (i32, i32) {
    %c0_i32 = arith.constant 0 : i32
    %c0_i32_0 = arith.constant 0 : i32
    %c0_i32_1 = arith.constant 0 : i32
    return %c0_i32, %c0_i32_0 : i32, i32
  }
  func.func @transform_15(%arg0: i32) -> (i32, i32) {
    %c0_i32 = arith.constant 0 : i32
    %c0_i32_0 = arith.constant 0 : i32
    %c0_i32_1 = arith.constant 0 : i32
    return %c0_i32, %c0_i32_0 : i32, i32
  }
  func.func @transform_16(%arg0: i32) -> (i32, i32) {
    %c0_i32 = arith.constant 0 : i32
    %c0_i32_0 = arith.constant 0 : i32
    %c0_i32_1 = arith.constant 0 : i32
    return %c0_i32, %c0_i32_0 : i32, i32
  }
  func.func @transform_17(%arg0: i32) -> (i32, i32) {
    %c0_i32 = arith.constant 0 : i32
    %c0_i32_0 = arith.constant 0 : i32
    %c0_i32_1 = arith.constant 0 : i32
    return %c0_i32, %c0_i32_0 : i32, i32
  }
  func.func @transform_18(%arg0: i32) -> (i32, i32) {
    %c0_i32 = arith.constant 0 : i32
    %c0_i32_0 = arith.constant 0 : i32
    %c0_i32_1 = arith.constant 0 : i32
    return %c0_i32, %c0_i32_0 : i32, i32
  }
  func.func @transform_19(%arg0: i32) -> (i32, i32) {
    %c0_i32 = arith.constant 0 : i32
    %c0_i32_0 = arith.constant 0 : i32
    %c0_i32_1 = arith.constant 0 : i32
    return %c0_i32, %c0_i32_0 : i32, i32
  }
  func.func @transform_20(%arg0: i32) -> (i32, i32) {
    %c0_i32 = arith.constant 0 : i32
    %c0_i32_0 = arith.constant 0 : i32
    %c0_i32_1 = arith.constant 0 : i32
    return %c0_i32, %c0_i32_0 : i32, i32
  }
  func.func @transform_21(%arg0: i32) -> (i32, i32) {
    %c0_i32 = arith.constant 0 : i32
    %c0_i32_0 = arith.constant 0 : i32
    %c0_i32_1 = arith.constant 0 : i32
    return %c0_i32, %c0_i32_0 : i32, i32
  }
  func.func @transform_22(%arg0: i32) -> (i32, i32) {
    %c0_i32 = arith.constant 0 : i32
    %c0_i32_0 = arith.constant 0 : i32
    %c0_i32_1 = arith.constant 0 : i32
    return %c0_i32, %c0_i32_0 : i32, i32
  }
  func.func @transform_23(%arg0: i32) -> (i32, i32) {
    %c0_i32 = arith.constant 0 : i32
    %c0_i32_0 = arith.constant 0 : i32
    %c0_i32_1 = arith.constant 0 : i32
    return %c0_i32, %c0_i32_0 : i32, i32
  }
  func.func @transform_24(%arg0: i32) -> (i32, i32) {
    %c0_i32 = arith.constant 0 : i32
    %c0_i32_0 = arith.constant 0 : i32
    %c0_i32_1 = arith.constant 0 : i32
    return %c0_i32, %c0_i32_0 : i32, i32
  }
  func.func @transform_25(%arg0: i32) -> (i32, i32) {
    %c0_i32 = arith.constant 0 : i32
    %c0_i32_0 = arith.constant 0 : i32
    %c0_i32_1 = arith.constant 0 : i32
    return %c0_i32, %c0_i32_0 : i32, i32
  }
  func.func @transform_26(%arg0: i32) -> (i32, i32) {
    %c0_i32 = arith.constant 0 : i32
    %c0_i32_0 = arith.constant 0 : i32
    %c0_i32_1 = arith.constant 0 : i32
    return %c0_i32, %c0_i32_0 : i32, i32
  }
  func.func @transform_27(%arg0: i32) -> (i32, i32) {
    %c0_i32 = arith.constant 0 : i32
    %c0_i32_0 = arith.constant 0 : i32
    return %arg0, %c0_i32 : i32, i32
  }
}

</mosaic_0001>

<bundles_post_ra>
// kernel: student_policy_forward.1
= control target key start
LH: loop header
LB: loop body
LE: loop exit
PB: predicated region body
PF: predicated region fallthrough
CT: control target
= control target key end

     0   :  { %s10779_s0 = inlined_call_operand.vmem [shape: f32[8,128], index: 0, kind: input, shape index: {}]   ;;  %s10780_s1 = inlined_call_operand.vmem [shape: f32[8,256], index: 1, kind: input, shape index: {}]   ;;  %s10781_s2 = inlined_call_operand.vmem [shape: f32[8,256], index: 2, kind: input, shape index: {}]   ;;  %s10782_s3 = inlined_call_operand.hbm [shape: bf16[256,128], index: 3, kind: input, shape index: {}]   ;;  %s10783_s4 = inlined_call_operand.hbm [shape: f32[1,128], index: 4, kind: input, shape index: {}]   ;;  %s10784_s5 = inlined_call_operand.hbm [shape: bf16[128,128], index: 5, kind: input, shape index: {}]   ;;  %s10785_s6 = inlined_call_operand.hbm [shape: f32[1,128], index: 6, kind: input, shape index: {}]   ;;  %s10786_s7 = inlined_call_operand.hbm [shape: bf16[256,384], index: 7, kind: input, shape index: {}]   ;;  %s10787_s8 = inlined_call_operand.hbm [shape: f32[1,384], index: 8, kind: input, shape index: {}]   ;;  %s10788_s9 = inlined_call_operand.hbm [shape: bf16[128,384], index: 9, kind: input, shape index: {}]   ;;  %s10789_s10 = inlined_call_operand.hbm [shape: f32[1,384], index: 10, kind: input, shape index: {}]   ;;  %s10790_s11 = inlined_call_operand.hbm [shape: bf16[128,384], index: 11, kind: input, shape index: {}]   ;;  %s10791_s12 = inlined_call_operand.hbm [shape: f32[1,384], index: 12, kind: input, shape index: {}]   ;;  %s10792_s13 = inlined_call_operand.hbm [shape: bf16[128,384], index: 13, kind: input, shape index: {}]   ;;  %s10793_s14 = inlined_call_operand.hbm [shape: f32[1,384], index: 14, kind: input, shape index: {}]   ;;  %s10794_s15 = inlined_call_operand.hbm [shape: bf16[128,640], index: 15, kind: input, shape index: {}]   ;;  %s10795_s16 = inlined_call_operand.hbm [shape: f32[1,640], index: 16, kind: input, shape index: {}]   ;;  %s10796_s17 = inlined_call_operand.hbm [shape: bf16[640,640], index: 17, kind: input, shape index: {}]   ;;  %s10797_s18 = inlined_call_operand.hbm [shape: f32[1,640], index: 18, kind: input, shape index: {}]   ;;  %s10798_s19 = inlined_call_operand.hbm [shape: bf16[640,896], index: 19, kind: input, shape index: {}]   ;;  %s10799_s20 = inlined_call_operand.hbm [shape: f32[1,896], index: 20, kind: input, shape index: {}]   ;;  %s10800_s21 = inlined_call_operand.hbm [shape: bf16[384,256], index: 21, kind: input, shape index: {}]   ;;  %s10801_s22 = inlined_call_operand.hbm [shape: f32[1,256], index: 22, kind: input, shape index: {}]   ;;  %s10802_s23 = inlined_call_operand.hbm [shape: bf16[256,128], index: 23, kind: input, shape index: {}]   ;;  %s10803_s24 = inlined_call_operand.hbm [shape: f32[1,128], index: 24, kind: input, shape index: {}]   ;;  %s10804_s25 = inlined_call_operand.hbm [shape: bf16[128,128], index: 25, kind: input, shape index: {}]   ;;  %s10805_s26 = inlined_call_operand.hbm [shape: f32[1,128], index: 26, kind: input, shape index: {}]   ;;  %s10806_s27 = inlined_call_operand.vmem [shape: f32[8,768], index: 27, kind: output, shape index: {}]  }
   0x1   :  { %10819 = sst [smem:[#allocation52_spill]] %s10779_s0 }
   0x2   :  { %10820 = sst [smem:[#allocation53_spill]] %s10780_s1 }
   0x3   :  { %10821 = sst [smem:[#allocation54_spill]] %s10781_s2 }
   0x4   :  { %10822 = sst [smem:[#allocation55_spill]] %s10782_s3 }
   0x5   :  { %10823 = sst [smem:[#allocation56_spill]] %s10783_s4 }
   0x6   :  { %10824 = sst [smem:[#allocation57_spill]] %s10784_s5 }
   0x7   :  { %10825 = sst [smem:[#allocation58_spill]] %s10785_s6 }
   0x8   :  { %10826 = sst [smem:[#allocation59_spill]] %s10786_s7 }
   0x9   :  { %10827 = sst [smem:[#allocation60_spill]] %s10787_s8 }
   0xa   :  { %10828 = sst [smem:[#allocation61_spill]] %s10788_s9 }
   0xb   :  { %10829 = sst [smem:[#allocation62_spill]] %s10789_s10 }
   0xc   :  { %10830 = sst [smem:[#allocation63_spill]] %s10790_s11 }
   0xd   :  { %10831 = sst [smem:[#allocation64_spill]] %s10806_s27 }
   0xe   :  { %32 = vsyncpa [#allocation3], 0 }
   0xf   :  { %33 = vsyncpa [#allocation5], 0 }
  0x10   :  { %34 = vsyncpa [#allocation8], 0 }
  0x11   :  { %35 = vsyncpa [#allocation11], 0 }
  0x12   :  { %36 = vsyncpa [#allocation14], 0 }
  0x13   :  { %37 = vsyncpa [#allocation17], 0 }
  0x14   :  { %38 = vsyncpa [#allocation20], 0 }
  0x15   :  { %39 = vsyncpa [#allocation23], 0 }
  0x16   :  { %40 = vsyncpa [#allocation26], 0 }
  0x17   :  { %41 = vsyncpa [#allocation29], 0 }
  0x18   :  { %42 = vsyncpa [#allocation32], 0 }
  0x19   :  { %43 = vsyncpa [#allocation35], 0 }
  0x1a   :  { %44 = vsyncpa [#allocation38], 0  ;;  %s9949_s7 = smov [#allocation4]   ;;  %s9950_s8 = smov [#allocation7]  }
  0x1b   :  { %s69_s4 = sshll.u32 %s9949_s7, 4  ;;  %s91_s30 = sshll.u32 %s9950_s8, 4  ;;  %s70_s4 = int_to_ptr.vmem [resolvable:$true] %s69_s4  ;;  %s92_s30 = int_to_ptr.vmem [resolvable:$true] %s91_s30 }
  0x1c   :  { %s10832_s28 = sld [smem:[#allocation56_spill]] }
  0x22   :  { %s9395_s0 = scalar_lea.hbm %s10832_s28, 16 }
  0x23   :  { %p9396_p0 = scmp.ne.s32.totalorder %s10832_s28, %s9395_s0  ;;  %p9399_p1 = scmp.lt.u32.totalorder %s9395_s0, %s10832_s28 }
  0x25   :  { %p9401_p2 = pnand %p9399_p1, %p9396_p0 }
  0x27   :  { %9404 = shalt.err (!%p9401_p2)
}
  0x28   :  { %s9405_s11 = scalar_lea.vmem %s70_s4, 16  ;;  %s9409_s2 = scalar_lea.vmem %s70_s4, 32 }
  0x29   :  { %p9406_p3 = scmp.ne.s32.totalorder %s70_s4, %s9405_s11  ;;  %p9410_p4 = scmp.lt.s32.totalorder %s70_s4, %s70_s4 }
  0x2a   :  { %p9411_p5 = scmp.lt.s32.totalorder %s9409_s2, %s9405_s11 }
  0x2c   :  { %p9412_p6 = por %p9411_p5, %p9410_p4 }
  0x2e   :  { %p9413_p7 = pnand %p9412_p6, %p9406_p3 }
  0x30   :  { %9416 = shalt.err (!%p9413_p7)
}
  0x31   :  { %72 = dma.hbm_to_vmem [thread:$0]  %s10832_s28, 16, %s70_s4, [#allocation5]  }
  0x32   :  { %s10833_s5 = sld [smem:[#allocation58_spill]] }
  0x38   :  { %s9417_s10 = scalar_lea.hbm %s10833_s5, 16 }
  0x39   :  { %p9418_p8 = scmp.ne.s32.totalorder %s10833_s5, %s9417_s10  ;;  %p9421_p9 = scmp.lt.u32.totalorder %s9417_s10, %s10833_s5 }
  0x3b   :  { %p9423_p10 = pnand %p9421_p9, %p9418_p8 }
  0x3d   :  { %9426 = shalt.err (!%p9423_p10)
}
  0x3e   :  { %s9427_s11 = scalar_lea.vmem %s92_s30, 16  ;;  %s9431_s2 = scalar_lea.vmem %s92_s30, 32 }
  0x3f   :  { %p9428_p11 = scmp.ne.s32.totalorder %s92_s30, %s9427_s11  ;;  %p9432_p12 = scmp.lt.s32.totalorder %s92_s30, %s92_s30 }
  0x40   :  { %p9433_p13 = scmp.lt.s32.totalorder %s9431_s2, %s9427_s11 }
  0x42   :  { %p9434_p0 = por %p9433_p13, %p9432_p12 }
  0x44   :  { %p9435_p1 = pnand %p9434_p0, %p9428_p11 }
  0x46   :  { %9438 = shalt.err (!%p9435_p1)
}
  0x47   :  { %94 = dma.hbm_to_vmem [thread:$0]  %s10833_s5, 16, %s92_s30, [#allocation8]  }
  0x48   :  { %s9951_s3 = smov [#allocation10]   ;;  %s9952_s8 = smov [#allocation13]  }
  0x49   :  { %s113_s7 = sshll.u32 %s9951_s3, 4  ;;  %s135_s9 = sshll.u32 %s9952_s8, 4  ;;  %s114_s7 = int_to_ptr.vmem [resolvable:$true] %s113_s7  ;;  %s136_s9 = int_to_ptr.vmem [resolvable:$true] %s135_s9 }
  0x4a   :  { %s10834_s0 = sld [smem:[#allocation60_spill]] }
  0x50   :  { %s9439_s1 = scalar_lea.hbm %s10834_s0, 48 }
  0x51   :  { %p9440_p2 = scmp.ne.s32.totalorder %s10834_s0, %s9439_s1  ;;  %p9443_p3 = scmp.lt.u32.totalorder %s9439_s1, %s10834_s0 }
  0x53   :  { %p9445_p4 = pnand %p9443_p3, %p9440_p2 }
  0x55   :  { %9448 = shalt.err (!%p9445_p4)
}
  0x56   :  { %s9449_s30 = scalar_lea.vmem %s114_s7, 48  ;;  %s9453_s5 = scalar_lea.vmem %s114_s7, 64 }
  0x57   :  { %p9450_p5 = scmp.ne.s32.totalorder %s114_s7, %s9449_s30  ;;  %p9454_p6 = scmp.lt.s32.totalorder %s114_s7, %s114_s7 }
  0x58   :  { %p9455_p7 = scmp.lt.s32.totalorder %s9453_s5, %s9449_s30 }
  0x5a   :  { %p9456_p8 = por %p9455_p7, %p9454_p6 }
  0x5c   :  { %p9457_p9 = pnand %p9456_p8, %p9450_p5 }
  0x5e   :  { %9460 = shalt.err (!%p9457_p9)
}
  0x5f   :  { %116 = dma.hbm_to_vmem [thread:$0]  %s10834_s0, 48, %s114_s7, [#allocation11]  }
  0x60   :  { %s10835_s8 = sld [smem:[#allocation62_spill]] }
  0x66   :  { %s9461_s10 = scalar_lea.hbm %s10835_s8, 48 }
  0x67   :  { %p9462_p10 = scmp.ne.s32.totalorder %s10835_s8, %s9461_s10  ;;  %p9465_p11 = scmp.lt.u32.totalorder %s9461_s10, %s10835_s8 }
  0x69   :  { %p9467_p12 = pnand %p9465_p11, %p9462_p10 }
  0x6b   :  { %9470 = shalt.err (!%p9467_p12)
}
  0x6c   :  { %s9471_s2 = scalar_lea.vmem %s136_s9, 48  ;;  %s9475_s30 = scalar_lea.vmem %s136_s9, 64 }
  0x6d   :  { %p9472_p13 = scmp.ne.s32.totalorder %s136_s9, %s9471_s2  ;;  %p9476_p0 = scmp.lt.s32.totalorder %s136_s9, %s136_s9 }
  0x6e   :  { %p9477_p1 = scmp.lt.s32.totalorder %s9475_s30, %s9471_s2 }
  0x70   :  { %p9478_p2 = por %p9477_p1, %p9476_p0 }
  0x72   :  { %p9479_p3 = pnand %p9478_p2, %p9472_p13 }
  0x74   :  { %9482 = shalt.err (!%p9479_p3)
}
  0x75   :  { %138 = dma.hbm_to_vmem [thread:$0]  %s10835_s8, 48, %s136_s9, [#allocation14]  }
  0x76   :  { %s9953_s5 = smov [#allocation16]   ;;  %s9954_s28 = smov [#allocation19]  }
  0x77   :  { %s157_s4 = sshll.u32 %s9953_s5, 4  ;;  %s179_s27 = sshll.u32 %s9954_s28, 4  ;;  %s158_s4 = int_to_ptr.vmem [resolvable:$true] %s157_s4  ;;  %s180_s27 = int_to_ptr.vmem [resolvable:$true] %s179_s27 }
  0x78   :  { %s9483_s29 = scalar_lea.hbm %s10791_s12, 48 }
  0x79   :  { %p9484_p4 = scmp.ne.s32.totalorder %s10791_s12, %s9483_s29  ;;  %p9487_p5 = scmp.lt.u32.totalorder %s9483_s29, %s10791_s12 }
  0x7b   :  { %p9489_p6 = pnand %p9487_p5, %p9484_p4 }
  0x7d   :  { %9492 = shalt.err (!%p9489_p6)
}
  0x7e   :  { %s9493_s9 = scalar_lea.vmem %s158_s4, 48  ;;  %s9497_s8 = scalar_lea.vmem %s158_s4, 64 }
  0x7f   :  { %p9494_p7 = scmp.ne.s32.totalorder %s158_s4, %s9493_s9  ;;  %p9498_p8 = scmp.lt.s32.totalorder %s158_s4, %s158_s4 }
  0x80   :  { %p9499_p9 = scmp.lt.s32.totalorder %s9497_s8, %s9493_s9 }
  0x82   :  { %p9500_p10 = por %p9499_p9, %p9498_p8 }
  0x84   :  { %p9501_p11 = pnand %p9500_p10, %p9494_p7 }
  0x86   :  { %9504 = shalt.err (!%p9501_p11)
}
  0x87   :  { %160 = dma.hbm_to_vmem [thread:$0]  %s10791_s12, 48, %s158_s4, [#allocation17]  }
  0x88   :  { %s9505_s28 = scalar_lea.hbm %s10793_s14, 48 }
  0x89   :  { %p9506_p12 = scmp.ne.s32.totalorder %s10793_s14, %s9505_s28  ;;  %p9509_p13 = scmp.lt.u32.totalorder %s9505_s28, %s10793_s14 }
  0x8b   :  { %p9511_p0 = pnand %p9509_p13, %p9506_p12 }
  0x8d   :  { %9514 = shalt.err (!%p9511_p0)
}
  0x8e   :  { %s9515_s6 = scalar_lea.vmem %s180_s27, 48  ;;  %s9519_s11 = scalar_lea.vmem %s180_s27, 64 }
  0x8f   :  { %p9516_p1 = scmp.ne.s32.totalorder %s180_s27, %s9515_s6  ;;  %p9520_p2 = scmp.lt.s32.totalorder %s180_s27, %s180_s27 }
  0x90   :  { %p9521_p3 = scmp.lt.s32.totalorder %s9519_s11, %s9515_s6 }
  0x92   :  { %p9522_p4 = por %p9521_p3, %p9520_p2 }
  0x94   :  { %p9523_p5 = pnand %p9522_p4, %p9516_p1 }
  0x96   :  { %9526 = shalt.err (!%p9523_p5)
}
  0x97   :  { %182 = dma.hbm_to_vmem [thread:$0]  %s10793_s14, 48, %s180_s27, [#allocation20]  }
  0x98   :  { %s9955_s2 = smov [#allocation22]   ;;  %s9956_s8 = smov [#allocation25]  }
  0x99   :  { %s201_s9 = sshll.u32 %s9955_s2, 4  ;;  %s223_s30 = sshll.u32 %s9956_s8, 4  ;;  %s202_s9 = int_to_ptr.vmem [resolvable:$true] %s201_s9  ;;  %s224_s30 = int_to_ptr.vmem [resolvable:$true] %s223_s30 }
  0x9a   :  { %s9527_s5 = scalar_lea.hbm %s10795_s16, 80 }
  0x9b   :  { %p9528_p6 = scmp.ne.s32.totalorder %s10795_s16, %s9527_s5  ;;  %p9531_p7 = scmp.lt.u32.totalorder %s9527_s5, %s10795_s16 }
  0x9d   :  { %p9533_p8 = pnand %p9531_p7, %p9528_p6 }
  0x9f   :  { %9536 = shalt.err (!%p9533_p8)
}
  0xa0   :  { %s9537_s14 = scalar_lea.vmem %s202_s9, 80  ;;  %s9541_s27 = scalar_lea.vmem %s202_s9, 96 }
  0xa1   :  { %p9538_p9 = scmp.ne.s32.totalorder %s202_s9, %s9537_s14  ;;  %p9542_p10 = scmp.lt.s32.totalorder %s202_s9, %s202_s9 }
  0xa2   :  { %p9543_p11 = scmp.lt.s32.totalorder %s9541_s27, %s9537_s14 }
  0xa4   :  { %p9544_p12 = por %p9543_p11, %p9542_p10 }
  0xa6   :  { %p9545_p13 = pnand %p9544_p12, %p9538_p9 }
  0xa8   :  { %9548 = shalt.err (!%p9545_p13)
}
  0xa9   :  { %204 = dma.hbm_to_vmem [thread:$0]  %s10795_s16, 80, %s202_s9, [#allocation23]  }
  0xaa   :  { %s9549_s4 = scalar_lea.hbm %s10797_s18, 80 }
  0xab   :  { %p9550_p0 = scmp.ne.s32.totalorder %s10797_s18, %s9549_s4  ;;  %p9553_p1 = scmp.lt.u32.totalorder %s9549_s4, %s10797_s18 }
  0xad   :  { %p9555_p2 = pnand %p9553_p1, %p9550_p0 }
  0xaf   :  { %9558 = shalt.err (!%p9555_p2)
}
  0xb0   :  { %s9559_s5 = scalar_lea.vmem %s224_s30, 80  ;;  %s9563_s28 = scalar_lea.vmem %s224_s30, 96 }
  0xb1   :  { %p9560_p3 = scmp.ne.s32.totalorder %s224_s30, %s9559_s5  ;;  %p9564_p4 = scmp.lt.s32.totalorder %s224_s30, %s224_s30 }
  0xb2   :  { %p9565_p5 = scmp.lt.s32.totalorder %s9563_s28, %s9559_s5 }
  0xb4   :  { %p9566_p6 = por %p9565_p5, %p9564_p4 }
  0xb6   :  { %p9567_p7 = pnand %p9566_p6, %p9560_p3 }
  0xb8   :  { %9570 = shalt.err (!%p9567_p7)
}
  0xb9   :  { %226 = dma.hbm_to_vmem [thread:$0]  %s10797_s18, 80, %s224_s30, [#allocation26]  }
  0xba   :  { %s9957_s3 = smov [#allocation28]   ;;  %s9958_s29 = smov [#allocation31]  }
  0xbb   :  { %s245_s10 = sshll.u32 %s9957_s3, 4  ;;  %s267_s14 = sshll.u32 %s9958_s29, 4  ;;  %s246_s10 = int_to_ptr.vmem [resolvable:$true] %s245_s10  ;;  %s268_s14 = int_to_ptr.vmem [resolvable:$true] %s267_s14 }
  0xbc   :  { %s9571_s6 = scalar_lea.hbm %s10799_s20, 112 }
  0xbd   :  { %p9572_p8 = scmp.ne.s32.totalorder %s10799_s20, %s9571_s6  ;;  %p9575_p9 = scmp.lt.u32.totalorder %s9571_s6, %s10799_s20 }
  0xbf   :  { %p9577_p10 = pnand %p9575_p9, %p9572_p8 }
  0xc1   :  { %9580 = shalt.err (!%p9577_p10)
}
  0xc2   :  { %s9581_s18 = scalar_lea.vmem %s246_s10, 112  ;;  %s9585_s30 = scalar_lea.vmem %s246_s10, 128 }
  0xc3   :  { %p9582_p11 = scmp.ne.s32.totalorder %s246_s10, %s9581_s18  ;;  %p9586_p12 = scmp.lt.s32.totalorder %s246_s10, %s246_s10 }
  0xc4   :  { %p9587_p13 = scmp.lt.s32.totalorder %s9585_s30, %s9581_s18 }
  0xc6   :  { %p9588_p0 = por %p9587_p13, %p9586_p12 }
  0xc8   :  { %p9589_p1 = pnand %p9588_p0, %p9582_p11 }
  0xca   :  { %9592 = shalt.err (!%p9589_p1)
}
  0xcb   :  { %248 = dma.hbm_to_vmem [thread:$0]  %s10799_s20, 112, %s246_s10, [#allocation29]  }
  0xcc   :  { %s9593_s28 = scalar_lea.hbm %s10801_s22, 32 }
  0xcd   :  { %p9594_p2 = scmp.ne.s32.totalorder %s10801_s22, %s9593_s28  ;;  %p9597_p3 = scmp.lt.u32.totalorder %s9593_s28, %s10801_s22 }
  0xcf   :  { %p9599_p4 = pnand %p9597_p3, %p9594_p2 }
  0xd1   :  { %9602 = shalt.err (!%p9599_p4)
}
  0xd2   :  { %s9603_s27 = scalar_lea.vmem %s268_s14, 32  ;;  %p9608_p6 = scmp.lt.s32.totalorder %s268_s14, %s268_s14 }
  0xd3   :  { %p9604_p5 = scmp.ne.s32.totalorder %s268_s14, %s9603_s27  ;;  %p9609_p7 = scmp.lt.s32.totalorder %s9603_s27, %s9603_s27 }
  0xd5   :  { %p9610_p8 = por %p9609_p7, %p9608_p6 }
  0xd7   :  { %p9611_p9 = pnand %p9610_p8, %p9604_p5 }
  0xd9   :  { %9614 = shalt.err (!%p9611_p9)
}
  0xda   :  { %270 = dma.hbm_to_vmem [thread:$0]  %s10801_s22, 32, %s268_s14, [#allocation32]  }
  0xdb   :  { %s9959_s1 = smov [#allocation34]   ;;  %s9960_s11 = smov [#allocation2]  }
  0xdc   :  { %s289_s6 = sshll.u32 %s9959_s1, 4  ;;  %s56_s12 = sshll.u32 %s9960_s11, 4  ;;  %s290_s6 = int_to_ptr.vmem [resolvable:$true] %s289_s6  ;;  %s10246_s12 = int_to_ptr.vmem [resolvable:$true] %s56_s12 }
  0xdd   :  { %s9615_s18 = scalar_lea.hbm %s10803_s24, 16 }
  0xde   :  { %p9616_p10 = scmp.ne.s32.totalorder %s10803_s24, %s9615_s18  ;;  %p9619_p11 = scmp.lt.u32.totalorder %s9615_s18, %s10803_s24 }
  0xe0   :  { %p9621_p12 = pnand %p9619_p11, %p9616_p10 }
  0xe2   :  { %9624 = shalt.err (!%p9621_p12)
}
  0xe3   :  { %s9625_s22 = scalar_lea.vmem %s290_s6, 16  ;;  %s9629_s14 = scalar_lea.vmem %s290_s6, 32 }
  0xe4   :  { %p9626_p13 = scmp.ne.s32.totalorder %s290_s6, %s9625_s22  ;;  %p9630_p0 = scmp.lt.s32.totalorder %s290_s6, %s290_s6 }
  0xe5   :  { %p9631_p1 = scmp.lt.s32.totalorder %s9629_s14, %s9625_s22 }
  0xe7   :  { %p9632_p2 = por %p9631_p1, %p9630_p0 }
  0xe9   :  { %p9633_p3 = pnand %p9632_p2, %p9626_p13 }
  0xeb   :  { %9636 = shalt.err (!%p9633_p3)
}
  0xec   :  { %292 = dma.hbm_to_vmem [thread:$0]  %s10803_s24, 16, %s290_s6, [#allocation35]  }
  0xed   :  { %s10836_s3 = sld [smem:[#allocation55_spill]] }
  0xf3   :  { %s9637_s29 = scalar_lea.hbm %s10836_s3, 2048 }
  0xf4   :  { %p9638_p4 = scmp.ne.s32.totalorder %s10836_s3, %s9637_s29  ;;  %p9641_p5 = scmp.lt.u32.totalorder %s9637_s29, %s10836_s3 }
  0xf6   :  { %p9643_p6 = pnand %p9641_p5, %p9638_p4 }
  0xf8   :  { %9646 = shalt.err (!%p9643_p6)
}
  0xf9   :  { %s9647_s11 = scalar_lea.vmem %s10246_s12, 2048  ;;  %p9652_p8 = scmp.lt.s32.totalorder %s10246_s12, %s10246_s12 }
  0xfa   :  { %p9648_p7 = scmp.ne.s32.totalorder %s10246_s12, %s9647_s11  ;;  %p9653_p9 = scmp.lt.s32.totalorder %s9647_s11, %s9647_s11 }
  0xfc   :  { %p9654_p10 = por %p9653_p9, %p9652_p8 }
  0xfe   :  { %p9655_p11 = pnand %p9654_p10, %p9648_p7 }
 0x100   :  { %9658 = shalt.err (!%p9655_p11)
}
 0x101   :  { %s9961_s24 = smov 64   ;;  %s9962_s6 = smov 4  }
 0x102   :  { %62 = dma.hbm_to_vmem [thread:$0]  %s10836_s3, 2048, %s10246_s12, [#allocation3], %s9961_s24, %s9961_s24, %s9962_s6  }
 0x103   :  { %s9963_s18 = smov [#allocation6]   ;;  %s9964_s8 = smov [#allocation9]  }
 0x104   :  { %s78_s30 = sshll.u32 %s9963_s18, 4  ;;  %s100_s7 = sshll.u32 %s9964_s8, 4  ;;  %s79_s30 = int_to_ptr.vmem [resolvable:$true] %s78_s30  ;;  %s10280_s7 = int_to_ptr.vmem [resolvable:$true] %s100_s7 }
 0x105   :  { %s10837_s14 = sld [smem:[#allocation57_spill]] }
 0x10b   :  { %s9659_s5 = scalar_lea.hbm %s10837_s14, 1024 }
 0x10c   :  { %p9660_p12 = scmp.ne.s32.totalorder %s10837_s14, %s9659_s5  ;;  %p9663_p13 = scmp.lt.u32.totalorder %s9659_s5, %s10837_s14 }
 0x10e   :  { %p9665_p0 = pnand %p9663_p13, %p9660_p12 }
 0x110   :  { %9668 = shalt.err (!%p9665_p0)
}
 0x111   :  { %s9669_s12 = scalar_lea.vmem %s79_s30, 1024  ;;  %p9674_p2 = scmp.lt.s32.totalorder %s79_s30, %s79_s30 }
 0x112   :  { %p9670_p1 = scmp.ne.s32.totalorder %s79_s30, %s9669_s12  ;;  %p9675_p3 = scmp.lt.s32.totalorder %s9669_s12, %s9669_s12 }
 0x114   :  { %p9676_p4 = por %p9675_p3, %p9674_p2 }
 0x116   :  { %p9677_p5 = pnand %p9676_p4, %p9670_p1 }
 0x118   :  { %9680 = shalt.err (!%p9677_p5)
}
 0x119   :  { %84 = dma.hbm_to_vmem [thread:$0]  %s10837_s14, 1024, %s79_s30, [#allocation5], %s9961_s24, %s9961_s24, %s9962_s6  }
 0x11a   :  { %s10838_s1 = sld [smem:[#allocation59_spill]] }
 0x120   :  { %s9681_s11 = scalar_lea.hbm %s10838_s1, 6144 }
 0x121   :  { %p9682_p6 = scmp.ne.s32.totalorder %s10838_s1, %s9681_s11  ;;  %p9685_p7 = scmp.lt.u32.totalorder %s9681_s11, %s10838_s1 }
 0x123   :  { %p9687_p8 = pnand %p9685_p7, %p9682_p6 }
 0x125   :  { %9690 = shalt.err (!%p9687_p8)
}
 0x126   :  { %s9691_s0 = scalar_lea.vmem %s10280_s7, 6144  ;;  %p9696_p10 = scmp.lt.s32.totalorder %s10280_s7, %s10280_s7 }
 0x127   :  { %p9692_p9 = scmp.ne.s32.totalorder %s10280_s7, %s9691_s0  ;;  %p9697_p11 = scmp.lt.s32.totalorder %s9691_s0, %s9691_s0 }
 0x129   :  { %p9698_p12 = por %p9697_p11, %p9696_p10 }
 0x12b   :  { %p9699_p13 = pnand %p9698_p12, %p9692_p9 }
 0x12d   :  { %9702 = shalt.err (!%p9699_p13)
}
 0x12e   :  { %s9965_s30 = smov 192   ;;  %s9966_s22 = smov 12  }
 0x12f   :  { %106 = dma.hbm_to_vmem [thread:$0]  %s10838_s1, 6144, %s10280_s7, [#allocation8], %s9965_s30, %s9965_s30, %s9966_s22  }
 0x130   :  { %s9967_s28 = smov [#allocation12]   ;;  %s9968_s9 = smov [#allocation15]  }
 0x131   :  { %s122_s16 = sshll.u32 %s9967_s28, 4  ;;  %s144_s29 = sshll.u32 %s9968_s9, 4  ;;  %s123_s16 = int_to_ptr.vmem [resolvable:$true] %s122_s16  ;;  %s10317_s29 = int_to_ptr.vmem [resolvable:$true] %s144_s29 }
 0x132   :  { %s10839_s27 = sld [smem:[#allocation61_spill]] }
 0x138   :  { %s9703_s20 = scalar_lea.hbm %s10839_s27, 3072 }
 0x139   :  { %p9704_p0 = scmp.ne.s32.totalorder %s10839_s27, %s9703_s20  ;;  %p9707_p1 = scmp.lt.u32.totalorder %s9703_s20, %s10839_s27 }
 0x13b   :  { %p9709_p2 = pnand %p9707_p1, %p9704_p0 }
 0x13d   :  { %9712 = shalt.err (!%p9709_p2)
}
 0x13e   :  { %s9713_s7 = scalar_lea.vmem %s123_s16, 3072  ;;  %p9718_p4 = scmp.lt.s32.totalorder %s123_s16, %s123_s16 }
 0x13f   :  { %p9714_p3 = scmp.ne.s32.totalorder %s123_s16, %s9713_s7  ;;  %p9719_p5 = scmp.lt.s32.totalorder %s9713_s7, %s9713_s7 }
 0x141   :  { %p9720_p6 = por %p9719_p5, %p9718_p4 }
 0x143   :  { %p9721_p7 = pnand %p9720_p6, %p9714_p3 }
 0x145   :  { %9724 = shalt.err (!%p9721_p7)
}
 0x146   :  { %128 = dma.hbm_to_vmem [thread:$0]  %s10839_s27, 3072, %s123_s16, [#allocation11], %s9965_s30, %s9965_s30, %s9966_s22  }
 0x147   :  { %s10840_s14 = sld [smem:[#allocation63_spill]] }
 0x14d   :  { %s9725_s5 = scalar_lea.hbm %s10840_s14, 3072 }
 0x14e   :  { %p9726_p8 = scmp.ne.s32.totalorder %s10840_s14, %s9725_s5  ;;  %p9729_p9 = scmp.lt.u32.totalorder %s9725_s5, %s10840_s14 }
 0x150   :  { %p9731_p10 = pnand %p9729_p9, %p9726_p8 }
 0x152   :  { %9734 = shalt.err (!%p9731_p10)
}
 0x153   :  { %s9735_s20 = scalar_lea.vmem %s10317_s29, 3072  ;;  %p9740_p12 = scmp.lt.s32.totalorder %s10317_s29, %s10317_s29 }
 0x154   :  { %p9736_p11 = scmp.ne.s32.totalorder %s10317_s29, %s9735_s20  ;;  %p9741_p13 = scmp.lt.s32.totalorder %s9735_s20, %s9735_s20 }
 0x156   :  { %p9742_p0 = por %p9741_p13, %p9740_p12 }
 0x158   :  { %p9743_p1 = pnand %p9742_p0, %p9736_p11 }
 0x15a   :  { %9746 = shalt.err (!%p9743_p1)
}
 0x15b   :  { %150 = dma.hbm_to_vmem [thread:$0]  %s10840_s14, 3072, %s10317_s29, [#allocation14], %s9965_s30, %s9965_s30, %s9966_s22  }
 0x15c   :  { %s9969_s10 = smov [#allocation18]   ;;  %s9970_s4 = smov [#allocation21]  }
 0x15d   :  { %s166_s11 = sshll.u32 %s9969_s10, 4  ;;  %s188_s2 = sshll.u32 %s9970_s4, 4  ;;  %s167_s11 = int_to_ptr.vmem [resolvable:$true] %s166_s11  ;;  %s10354_s2 = int_to_ptr.vmem [resolvable:$true] %s188_s2 }
 0x15e   :  { %s9747_s18 = scalar_lea.hbm %s10792_s13, 3072 }
 0x15f   :  { %p9748_p2 = scmp.ne.s32.totalorder %s10792_s13, %s9747_s18  ;;  %p9751_p3 = scmp.lt.u32.totalorder %s9747_s18, %s10792_s13 }
 0x161   :  { %p9753_p4 = pnand %p9751_p3, %p9748_p2 }
 0x163   :  { %9756 = shalt.err (!%p9753_p4)
}
 0x164   :  { %s9757_s29 = scalar_lea.vmem %s167_s11, 3072  ;;  %p9762_p6 = scmp.lt.s32.totalorder %s167_s11, %s167_s11 }
 0x165   :  { %p9758_p5 = scmp.ne.s32.totalorder %s167_s11, %s9757_s29  ;;  %p9763_p7 = scmp.lt.s32.totalorder %s9757_s29, %s9757_s29 }
 0x167   :  { %p9764_p8 = por %p9763_p7, %p9762_p6 }
 0x169   :  { %p9765_p9 = pnand %p9764_p8, %p9758_p5 }
 0x16b   :  { %9768 = shalt.err (!%p9765_p9)
}
 0x16c   :  { %172 = dma.hbm_to_vmem [thread:$0]  %s10792_s13, 3072, %s167_s11, [#allocation17], %s9965_s30, %s9965_s30, %s9966_s22  }
 0x16d   :  { %s9769_s20 = scalar_lea.hbm %s10794_s15, 5120 }
 0x16e   :  { %p9770_p10 = scmp.ne.s32.totalorder %s10794_s15, %s9769_s20  ;;  %p9773_p11 = scmp.lt.u32.totalorder %s9769_s20, %s10794_s15 }
 0x170   :  { %p9775_p12 = pnand %p9773_p11, %p9770_p10 }
 0x172   :  { %9778 = shalt.err (!%p9775_p12)
}
 0x173   :  { %s9779_s7 = scalar_lea.vmem %s10354_s2, 5120  ;;  %p9784_p0 = scmp.lt.s32.totalorder %s10354_s2, %s10354_s2 }
 0x174   :  { %p9780_p13 = scmp.ne.s32.totalorder %s10354_s2, %s9779_s7  ;;  %p9785_p1 = scmp.lt.s32.totalorder %s9779_s7, %s9779_s7 }
 0x176   :  { %p9786_p2 = por %p9785_p1, %p9784_p0 }
 0x178   :  { %p9787_p3 = pnand %p9786_p2, %p9780_p13 }
 0x17a   :  { %9790 = shalt.err (!%p9787_p3)
}
 0x17b   :  { %s9971_s13 = smov 320   ;;  %s9972_s30 = smov 20  }
 0x17c   :  { %194 = dma.hbm_to_vmem [thread:$0]  %s10794_s15, 5120, %s10354_s2, [#allocation20], %s9971_s13, %s9971_s13, %s9972_s30  }
 0x17d   :  { %s9973_s1 = smov [#allocation24]   ;;  %s9974_s8 = smov [#allocation27]  }
 0x17e   :  { %s210_s18 = sshll.u32 %s9973_s1, 4  ;;  %s232_s0 = sshll.u32 %s9974_s8, 4  ;;  %s211_s18 = int_to_ptr.vmem [resolvable:$true] %s210_s18  ;;  %s10388_s0 = int_to_ptr.vmem [resolvable:$true] %s232_s0 }
 0x17f   :  { %s9791_s29 = scalar_lea.hbm %s10796_s17, 25600 }
 0x180   :  { %p9792_p4 = scmp.ne.s32.totalorder %s10796_s17, %s9791_s29  ;;  %p9795_p5 = scmp.lt.u32.totalorder %s9791_s29, %s10796_s17 }
 0x182   :  { %p9797_p6 = pnand %p9795_p5, %p9792_p4 }
 0x184   :  { %9800 = shalt.err (!%p9797_p6)
}
 0x185   :  { %s9801_s15 = scalar_lea.vmem %s211_s18, 25600  ;;  %p9806_p8 = scmp.lt.s32.totalorder %s211_s18, %s211_s18 }
 0x186   :  { %p9802_p7 = scmp.ne.s32.totalorder %s211_s18, %s9801_s15  ;;  %p9807_p9 = scmp.lt.s32.totalorder %s9801_s15, %s9801_s15 }
 0x188   :  { %p9808_p10 = por %p9807_p9, %p9806_p8 }
 0x18a   :  { %p9809_p11 = pnand %p9808_p10, %p9802_p7 }
 0x18c   :  { %9812 = shalt.err (!%p9809_p11)
}
 0x18d   :  { %216 = dma.hbm_to_vmem [thread:$0]  %s10796_s17, 25600, %s211_s18, [#allocation23], %s9971_s13, %s9971_s13, %s9972_s30  }
 0x18e   :  { %s9813_s10 = scalar_lea.hbm %s10798_s19, 35840 }
 0x18f   :  { %p9814_p12 = scmp.ne.s32.totalorder %s10798_s19, %s9813_s10  ;;  %p9817_p13 = scmp.lt.u32.totalorder %s9813_s10, %s10798_s19 }
 0x191   :  { %p9819_p0 = pnand %p9817_p13, %p9814_p12 }
 0x193   :  { %9822 = shalt.err (!%p9819_p0)
}
 0x194   :  { %s9823_s1 = scalar_lea.vmem %s10388_s0, 35840  ;;  %p9828_p2 = scmp.lt.s32.totalorder %s10388_s0, %s10388_s0 }
 0x195   :  { %p9824_p1 = scmp.ne.s32.totalorder %s10388_s0, %s9823_s1  ;;  %p9829_p3 = scmp.lt.s32.totalorder %s9823_s1, %s9823_s1 }
 0x197   :  { %p9830_p4 = por %p9829_p3, %p9828_p2 }
 0x199   :  { %p9831_p5 = pnand %p9830_p4, %p9824_p1 }
 0x19b   :  { %9834 = shalt.err (!%p9831_p5)
}
 0x19c   :  { %s9975_s17 = smov 448   ;;  %s9976_s13 = smov 28  }
 0x19d   :  { %238 = dma.hbm_to_vmem [thread:$0]  %s10798_s19, 35840, %s10388_s0, [#allocation26], %s9975_s17, %s9975_s17, %s9976_s13  }
 0x19e   :  { %s9977_s8 = smov [#allocation30]   ;;  %s9835_s14 = scalar_lea.hbm %s10800_s21, 6144 }
 0x19f   :  { %s254_s5 = sshll.u32 %s9977_s8, 4  ;;  %p9836_p6 = scmp.ne.s32.totalorder %s10800_s21, %s9835_s14  ;;  %s255_s5 = int_to_ptr.vmem [resolvable:$true] %s254_s5 }
 0x1a0   :  { %p9839_p7 = scmp.lt.u32.totalorder %s9835_s14, %s10800_s21 }
 0x1a2   :  { %p9841_p8 = pnand %p9839_p7, %p9836_p6 }
 0x1a4   :  { %9844 = shalt.err (!%p9841_p8)
}
 0x1a5   :  { %s9845_s2 = scalar_lea.vmem %s255_s5, 6144  ;;  %p9850_p10 = scmp.lt.s32.totalorder %s255_s5, %s255_s5 }
 0x1a6   :  { %p9846_p9 = scmp.ne.s32.totalorder %s255_s5, %s9845_s2  ;;  %p9851_p11 = scmp.lt.s32.totalorder %s9845_s2, %s9845_s2 }
 0x1a8   :  { %p9852_p12 = por %p9851_p11, %p9850_p10 }
 0x1aa   :  { %p9853_p13 = pnand %p9852_p12, %p9846_p9 }
 0x1ac   :  { %9856 = shalt.err (!%p9853_p13)
}
 0x1ad   :  { %s9978_s19 = smov 128   ;;  %s9979_s0 = smov 8  }
 0x1ae   :  { %260 = dma.hbm_to_vmem [thread:$0]  %s10800_s21, 6144, %s255_s5, [#allocation29], %s9978_s19, %s9978_s19, %s9979_s0  }
 0x1af   :  { %s9980_s27 = smov [#allocation33]   ;;  %s9981_s4 = smov [#allocation36]  }
 0x1b0   :  { %s276_s10 = sshll.u32 %s9980_s27, 4  ;;  %s298_s7 = sshll.u32 %s9981_s4, 4  ;;  %s277_s10 = int_to_ptr.vmem [resolvable:$true] %s276_s10  ;;  %s299_s7 = int_to_ptr.vmem [resolvable:$true] %s298_s7 }
 0x1b1   :  { %s9857_s1 = scalar_lea.hbm %s10802_s23, 2048 }
 0x1b2   :  { %p9858_p0 = scmp.ne.s32.totalorder %s10802_s23, %s9857_s1  ;;  %p9861_p1 = scmp.lt.u32.totalorder %s9857_s1, %s10802_s23 }
 0x1b4   :  { %p9863_p2 = pnand %p9861_p1, %p9858_p0 }
 0x1b6   :  { %9866 = shalt.err (!%p9863_p2)
}
 0x1b7   :  { %s9867_s21 = scalar_lea.vmem %s277_s10, 2048  ;;  %p9872_p4 = scmp.lt.s32.totalorder %s277_s10, %s277_s10 }
 0x1b8   :  { %p9868_p3 = scmp.ne.s32.totalorder %s277_s10, %s9867_s21  ;;  %p9873_p5 = scmp.lt.s32.totalorder %s9867_s21, %s9867_s21 }
 0x1ba   :  { %p9874_p6 = por %p9873_p5, %p9872_p4 }
 0x1bc   :  { %p9875_p7 = pnand %p9874_p6, %p9868_p3 }
 0x1be   :  { %9878 = shalt.err (!%p9875_p7)
}
 0x1bf   :  { %282 = dma.hbm_to_vmem [thread:$0]  %s10802_s23, 2048, %s277_s10, [#allocation32], %s9961_s24, %s9961_s24, %s9962_s6  }
 0x1c0   :  { %s9879_s14 = scalar_lea.hbm %s10804_s25, 1024 }
 0x1c1   :  { %p9880_p8 = scmp.ne.s32.totalorder %s10804_s25, %s9879_s14  ;;  %p9883_p9 = scmp.lt.u32.totalorder %s9879_s14, %s10804_s25 }
 0x1c3   :  { %p9885_p10 = pnand %p9883_p9, %p9880_p8 }
 0x1c5   :  { %9888 = shalt.err (!%p9885_p10)
}
 0x1c6   :  { %s9889_s2 = scalar_lea.vmem %s299_s7, 1024  ;;  %p9894_p12 = scmp.lt.s32.totalorder %s299_s7, %s299_s7 }
 0x1c7   :  { %p9890_p11 = scmp.ne.s32.totalorder %s299_s7, %s9889_s2  ;;  %p9895_p13 = scmp.lt.s32.totalorder %s9889_s2, %s9889_s2 }
 0x1c9   :  { %p9896_p0 = por %p9895_p13, %p9894_p12 }
 0x1cb   :  { %p9897_p1 = pnand %p9896_p0, %p9890_p11 }
 0x1cd   :  { %9900 = shalt.err (!%p9897_p1)
}
 0x1ce   :  { %304 = dma.hbm_to_vmem [thread:$0]  %s10804_s25, 1024, %s299_s7, [#allocation35], %s9961_s24, %s9961_s24, %s9962_s6  }
 0x1cf   :  { %s9982_s0 = smov [#allocation37]   ;;  %s9901_s10 = scalar_lea.hbm %s10805_s26, 16 }
 0x1d0   :  { %s311_s20 = sshll.u32 %s9982_s0, 4  ;;  %p9902_p2 = scmp.ne.s32.totalorder %s10805_s26, %s9901_s10  ;;  %s312_s20 = int_to_ptr.vmem [resolvable:$true] %s311_s20 }
 0x1d1   :  { %p9905_p3 = scmp.lt.u32.totalorder %s9901_s10, %s10805_s26 }
 0x1d3   :  { %p9907_p4 = pnand %p9905_p3, %p9902_p2 }
 0x1d5   :  { %9910 = shalt.err (!%p9907_p4)
}
 0x1d6   :  { %s9911_s17 = scalar_lea.vmem %s312_s20, 16  ;;  %s9915_s25 = scalar_lea.vmem %s312_s20, 32 }
 0x1d7   :  { %p9912_p5 = scmp.ne.s32.totalorder %s312_s20, %s9911_s17  ;;  %p9916_p6 = scmp.lt.s32.totalorder %s312_s20, %s312_s20 }
 0x1d8   :  { %p9917_p7 = scmp.lt.s32.totalorder %s9915_s25, %s9911_s17 }
 0x1da   :  { %p9918_p8 = por %p9917_p7, %p9916_p6 }
 0x1dc   :  { %p9919_p9 = pnand %p9918_p8, %p9912_p5 }
 0x1de   :  { %9922 = shalt.err (!%p9919_p9)
}
 0x1df   :  { %314 = dma.hbm_to_vmem [thread:$0]  %s10805_s26, 16, %s312_s20, [#allocation38]  }
 0x1e0   :  { %9923 = dma.done.wait [#allocation3], 2048  }
 0x1e1   :  { %9924 = vsyncadd [#allocation3], 4294965248 }
 0x1e2   :  { %9925 = dma.done.wait [#allocation5], 1040  }
 0x1e3   :  { %9926 = vsyncadd [#allocation5], 4294966256 }
 0x1e4   :  { %9927 = dma.done.wait [#allocation8], 6160  }
 0x1e5   :  { %9928 = vsyncadd [#allocation8], 4294961136 }
 0x1e6   :  { %9929 = dma.done.wait [#allocation11], 3120  }
 0x1e7   :  { %9930 = vsyncadd [#allocation11], 4294964176 }
 0x1e8   :  { %9931 = dma.done.wait [#allocation14], 3120  }
 0x1e9   :  { %9932 = vsyncadd [#allocation14], 4294964176 }
 0x1ea   :  { %9933 = dma.done.wait [#allocation17], 3120  }
 0x1eb   :  { %9934 = vsyncadd [#allocation17], 4294964176 }
 0x1ec   :  { %9935 = dma.done.wait [#allocation20], 5168  }
 0x1ed   :  { %9936 = vsyncadd [#allocation20], 4294962128 }
 0x1ee   :  { %9937 = dma.done.wait [#allocation23], 25680  }
 0x1ef   :  { %9938 = vsyncadd [#allocation23], 4294941616 }
 0x1f0   :  { %9939 = dma.done.wait [#allocation26], 35920  }
 0x1f1   :  { %9940 = vsyncadd [#allocation26], 4294931376 }
 0x1f2   :  { %9941 = dma.done.wait [#allocation29], 6256  }
 0x1f3   :  { %9942 = vsyncadd [#allocation29], 4294961040 }
 0x1f4   :  { %9943 = dma.done.wait [#allocation32], 2080  }
 0x1f5   :  { %9944 = vsyncadd [#allocation32], 4294965216 }
 0x1f6   :  { %9945 = dma.done.wait [#allocation35], 1040  }
 0x1f7   :  { %9946 = vsyncadd [#allocation35], 4294966256 }
 0x1f8   :  { %9947 = dma.done.wait [#allocation38], 16  }
 0x1f9   :  { %9948 = vsyncadd [#allocation38], 4294967280  ;;  %v9983_v0 = vmov 0.0   ;;  %v8317_v1 = vld [vmem:[#allocation2 + $0x40] sm:$0xff]   ;;  %v8319_v3 = vld [vmem:[#allocation2 + $0x48] sm:$0xff]   ;;  %s10841_s13 = sld [smem:[#allocation53_spill]] }
 0x1fa   :  { %8058 = vmatprep.subr.bf16.mxu1 %v9983_v0  ;;  %v8318_v2 = vld [vmem:[#allocation2] sm:$0xff]   ;;  %7832 = vmatprep.subr.bf16.mxu0 %v8317_v1  ;;  %v8320_v4 = vld [vmem:[#allocation2 + $0x8] sm:$0xff]   ;;  %v8321_v5 = vld [vmem:[#allocation2 + $0x50] sm:$0xff]   ;;  %vm9984_vm0 = vmmov 0   ;;  %s10842_s5 = sld [smem:[#allocation52_spill]]  ;;  %s10843_s14 = sld [smem:[#allocation54_spill]] }
 0x1fb   :  { %7833 = vmatpush3.bf16.msra.mxu0 %v8318_v2  ;;  %v8322_v6 = vld [vmem:[#allocation2 + $0x10] sm:$0xff]   ;;  %v8323_v7 = vld [vmem:[#allocation2 + $0x58] sm:$0xff]   ;;  %v8325_v9 = vld [vmem:[#allocation2 + $0x60] sm:$0xff]   ;;  %8074 = vmatprep.mubr.msk.bf16.mxu1 %vm9984_vm0, %v9983_v0  ;;  %s10844_s3 = sld [smem:[#allocation64_spill]] }
 0x1fc   :  { %7834 = vmatprep.subr.bf16.mxu0 %v8319_v3  ;;  %v8324_v8 = vld [vmem:[#allocation2 + $0x18] sm:$0xff]   ;;  %v8326_v10 = vld [vmem:[#allocation2 + $0x20] sm:$0xff]   ;;  %v8327_v11 = vld [vmem:[#allocation2 + $0x68] sm:$0xff]  }
 0x1fd   :  { %v8328_v13 = vld [vmem:[#allocation2 + $0x28] sm:$0xff]   ;;  %v8329_v16 = vld [vmem:[#allocation2 + $0x70] sm:$0xff]   ;;  %v8331_v19 = vld [vmem:[#allocation2 + $0x78] sm:$0xff]  }
 0x1fe   :  { %v8333_v15 = vld [vmem:[#allocation6] sm:$0xff]   ;;  %v8334_v17 = vld [vmem:[#allocation6 + $0x8] sm:$0xff]   ;;  %v8332_v20 = vld [vmem:[#allocation2 + $0x38] sm:$0xff]  }
 0x1ff   :  { %7835 = vmatpush3.bf16.msra.mxu0 %v8320_v4  ;;  %v390_v12 = vld [vmem:[%s10841_s13 + $0x8] sm:$0xff]  ;;  %8059 = vmatpush3.bf16.msra.mxu1 %v8333_v15  ;;  %v8330_v18 = vld [vmem:[#allocation2 + $0x30] sm:$0xff]   ;;  %v389_v21 = vld [vmem:[%s10841_s13] sm:$0xff] }
 0x200   :  { %7836 = vmatprep.subr.bf16.mxu0 %v8321_v5  ;;  %v395_v14 = vpack.c.bf16 %v390_v12, %v390_v12  ;;  %8060 = vmatprep.subr.bf16.mxu1 %v9983_v0  ;;  %v394_v22 = vpack.c.bf16 %v389_v21, %v389_v21  ;;  %v8335_v23 = vld [vmem:[#allocation6 + $0x10] sm:$0xff]   ;;  %v8336_v24 = vld [vmem:[#allocation6 + $0x18] sm:$0xff]   ;;  %v8337_v25 = vld [vmem:[#allocation6 + $0x20] sm:$0xff]  }
 0x201   :  { %v8338_v26 = vld [vmem:[#allocation6 + $0x28] sm:$0xff]   ;;  %v8339_v27 = vld [vmem:[#allocation6 + $0x30] sm:$0xff]   ;;  %v8340_v28 = vld [vmem:[#allocation6 + $0x38] sm:$0xff]  }
 0x202   :  { %563 = vmatprep.mubr.bf16.mxu0 %v395_v14  ;;  %v8341_v29 = vld [vmem:[#allocation9] ss:$12 sps:$4 sm:$0xff]   ;;  %v8343_v30 = vld [vmem:[#allocation9 + $0x4] ss:$12 sps:$4 sm:$0xff]   ;;  %v8346_v31 = vld [vmem:[#allocation9 + $0x1c] ss:$12 sps:$4 sm:$0xff]  }
 0x203   :  { %7837 = vmatpush3.bf16.msra.mxu0 %v8322_v6  ;;  %8061 = vmatpush3.bf16.msra.mxu1 %v8334_v17  ;;  %v8344_v32 = vld [vmem:[#allocation9 + $0x18] ss:$12 sps:$4 sm:$0xff]   ;;  %v8349_v33 = vld [vmem:[#allocation9 + $0x34] ss:$12 sps:$4 sm:$0xff]   ;;  %v8347_v34 = vld [vmem:[#allocation9 + $0x30] ss:$12 sps:$4 sm:$0xff]  }
 0x204   :  { %7838 = vmatprep.subr.bf16.mxu0 %v8323_v7  ;;  %8062 = vmatprep.subr.bf16.mxu1 %v9983_v0  ;;  %v8352_v35 = vld [vmem:[#allocation9 + $0x4c] ss:$12 sps:$4 sm:$0xff]   ;;  %v8350_v36 = vld [vmem:[#allocation9 + $0x48] ss:$12 sps:$4 sm:$0xff]   ;;  %v8355_v37 = vld [vmem:[#allocation9 + $0x64] ss:$12 sps:$4 sm:$0xff]  }
 0x205   :  { %v8386_v38 = vld [vmem:[#allocation9 + $0xc8] ss:$12 sps:$4 sm:$0xff]   ;;  %v8353_v39 = vld [vmem:[#allocation9 + $0x60] ss:$12 sps:$4 sm:$0xff]   ;;  %v8356_v41 = vld [vmem:[#allocation9 + $0x78] ss:$12 sps:$4 sm:$0xff]  }
 0x206   :  { %v8358_v40 = vld [vmem:[#allocation9 + $0x7c] ss:$12 sps:$4 sm:$0xff]   ;;  %v8361_v42 = vld [vmem:[#allocation9 + $0x94] ss:$12 sps:$4 sm:$0xff]   ;;  %v8364_v44 = vld [vmem:[#allocation9 + $0xac] ss:$12 sps:$4 sm:$0xff]  }
 0x207   :  { %7839 = vmatpush3.bf16.msra.mxu0 %v8324_v8  ;;  %8063 = vmatpush3.bf16.msra.mxu1 %v8335_v23  ;;  %v8359_v43 = vld [vmem:[#allocation9 + $0x90] ss:$12 sps:$4 sm:$0xff]   ;;  %v8362_v45 = vld [vmem:[#allocation9 + $0xa8] ss:$12 sps:$4 sm:$0xff]   ;;  %v8365_v47 = vld [vmem:[#allocation9 + $0xc0] ss:$12 sps:$4 sm:$0xff]  }
 0x208   :  { %7840 = vmatprep.subr.bf16.mxu0 %v8325_v9  ;;  %8064 = vmatprep.subr.bf16.mxu1 %v9983_v0  ;;  %v8367_v46 = vld [vmem:[#allocation9 + $0xc4] ss:$12 sps:$4 sm:$0xff]   ;;  %v8370_v48 = vld [vmem:[#allocation9 + $0xdc] ss:$12 sps:$4 sm:$0xff]   ;;  %v8373_v50 = vld [vmem:[#allocation9 + $0xf4] ss:$12 sps:$4 sm:$0xff]  }
 0x209   :  { %v8368_v49 = vld [vmem:[#allocation9 + $0xd8] ss:$12 sps:$4 sm:$0xff]   ;;  %v8371_v51 = vld [vmem:[#allocation9 + $0xf0] ss:$12 sps:$4 sm:$0xff]   ;;  %v8374_v53 = vld [vmem:[#allocation9 + $0x108] ss:$12 sps:$4 sm:$0xff]  }
 0x20a   :  { %v8376_v52 = vld [vmem:[#allocation9 + $0x10c] ss:$12 sps:$4 sm:$0xff]   ;;  %v8379_v54 = vld [vmem:[#allocation9 + $0x124] ss:$12 sps:$4 sm:$0xff]   ;;  %v8382_v56 = vld [vmem:[#allocation9 + $0x13c] ss:$12 sps:$4 sm:$0xff]  }
 0x20b   :  { %7841 = vmatpush3.bf16.msra.mxu0 %v8326_v10  ;;  %8065 = vmatpush3.bf16.msra.mxu1 %v8336_v24  ;;  %v8377_v55 = vld [vmem:[#allocation9 + $0x120] ss:$12 sps:$4 sm:$0xff]   ;;  %v8380_v57 = vld [vmem:[#allocation9 + $0x138] ss:$12 sps:$4 sm:$0xff]   ;;  %v8383_v59 = vld [vmem:[#allocation9 + $0x150] ss:$12 sps:$4 sm:$0xff]  }
 0x20c   :  { %7842 = vmatprep.subr.bf16.mxu0 %v8327_v11  ;;  %8066 = vmatprep.subr.bf16.mxu1 %v9983_v0  ;;  %v8385_v58 = vld [vmem:[#allocation9 + $0x154] ss:$12 sps:$4 sm:$0xff]   ;;  %v7078_v60 = vld [vmem:[#allocation4] ss:$0 sm:$0xff]  ;;  %v8390_v10 = vld [vmem:[#allocation9 + $0x16c] ss:$12 sps:$4 sm:$0xff]  }
 0x20d   :  { %v8387_v7 = vld [vmem:[#allocation9 + $0x8] ss:$12 sps:$4 sm:$0xff]   ;;  %v8391_v12 = vld [vmem:[#allocation9 + $0xe0] ss:$12 sps:$4 sm:$0xff]   ;;  %v8396_v15 = vld [vmem:[#allocation9 + $0xf8] ss:$12 sps:$4 sm:$0xff]  }
 0x20e   :  { %v8388_v11 = vld [vmem:[#allocation9 + $0x168] ss:$12 sps:$4 sm:$0xff]   ;;  %v8401_v17 = vld [vmem:[#allocation9 + $0x110] ss:$12 sps:$4 sm:$0xff]   ;;  %v8411_v21 = vld [vmem:[#allocation9 + $0x140] ss:$12 sps:$4 sm:$0xff]  }
 0x20f   :  { %7843 = vmatpush3.bf16.msra.mxu0 %v8328_v13  ;;  %8067 = vmatpush3.bf16.msra.mxu1 %v8337_v25  ;;  %v8392_v13 = vld [vmem:[#allocation9 + $0x20] ss:$12 sps:$4 sm:$0xff]   ;;  %v8395_v14 = vld [vmem:[#allocation12 + $0x4] ss:$12 sps:$4 sm:$0xff]   ;;  %v8416_v23 = vld [vmem:[#allocation9 + $0x158] ss:$12 sps:$4 sm:$0xff]  }
 0x210   :  { %7844 = vmatprep.subr.bf16.mxu0 %v8329_v16  ;;  %8068 = vmatprep.subr.bf16.mxu1 %v9983_v0  ;;  %v8397_v16 = vld [vmem:[#allocation9 + $0x38] ss:$12 sps:$4 sm:$0xff]   ;;  %v8421_v25 = vld [vmem:[#allocation9 + $0x170] ss:$12 sps:$4 sm:$0xff]  }
 0x211   :  { %v8417_v24 = vld [vmem:[#allocation9 + $0x98] ss:$12 sps:$4 sm:$0xff]  }
 0x213   :  { %7845 = vmatpush3.bf16.msra.mxu0 %v8330_v18  ;;  %8069 = vmatpush3.bf16.msra.mxu1 %v8338_v26  ;;  %v8402_v18 = vld [vmem:[#allocation9 + $0x50] ss:$12 sps:$4 sm:$0xff]  }
 0x214   :  { %7846 = vmatprep.subr.bf16.mxu0 %v8331_v19  ;;  %8070 = vmatprep.subr.bf16.mxu1 %v9983_v0  ;;  %v8406_v19 = vld [vmem:[#allocation9 + $0x128] ss:$12 sps:$4 sm:$0xff]   ;;  %v8422_v26 = vld [vmem:[#allocation9 + $0xb0] ss:$12 sps:$4 sm:$0xff]  }
 0x217   :  { %7847 = vmatpush3.bf16.msra.mxu0 %v8332_v20  ;;  %8071 = vmatpush3.bf16.msra.mxu1 %v8339_v27  ;;  %v8407_v20 = vld [vmem:[#allocation9 + $0x68] ss:$12 sps:$4 sm:$0xff]   ;;  %v7096_v27 = vld [vmem:[#allocation7] ss:$0 sm:$0xff] }
 0x218   :  { %8072 = vmatprep.subr.bf16.mxu1 %v9983_v0  ;;  %1026 = vmatprep.subr.bf16.mxu0 %v8343_v30 }
 0x21a   :  { %564 = vmatmul.mubr.bf16.vlgmr.msra.gmra.mrb[0].mxu0 %v394_v22  ;;  %v8412_v22 = vld [vmem:[#allocation9 + $0x80] ss:$12 sps:$4 sm:$0xff]  }
 0x21b   :  { %8073 = vmatpush3.bf16.msra.mxu1 %v8340_v28  ;;  %1027 = vmatpush1.bf16.msra.mxu0 %v8341_v29  ;;  %v388_v28 = vld [vmem:[%s10842_s5] sm:$0xff] }
 0x21c   :  { %1028 = vmatprep.subr.bf16.mxu0 %v8346_v31  ;;  %7863 = vmatprep.subr.bf16.mxu1 %v8386_v38  ;;  %v8400_v38 = vld [vmem:[#allocation12 + $0x1c] ss:$12 sps:$4 sm:$0xff]  }
 0x21f   :  { %1029 = vmatpush1.bf16.msra.mxu0 %v8344_v32 }
 0x220   :  { %1030 = vmatprep.subr.bf16.mxu0 %v8349_v33  ;;  %v10495_v33 = vpack.c.bf16 %v388_v28, %v388_v28 }
 0x223   :  { %1031 = vmatpush1.bf16.msra.mxu0 %v8347_v34 }
 0x224   :  { %1032 = vmatprep.subr.bf16.mxu0 %v8352_v35 }
 0x227   :  { %1033 = vmatpush1.bf16.msra.mxu0 %v8350_v36  ;;  %v8393_v36 = vld [vmem:[#allocation12] ss:$12 sps:$4 sm:$0xff]  }
 0x228   :  { %1034 = vmatprep.subr.bf16.mxu0 %v8355_v37  ;;  %v8426_v37 = vld [vmem:[#allocation12 + $0x8] ss:$12 sps:$4 sm:$0xff]  }
 0x22b   :  { %1035 = vmatpush1.bf16.msra.mxu0 %v8353_v39  ;;  %v8398_v39 = vld [vmem:[#allocation12 + $0x18] ss:$12 sps:$4 sm:$0xff]  }
 0x22c   :  { %1036 = vmatprep.subr.bf16.mxu0 %v8358_v40  ;;  %v8430_v40 = vld [vmem:[#allocation12 + $0x20] ss:$12 sps:$4 sm:$0xff]  }
 0x22f   :  { %1037 = vmatpush1.bf16.msra.mxu0 %v8356_v41  ;;  %v8405_v41 = vld [vmem:[#allocation12 + $0x34] ss:$12 sps:$4 sm:$0xff]  }
 0x230   :  { %1038 = vmatprep.subr.bf16.mxu0 %v8361_v42  ;;  %v9985_v42 = vmov 0  }
 0x233   :  { %1039 = vmatpush1.bf16.msra.mxu0 %v8359_v43  ;;  %v8403_v43 = vld [vmem:[#allocation12 + $0x30] ss:$12 sps:$4 sm:$0xff]  }
 0x234   :  { %1040 = vmatprep.subr.bf16.mxu0 %v8364_v44  ;;  %v8431_v44 = vld [vmem:[#allocation12 + $0x38] ss:$12 sps:$4 sm:$0xff]  }
 0x237   :  { %1041 = vmatpush1.bf16.msra.mxu0 %v8362_v45  ;;  %v8410_v45 = vld [vmem:[#allocation12 + $0x4c] ss:$12 sps:$4 sm:$0xff]  }
 0x238   :  { %1042 = vmatprep.subr.bf16.mxu0 %v8367_v46  ;;  %v8408_v46 = vld [vmem:[#allocation12 + $0x48] ss:$12 sps:$4 sm:$0xff]  }
 0x23b   :  { %1043 = vmatpush1.bf16.msra.mxu0 %v8365_v47  ;;  %v8432_v47 = vld [vmem:[#allocation12 + $0x50] ss:$12 sps:$4 sm:$0xff]  }
 0x23c   :  { %1044 = vmatprep.subr.bf16.mxu0 %v8370_v48  ;;  %v8415_v48 = vld [vmem:[#allocation12 + $0x64] ss:$12 sps:$4 sm:$0xff]  }
 0x23f   :  { %1045 = vmatpush1.bf16.msra.mxu0 %v8368_v49  ;;  %v8413_v49 = vld [vmem:[#allocation12 + $0x60] ss:$12 sps:$4 sm:$0xff]  }
 0x240   :  { %1046 = vmatprep.subr.bf16.mxu0 %v8373_v50  ;;  %v8433_v50 = vld [vmem:[#allocation12 + $0x68] ss:$12 sps:$4 sm:$0xff]  }
 0x243   :  { %1047 = vmatpush1.bf16.msra.mxu0 %v8371_v51  ;;  %v8420_v51 = vld [vmem:[#allocation12 + $0x7c] ss:$12 sps:$4 sm:$0xff]  }
 0x244   :  { %1048 = vmatprep.subr.bf16.mxu0 %v8376_v52  ;;  %v8418_v52 = vld [vmem:[#allocation12 + $0x78] ss:$12 sps:$4 sm:$0xff]  }
 0x247   :  { %1049 = vmatpush1.bf16.msra.mxu0 %v8374_v53  ;;  %v8434_v53 = vld [vmem:[#allocation12 + $0x80] ss:$12 sps:$4 sm:$0xff]  }
 0x248   :  { %1050 = vmatprep.subr.bf16.mxu0 %v8379_v54  ;;  %v8425_v54 = vld [vmem:[#allocation12 + $0x94] ss:$12 sps:$4 sm:$0xff]  }
 0x24b   :  { %1051 = vmatpush1.bf16.msra.mxu0 %v8377_v55  ;;  %v8423_v55 = vld [vmem:[#allocation12 + $0x90] ss:$12 sps:$4 sm:$0xff]  }
 0x24c   :  { %1052 = vmatprep.subr.bf16.mxu0 %v8382_v56  ;;  %v8435_v56 = vld [vmem:[#allocation12 + $0x98] ss:$12 sps:$4 sm:$0xff]  }
 0x24f   :  { %1053 = vmatpush1.bf16.msra.mxu0 %v8380_v57  ;;  %v8429_v57 = vld [vmem:[#allocation12 + $0xac] ss:$12 sps:$4 sm:$0xff]  }
 0x250   :  { %1054 = vmatprep.subr.bf16.mxu0 %v8385_v58  ;;  %v8427_v58 = vld [vmem:[#allocation12 + $0xa8] ss:$12 sps:$4 sm:$0xff]  }
 0x253   :  { %1055 = vmatpush1.bf16.msra.mxu0 %v8383_v59  ;;  %v10513_v59 = vld [vmem:[%s10843_s14] sm:$0xff] }
 0x254   :  { %1056 = vmatprep.subr.bf16.mxu0 %v8390_v10  ;;  %v8452_v10 = vld [vmem:[#allocation15 + $0x50] ss:$12 sps:$4 sm:$0xff]  }
 0x257   :  { %1057 = vmatpush1.bf16.msra.mxu0 %v8388_v11  ;;  %v8455_v11 = vld [vmem:[#allocation15 + $0x64] ss:$12 sps:$4 sm:$0xff]  }
 0x258   :  { %1285 = vmatprep.subr.bf16.mxu0 %v8395_v14  ;;  %v8459_v14 = vld [vmem:[#allocation15 + $0x7c] ss:$12 sps:$4 sm:$0xff]  }
 0x2ed   :  { %v7848_v61 = vpop.f32.mrb[0].mxu0 }
 0x2ee   :  { %v7849_v62 = vpop.f32.mrb[1].mxu0 }
 0x2ef   :  { %v7850_v63 = vadd.f32 %v7849_v62, %v7848_v61  ;;  %v7851_v1 = vpop.f32.mrb[2].mxu0  ;;  %v1107_v61 = vpack.c.bf16 %v10513_v59, %v10513_v59  ;;  %v8439_v62 = vld [vmem:[#allocation15 + $0x4] ss:$12 sps:$4 sm:$0xff]  }
 0x2f0   :  { %v7852_v2 = vpop.f32.mrb[3].mxu0  ;;  %v8440_v1 = vld [vmem:[#allocation15 + $0x8] ss:$12 sps:$4 sm:$0xff]  }
 0x2f1   :  { %v566_v3 = vadd.f32 %v7850_v63, %v7078_v60  ;;  %v8436_v60 = vld [vmem:[#allocation12 + $0xb0] ss:$12 sps:$4 sm:$0xff]  }
 0x2f2   :  { %v8437_v63 = vld [vmem:[#allocation15] ss:$12 sps:$4 sm:$0xff]   ;;  %v8441_v2 = vld [vmem:[#allocation15 + $0x18] ss:$12 sps:$4 sm:$0xff]  }
 0x2f3   :  { %v572_v4 = vmul.f32 1.442695, %v566_v3  ;;  %vm571_vm1 = vcmp.gt.f32.partialorder %v566_v3, 0.0 }
 0x2f5   :  { %9333 = vpow2.f32 %v572_v4  ;;  %v8444_v4 = vld [vmem:[#allocation15 + $0x20] ss:$12 sps:$4 sm:$0xff]  }
 0x2ff   :  { %v9334_v5 = vpop.eup %9333 }
 0x300   :  { %v7095_v6 = vadd.f32 -1.0, %v9334_v5  ;;  %v8447_v5 = vld [vmem:[#allocation15 + $0x34] ss:$12 sps:$4 sm:$0xff]  }
 0x302   :  { %v575_v8 = vsel %vm571_vm1, %v566_v3, %v7095_v6  ;;  %v8443_v3 = vld [vmem:[#allocation15 + $0x1c] ss:$12 sps:$4 sm:$0xff]  }
 0x303   :  { %v576_v9 = vpack.c.bf16 %v575_v8, %v575_v8  ;;  %v8445_v6 = vld [vmem:[#allocation15 + $0x30] ss:$12 sps:$4 sm:$0xff]   ;;  %v8451_v8 = vld [vmem:[#allocation15 + $0x4c] ss:$12 sps:$4 sm:$0xff]  }
 0x305   :  { %8075 = vmatmul.mubr.bf16.vlgmr.msra.gmra.mrb[0].mxu1 %v576_v9  ;;  %v8449_v9 = vld [vmem:[#allocation15 + $0x48] ss:$12 sps:$4 sm:$0xff]  }
 0x306   :  { %7864 = vmatpush3.bf16.msra.mxu1 %v8387_v7  ;;  %v8448_v7 = vld [vmem:[#allocation15 + $0x38] ss:$12 sps:$4 sm:$0xff]  }
 0x307   :  { %7865 = vmatprep.subr.bf16.mxu1 %v8391_v12  ;;  %v8453_v12 = vld [vmem:[#allocation15 + $0x60] ss:$12 sps:$4 sm:$0xff]  }
 0x30a   :  { %7866 = vmatpush3.bf16.msra.mxu1 %v8392_v13  ;;  %v8456_v13 = vld [vmem:[#allocation15 + $0x68] ss:$12 sps:$4 sm:$0xff]  }
 0x30b   :  { %7867 = vmatprep.subr.bf16.mxu1 %v8396_v15  ;;  %v8457_v15 = vld [vmem:[#allocation15 + $0x78] ss:$12 sps:$4 sm:$0xff]  }
 0x30e   :  { %7868 = vmatpush3.bf16.msra.mxu1 %v8397_v16  ;;  %v8460_v16 = vld [vmem:[#allocation15 + $0x80] ss:$12 sps:$4 sm:$0xff]  }
 0x30f   :  { %7869 = vmatprep.subr.bf16.mxu1 %v8401_v17  ;;  %v8463_v17 = vld [vmem:[#allocation15 + $0x94] ss:$12 sps:$4 sm:$0xff]  }
 0x312   :  { %7870 = vmatpush3.bf16.msra.mxu1 %v8402_v18  ;;  %v8461_v18 = vld [vmem:[#allocation15 + $0x90] ss:$12 sps:$4 sm:$0xff]  }
 0x313   :  { %7871 = vmatprep.subr.bf16.mxu1 %v8406_v19  ;;  %v8464_v19 = vld [vmem:[#allocation15 + $0x98] ss:$12 sps:$4 sm:$0xff]  }
 0x316   :  { %7872 = vmatpush3.bf16.msra.mxu1 %v8407_v20  ;;  %v8467_v20 = vld [vmem:[#allocation15 + $0xac] ss:$12 sps:$4 sm:$0xff]  }
 0x317   :  { %7873 = vmatprep.subr.bf16.mxu1 %v8411_v21  ;;  %v8465_v21 = vld [vmem:[#allocation15 + $0xa8] ss:$12 sps:$4 sm:$0xff]  }
 0x31a   :  { %7874 = vmatpush3.bf16.msra.mxu1 %v8412_v22  ;;  %v8468_v22 = vld [vmem:[#allocation15 + $0xb0] ss:$12 sps:$4 sm:$0xff]  }
 0x31b   :  { %7875 = vmatprep.subr.bf16.mxu1 %v8416_v23  ;;  %v8471_v23 = vld [vmem:[#allocation18 + $0x4] ss:$12 sps:$4 sm:$0xff]  }
 0x31e   :  { %7876 = vmatpush3.bf16.msra.mxu1 %v8417_v24 }
 0x31f   :  { %7877 = vmatprep.subr.bf16.mxu1 %v8421_v25 }
 0x322   :  { %7878 = vmatpush3.bf16.msra.mxu1 %v8422_v26 }
 0x323   :  { %8078 = vmatprep.subr.bf16.mxu1 %v9983_v0 }
 0x3d8   :  { %v682_v29 = vpop.f32.mrb[0].mxu1 }
 0x3d9   :  { %v10493_v30 = vadd.f32 %v7096_v27, %v682_v29  ;;  %v8076_v31 = vpop.f32.mrb[1].mxu1  ;;  %v755_v29 = vlaneseq }
 0x3da   :  { %v685_v32 = vpop.f32.mrb[2].mxu1 }
 0x3db   :  { %v688_v34 = vpack.c.bf16 %v10493_v30, %v10493_v30  ;;  %v8077_v35 = vpop.f32.mrb[3].mxu1  ;;  %v10530_v31 = vshrl.u32 %v755_v29, 7  ;;  %v8484_v29 = vld [vmem:[#allocation18 + $0x78] ss:$12 sps:$4 sm:$0xff]  }
 0x3dc   :  { %v1140_v35 = vld [vmem:[#allocation13] sm:$0x7] }
 0x3dd   :  { %1058 = vmatprep.mubr.bf16.mxu0 %v688_v34  ;;  %1099 = vmatprep.mubr.bf16.mxu1 %v688_v34  ;;  %v10533_v32 = vsub.s32 0, %v10530_v31  ;;  %v753_v34 = vld [vmem:[#allocation10] sm:$0x7] }
 0x3de   :  { %1059 = vmatmul.mubr.bf16.vlgmr.msra.gmra.mrb[4].mxu0 %v10495_v33  ;;  %1100 = vmatmul.mubr.bf16.vlgmr.msra.gmra.mrb[4].mxu1 %v10495_v33 }
 0x3df   :  { %1286 = vmatpush1.bf16.msra.mxu0 %v8393_v36  ;;  %8079 = vmatpush3.bf16.msra.mxu1 %v8426_v37  ;;  %v10536_v36 = vsub.s32 1, %v10530_v31  ;;  %v758_v37 = vrot.slane %v753_v34, %v10533_v32 }
 0x3e0   :  { %1287 = vmatprep.subr.bf16.mxu0 %v8400_v38  ;;  %8080 = vmatprep.subr.bf16.mxu1 %v9983_v0  ;;  %v1145_v38 = vrot.slane %v1140_v35, %v10533_v32 }
 0x3e1   :  { %1317 = vmatprep.mubr.bf16.mxu0 %v9985_v42  ;;  %8094 = vmatprep.mubr.msk.bf16.mxu1 %vm9984_vm0, %v9983_v0 }
 0x3e3   :  { %1288 = vmatpush1.bf16.msra.mxu0 %v8398_v39  ;;  %8081 = vmatpush3.bf16.msra.mxu1 %v8430_v40  ;;  %v762_v39 = vrot.slane %v753_v34, %v10536_v36  ;;  %v1149_v40 = vrot.slane %v1140_v35, %v10536_v36 }
 0x3e4   :  { %1289 = vmatprep.subr.bf16.mxu0 %v8405_v41  ;;  %8082 = vmatprep.subr.bf16.mxu1 %v9983_v0  ;;  %v8218_v41 = vadd.f32 %v1145_v38, %v758_v37  ;;  %v8487_v37 = vld [vmem:[#allocation18 + $0x90] ss:$12 sps:$4 sm:$0xff]   ;;  %v8499_v38 = vld [vmem:[#allocation18 + $0x98] ss:$12 sps:$4 sm:$0xff]  }
 0x3e7   :  { %1290 = vmatpush1.bf16.msra.mxu0 %v8403_v43  ;;  %8083 = vmatpush3.bf16.msra.mxu1 %v8431_v44  ;;  %v8220_v43 = vadd.f32 %v1149_v40, %v762_v39  ;;  %v8493_v39 = vld [vmem:[#allocation18 + $0xac] ss:$12 sps:$4 sm:$0xff]   ;;  %v8491_v40 = vld [vmem:[#allocation18 + $0xa8] ss:$12 sps:$4 sm:$0xff]  }
 0x3e8   :  { %1291 = vmatprep.subr.bf16.mxu0 %v8410_v45  ;;  %8084 = vmatprep.subr.bf16.mxu1 %v9983_v0 }
 0x3eb   :  { %1292 = vmatpush1.bf16.msra.mxu0 %v8408_v46  ;;  %8085 = vmatpush3.bf16.msra.mxu1 %v8432_v47 }
 0x3ec   :  { %1293 = vmatprep.subr.bf16.mxu0 %v8415_v48  ;;  %8086 = vmatprep.subr.bf16.mxu1 %v9983_v0 }
 0x3ef   :  { %1294 = vmatpush1.bf16.msra.mxu0 %v8413_v49  ;;  %8087 = vmatpush3.bf16.msra.mxu1 %v8433_v50 }
 0x3f0   :  { %1295 = vmatprep.subr.bf16.mxu0 %v8420_v51  ;;  %8088 = vmatprep.subr.bf16.mxu1 %v9983_v0 }
 0x3f3   :  { %1296 = vmatpush1.bf16.msra.mxu0 %v8418_v52  ;;  %8089 = vmatpush3.bf16.msra.mxu1 %v8434_v53 }
 0x3f4   :  { %1297 = vmatprep.subr.bf16.mxu0 %v8425_v54  ;;  %8090 = vmatprep.subr.bf16.mxu1 %v9983_v0 }
 0x3f7   :  { %1298 = vmatpush1.bf16.msra.mxu0 %v8423_v55  ;;  %8091 = vmatpush3.bf16.msra.mxu1 %v8435_v56 }
 0x3f8   :  { %1299 = vmatprep.subr.bf16.mxu0 %v8429_v57  ;;  %8092 = vmatprep.subr.bf16.mxu1 %v9983_v0 }
 0x3fb   :  { %1300 = vmatpush1.bf16.msra.mxu0 %v8427_v58  ;;  %8093 = vmatpush3.bf16.msra.mxu1 %v8436_v60 }
 0x3fc   :  { %8098 = vmatprep.subr.bf16.mxu0 %v9983_v0  ;;  %1563 = vmatprep.subr.bf16.mxu1 %v8439_v62 }
 0x3fe   :  { %1318 = vmatmul.mubr.bf16.vlgmr.msra.gmra.mrb[4].mxu0 %v1107_v61  ;;  %8095 = vmatmul.mubr.bf16.vlgmr.msra.gmra.mrb[8].mxu1 %v1107_v61  ;;  %v10543_v61 = vsub.s32 2, %v10530_v31 }
 0x3ff   :  { %1595 = vmatprep.mubr.bf16.mxu1 %v9985_v42  ;;  %8114 = vmatprep.mubr.msk.bf16.mxu0 %vm9984_vm0, %v9983_v0 }
 0x400   :  { %1564 = vmatpush1.bf16.msra.mxu1 %v8437_v63  ;;  %8099 = vmatpush3.bf16.msra.mxu0 %v8440_v1  ;;  %v1153_v62 = vrot.slane %v1140_v35, %v10543_v61  ;;  %v766_v1 = vrot.slane %v753_v34, %v10543_v61  ;;  %v8498_v34 = vld [vmem:[#allocation18 + $0x80] ss:$12 sps:$4 sm:$0xff]  }
 0x401   :  { %8100 = vmatprep.subr.bf16.mxu0 %v9983_v0  ;;  %1565 = vmatprep.subr.bf16.mxu1 %v8443_v3  ;;  %v8489_v35 = vld [vmem:[#allocation18 + $0x94] ss:$12 sps:$4 sm:$0xff]  }
 0x404   :  { %1566 = vmatpush1.bf16.msra.mxu1 %v8441_v2  ;;  %8101 = vmatpush3.bf16.msra.mxu0 %v8444_v4 }
 0x405   :  { %8102 = vmatprep.subr.bf16.mxu0 %v9983_v0  ;;  %1567 = vmatprep.subr.bf16.mxu1 %v8447_v5 }
 0x408   :  { %1568 = vmatpush1.bf16.msra.mxu1 %v8445_v6  ;;  %8103 = vmatpush3.bf16.msra.mxu0 %v8448_v7 }
 0x409   :  { %8104 = vmatprep.subr.bf16.mxu0 %v9983_v0  ;;  %1569 = vmatprep.subr.bf16.mxu1 %v8451_v8 }
 0x40c   :  { %1570 = vmatpush1.bf16.msra.mxu1 %v8449_v9  ;;  %8105 = vmatpush3.bf16.msra.mxu0 %v8452_v10 }
 0x40d   :  { %8106 = vmatprep.subr.bf16.mxu0 %v9983_v0  ;;  %1571 = vmatprep.subr.bf16.mxu1 %v8455_v11 }
 0x410   :  { %1572 = vmatpush1.bf16.msra.mxu1 %v8453_v12  ;;  %8107 = vmatpush3.bf16.msra.mxu0 %v8456_v13 }
 0x411   :  { %1573 = vmatprep.subr.bf16.mxu1 %v8459_v14  ;;  %8108 = vmatprep.subr.bf16.mxu0 %v9983_v0  ;;  %v8469_v14 = vld [vmem:[#allocation18] ss:$12 sps:$4 sm:$0xff]  }
 0x414   :  { %1574 = vmatpush1.bf16.msra.mxu1 %v8457_v15  ;;  %8109 = vmatpush3.bf16.msra.mxu0 %v8460_v16  ;;  %v8490_v15 = vld [vmem:[#allocation18 + $0x8] ss:$12 sps:$4 sm:$0xff]  }
 0x415   :  { %1575 = vmatprep.subr.bf16.mxu1 %v8463_v17  ;;  %8110 = vmatprep.subr.bf16.mxu0 %v9983_v0  ;;  %v8474_v17 = vld [vmem:[#allocation18 + $0x1c] ss:$12 sps:$4 sm:$0xff]  }
 0x418   :  { %1576 = vmatpush1.bf16.msra.mxu1 %v8461_v18  ;;  %8111 = vmatpush3.bf16.msra.mxu0 %v8464_v19  ;;  %v8472_v18 = vld [vmem:[#allocation18 + $0x18] ss:$12 sps:$4 sm:$0xff]   ;;  %v8494_v19 = vld [vmem:[#allocation18 + $0x20] ss:$12 sps:$4 sm:$0xff]  }
 0x419   :  { %1577 = vmatprep.subr.bf16.mxu1 %v8467_v20  ;;  %8112 = vmatprep.subr.bf16.mxu0 %v9983_v0  ;;  %v8477_v20 = vld [vmem:[#allocation18 + $0x34] ss:$12 sps:$4 sm:$0xff]  }
 0x41c   :  { %1578 = vmatpush1.bf16.msra.mxu1 %v8465_v21  ;;  %8113 = vmatpush3.bf16.msra.mxu0 %v8468_v22  ;;  %v8495_v21 = vld [vmem:[#allocation18 + $0x38] ss:$12 sps:$4 sm:$0xff]  }
 0x41d   :  { %1822 = vmatprep.subr.bf16.mxu1 %v8471_v23  ;;  %8118 = vmatprep.subr.bf16.mxu0 %v9983_v0  ;;  %v8480_v22 = vld [vmem:[#allocation18 + $0x4c] ss:$12 sps:$4 sm:$0xff]   ;;  %v8478_v23 = vld [vmem:[#allocation18 + $0x48] ss:$12 sps:$4 sm:$0xff]  }
 0x4b1   :  { %v7879_v24 = vpop.f32.mrb[4].mxu1 }
 0x4b2   :  { %v7880_v25 = vpop.f32.mrb[5].mxu1 }
 0x4b3   :  { %v7881_v26 = vadd.f32 %v7880_v25, %v7879_v24  ;;  %v7882_v27 = vpop.f32.mrb[6].mxu1  ;;  %v8496_v24 = vld [vmem:[#allocation18 + $0x50] ss:$12 sps:$4 sm:$0xff]  }
 0x4b4   :  { %v7883_v28 = vpop.f32.mrb[7].mxu1  ;;  %v8483_v25 = vld [vmem:[#allocation18 + $0x64] ss:$12 sps:$4 sm:$0xff]   ;;  %v8497_v27 = vld [vmem:[#allocation18 + $0x68] ss:$12 sps:$4 sm:$0xff]  }
 0x4b5   :  { %v1102_v5 = vadd.f32 %v7881_v26, %v766_v1  ;;  %v8481_v26 = vld [vmem:[#allocation18 + $0x60] ss:$12 sps:$4 sm:$0xff]   ;;  %v8486_v28 = vld [vmem:[#allocation18 + $0x7c] ss:$12 sps:$4 sm:$0xff]   ;;  %v8525_v1 = vld [vmem:[#allocation21 + $0xa0] ss:$20 sps:$4 sm:$0xff]  }
 0x4d1   :  { %v1319_v44 = vpop.f32.mrb[4].mxu0  ;;  %v1360_v45 = vpop.f32.mrb[8].mxu1 }
 0x4d2   :  { %v8219_v46 = vadd.f32 %v8218_v41, %v1319_v44  ;;  %v1321_v47 = vpop.f32.mrb[5].mxu0  ;;  %v8096_v48 = vpop.f32.mrb[9].mxu1  ;;  %v1361_v3 = vadd.f32 %v1360_v45, %v1153_v62  ;;  %v10563_v41 = vld [vmem:[%s10843_s14 + $0x8] sm:$0xff] }
 0x4d3   :  { %v8221_v49 = vadd.f32 %v8220_v43, %v1321_v47  ;;  %v1323_v50 = vpop.f32.mrb[6].mxu0  ;;  %v1363_v51 = vpop.f32.mrb[10].mxu1  ;;  %v8500_v43 = vld [vmem:[#allocation18 + $0xb0] ss:$12 sps:$4 sm:$0xff]   ;;  %v1644_v44 = vpack.c.bf16 %v10563_v41, %v10563_v41  ;;  %v8504_v48 = vld [vmem:[#allocation21 + $0x8] ss:$20 sps:$4 sm:$0xff]  }
 0x4d4   :  { %v1367_v52 = vsub.f32 0.0, %v8219_v46  ;;  %v1324_v53 = vpop.f32.mrb[7].mxu0  ;;  %v8097_v54 = vpop.f32.mrb[11].mxu1  ;;  %v8503_v45 = vld [vmem:[#allocation21 + $0x4] ss:$20 sps:$4 sm:$0xff]  }
 0x4d5   :  { %v1373_v56 = vsub.f32 0.0, %v8221_v49  ;;  %v8501_v46 = vld [vmem:[#allocation21] ss:$20 sps:$4 sm:$0xff]   ;;  %v8507_v49 = vld [vmem:[#allocation21 + $0x28] ss:$20 sps:$4 sm:$0xff]  }
 0x4d6   :  { %v1368_v55 = vmul.f32 1.442695, %v1367_v52  ;;  %v8506_v47 = vld [vmem:[#allocation21 + $0xc] ss:$20 sps:$4 sm:$0xff]   ;;  %v8510_v51 = vld [vmem:[#allocation21 + $0x30] ss:$20 sps:$4 sm:$0xff]  }
 0x4d7   :  { %v1374_v57 = vmul.f32 1.442695, %v1373_v56  ;;  %v8509_v50 = vld [vmem:[#allocation21 + $0x2c] ss:$20 sps:$4 sm:$0xff]   ;;  %v8512_v52 = vld [vmem:[#allocation21 + $0x34] ss:$20 sps:$4 sm:$0xff]  }
 0x4d8   :  { %9335 = vpow2.f32 %v1368_v55  ;;  %v8515_v53 = vld [vmem:[#allocation21 + $0x54] ss:$20 sps:$4 sm:$0xff]   ;;  %v8513_v54 = vld [vmem:[#allocation21 + $0x50] ss:$20 sps:$4 sm:$0xff]   ;;  %v8516_v56 = vld [vmem:[#allocation21 + $0x58] ss:$20 sps:$4 sm:$0xff]  }
 0x4d9   :  { %9337 = vpow2.f32 %v1374_v57  ;;  %v8518_v55 = vld [vmem:[#allocation21 + $0x5c] ss:$20 sps:$4 sm:$0xff]   ;;  %v8522_v62 = vld [vmem:[#allocation21 + $0x80] ss:$20 sps:$4 sm:$0xff]  }
 0x4da   :  { %v8521_v57 = vld [vmem:[#allocation21 + $0x7c] ss:$20 sps:$4 sm:$0xff]  }
 0x4e2   :  { %v9336_v58 = vpop.eup %9335 }
 0x4e3   :  { %v1370_v60 = vadd.f32 1.0, %v9336_v58  ;;  %v9338_v63 = vpop.eup %9337  ;;  %v8519_v58 = vld [vmem:[#allocation21 + $0x78] ss:$20 sps:$4 sm:$0xff]  }
 0x4e4   :  { %v1376_v2 = vadd.f32 1.0, %v9338_v63  ;;  %v8527_v63 = vld [vmem:[#allocation21 + $0xa4] ss:$20 sps:$4 sm:$0xff]  }
 0x4e5   :  { %9339 = vrcp.f32 %v1370_v60  ;;  %v8524_v60 = vld [vmem:[#allocation21 + $0x84] ss:$20 sps:$4 sm:$0xff]  }
 0x4e6   :  { %9341 = vrcp.f32 %v1376_v2  ;;  %v8530_v2 = vld [vmem:[#allocation21 + $0xac] ss:$20 sps:$4 sm:$0xff]  }
 0x4ef   :  { %v9340_v4 = vpop.eup %9339 }
 0x4f0   :  { %v1378_v6 = vmul.f32 %v9340_v4, %v1361_v3  ;;  %v9342_v8 = vpop.eup %9341  ;;  %v8528_v3 = vld [vmem:[#allocation21 + $0xa8] ss:$20 sps:$4 sm:$0xff]   ;;  %v8533_v4 = vld [vmem:[#allocation21 + $0xcc] ss:$20 sps:$4 sm:$0xff]  }
 0x4f1   :  { %v1381_v9 = vsub.f32 1.0, %v9342_v8  ;;  %v1383_v12 = vmul.f32 %v9342_v8, %v10513_v59  ;;  %v8475_v59 = vld [vmem:[#allocation18 + $0x30] ss:$12 sps:$4 sm:$0xff]   ;;  %v8539_v8 = vld [vmem:[#allocation21 + $0xf4] ss:$20 sps:$4 sm:$0xff]  }
 0x4f2   :  { %v1379_v7 = vadd.f32 %v1378_v6, %v1102_v5  ;;  %v8531_v5 = vld [vmem:[#allocation21 + $0xc8] ss:$20 sps:$4 sm:$0xff]  }
 0x4f3   :  { %v8536_v6 = vld [vmem:[#allocation21 + $0xd4] ss:$20 sps:$4 sm:$0xff]  }
 0x4f4   :  { %9343 = vtanh.f32 %v1379_v7  ;;  %v8534_v7 = vld [vmem:[#allocation21 + $0xd0] ss:$20 sps:$4 sm:$0xff]  }
 0x4fe   :  { %v9344_v10 = vpop.eup %9343 }
 0x4ff   :  { %v1382_v11 = vmul.f32 %v9344_v10, %v1381_v9  ;;  %v8542_v9 = vld [vmem:[#allocation21 + $0xfc] ss:$20 sps:$4 sm:$0xff]  }
 0x500   :  { %v8537_v10 = vld [vmem:[#allocation21 + $0xf0] ss:$20 sps:$4 sm:$0xff]  }
 0x501   :  { %v1384_v13 = vadd.f32 %v1383_v12, %v1382_v11  ;;  %v8540_v11 = vld [vmem:[#allocation21 + $0xf8] ss:$20 sps:$4 sm:$0xff]   ;;  %v8545_v12 = vld [vmem:[#allocation21 + $0x11c] ss:$20 sps:$4 sm:$0xff]  }
 0x503   :  { %v1385_v16 = vpack.c.bf16 %v1384_v13, %v1384_v13  ;;  %7059 = vst [vmem:[%s10844_s3 + $0x20] sm:$0xff] %v1384_v13  ;;  %v8548_v13 = vld [vmem:[#allocation21 + $0x124] ss:$20 sps:$4 sm:$0xff]  }
 0x505   :  { %1596 = vmatmul.mubr.bf16.vlgmr.msra.gmra.mrb[12].mxu1 %v1385_v16  ;;  %8115 = vmatmul.mubr.bf16.vlgmr.msra.gmra.mrb[8].mxu0 %v1385_v16  ;;  %v8559_v16 = vld [vmem:[#allocation24 + $0x4] ss:$20 sps:$4 sm:$0xff]  }
 0x506   :  { %1823 = vmatpush1.bf16.msra.mxu1 %v8469_v14  ;;  %8119 = vmatpush3.bf16.msra.mxu0 %v8490_v15  ;;  %v8543_v14 = vld [vmem:[#allocation21 + $0x118] ss:$20 sps:$4 sm:$0xff]   ;;  %v8546_v15 = vld [vmem:[#allocation21 + $0x120] ss:$20 sps:$4 sm:$0xff]  }
 0x507   :  { %1824 = vmatprep.subr.bf16.mxu1 %v8474_v17  ;;  %8120 = vmatprep.subr.bf16.mxu0 %v9983_v0 }
 0x508   :  { %1854 = vmatprep.mubr.bf16.mxu1 %v9985_v42  ;;  %8134 = vmatprep.mubr.msk.bf16.mxu0 %vm9984_vm0, %v9983_v0 }
 0x50a   :  { %1825 = vmatpush1.bf16.msra.mxu1 %v8472_v18  ;;  %8121 = vmatpush3.bf16.msra.mxu0 %v8494_v19 }
 0x50b   :  { %1826 = vmatprep.subr.bf16.mxu1 %v8477_v20  ;;  %8122 = vmatprep.subr.bf16.mxu0 %v9983_v0 }
 0x50e   :  { %1827 = vmatpush1.bf16.msra.mxu1 %v8475_v59  ;;  %8123 = vmatpush3.bf16.msra.mxu0 %v8495_v21  ;;  %v1677_v59 = vld [vmem:[#allocation19] sm:$0x7]  ;;  %v1418_v21 = vld [vmem:[#allocation16] sm:$0x7] }
 0x50f   :  { %1828 = vmatprep.subr.bf16.mxu1 %v8480_v22  ;;  %8124 = vmatprep.subr.bf16.mxu0 %v9983_v0  ;;  %v1423_v22 = vrot.slane %v1418_v21, %v10533_v32 }
 0x512   :  { %1829 = vmatpush1.bf16.msra.mxu1 %v8478_v23  ;;  %8125 = vmatpush3.bf16.msra.mxu0 %v8496_v24  ;;  %v1682_v23 = vrot.slane %v1677_v59, %v10533_v32  ;;  %v1427_v24 = vrot.slane %v1418_v21, %v10536_v36 }
 0x513   :  { %1830 = vmatprep.subr.bf16.mxu1 %v8483_v25  ;;  %8126 = vmatprep.subr.bf16.mxu0 %v9983_v0  ;;  %v1686_v25 = vrot.slane %v1677_v59, %v10536_v36 }
 0x516   :  { %1831 = vmatpush1.bf16.msra.mxu1 %v8481_v26  ;;  %8127 = vmatpush3.bf16.msra.mxu0 %v8497_v27  ;;  %v8222_v26 = vadd.f32 %v1682_v23, %v1423_v22  ;;  %v8224_v27 = vadd.f32 %v1686_v25, %v1427_v24  ;;  %v8555_v22 = vld [vmem:[#allocation21 + $0x100] ss:$20 sps:$4 sm:$0xff]   ;;  %v8556_v25 = vld [vmem:[#allocation21 + $0x128] ss:$20 sps:$4 sm:$0xff]  }
 0x517   :  { %1832 = vmatprep.subr.bf16.mxu1 %v8486_v28  ;;  %8128 = vmatprep.subr.bf16.mxu0 %v9983_v0  ;;  %v8593_v23 = vld [vmem:[#allocation24 + $0xf0] ss:$20 sps:$4 sm:$0xff]  }
 0x518   :  { %v8601_v24 = vld [vmem:[#allocation24 + $0x11c] ss:$20 sps:$4 sm:$0xff]  }
 0x51a   :  { %1833 = vmatpush1.bf16.msra.mxu1 %v8484_v29  ;;  %8129 = vmatpush3.bf16.msra.mxu0 %v8498_v34 }
 0x51b   :  { %1834 = vmatprep.subr.bf16.mxu1 %v8489_v35  ;;  %8130 = vmatprep.subr.bf16.mxu0 %v9983_v0 }
 0x51e   :  { %1835 = vmatpush1.bf16.msra.mxu1 %v8487_v37  ;;  %8131 = vmatpush3.bf16.msra.mxu0 %v8499_v38 }
 0x51f   :  { %1836 = vmatprep.subr.bf16.mxu1 %v8493_v39  ;;  %8132 = vmatprep.subr.bf16.mxu0 %v9983_v0 }
 0x522   :  { %1837 = vmatpush1.bf16.msra.mxu1 %v8491_v40  ;;  %8133 = vmatpush3.bf16.msra.mxu0 %v8500_v43 }
 0x523   :  { %2206 = vmatprep.subr.bf16.mxu1 %v8503_v45  ;;  %2247 = vmatprep.subr.bf16.mxu0 %v8506_v47 }
 0x525   :  { %1855 = vmatmul.mubr.bf16.vlgmr.msra.gmra.mrb[12].mxu1 %v1644_v44  ;;  %8135 = vmatmul.mubr.bf16.vlgmr.msra.gmra.mrb[12].mxu0 %v1644_v44 }
 0x526   :  { %2238 = vmatprep.mubr.bf16.mxu1 %v9985_v42  ;;  %2279 = vmatprep.mubr.bf16.mxu0 %v9985_v42 }
 0x527   :  { %2207 = vmatpush1.bf16.msra.mxu1 %v8501_v46  ;;  %2248 = vmatpush1.bf16.msra.mxu0 %v8504_v48 }
 0x528   :  { %2208 = vmatprep.subr.bf16.mxu1 %v8509_v50  ;;  %2249 = vmatprep.subr.bf16.mxu0 %v8512_v52 }
 0x52b   :  { %2209 = vmatpush1.bf16.msra.mxu1 %v8507_v49  ;;  %2250 = vmatpush1.bf16.msra.mxu0 %v8510_v51  ;;  %v1690_v51 = vrot.slane %v1677_v59, %v10543_v61  ;;  %v8587_v59 = vld [vmem:[#allocation24 + $0xc8] ss:$20 sps:$4 sm:$0xff]  }
 0x52c   :  { %2210 = vmatprep.subr.bf16.mxu1 %v8515_v53  ;;  %2251 = vmatprep.subr.bf16.mxu0 %v8518_v55  ;;  %v1431_v53 = vrot.slane %v1418_v21, %v10543_v61  ;;  %v8595_v21 = vld [vmem:[#allocation24 + $0xf4] ss:$20 sps:$4 sm:$0xff]  }
 0x52f   :  { %2211 = vmatpush1.bf16.msra.mxu1 %v8513_v54  ;;  %2252 = vmatpush1.bf16.msra.mxu0 %v8516_v56 }
 0x530   :  { %2212 = vmatprep.subr.bf16.mxu1 %v8521_v57  ;;  %2253 = vmatprep.subr.bf16.mxu0 %v8524_v60 }
 0x533   :  { %2213 = vmatpush1.bf16.msra.mxu1 %v8519_v58  ;;  %2254 = vmatpush1.bf16.msra.mxu0 %v8522_v62 }
 0x534   :  { %2214 = vmatprep.subr.bf16.mxu1 %v8527_v63  ;;  %2255 = vmatprep.subr.bf16.mxu0 %v8530_v2 }
 0x537   :  { %2215 = vmatpush1.bf16.msra.mxu1 %v8525_v1  ;;  %2256 = vmatpush1.bf16.msra.mxu0 %v8528_v3 }
 0x538   :  { %2216 = vmatprep.subr.bf16.mxu1 %v8533_v4  ;;  %2257 = vmatprep.subr.bf16.mxu0 %v8536_v6 }
 0x53b   :  { %2217 = vmatpush1.bf16.msra.mxu1 %v8531_v5  ;;  %2258 = vmatpush1.bf16.msra.mxu0 %v8534_v7  ;;  %v8549_v5 = vld [vmem:[#allocation21 + $0x10] ss:$20 sps:$4 sm:$0xff]  }
 0x53c   :  { %2218 = vmatprep.subr.bf16.mxu1 %v8539_v8  ;;  %2259 = vmatprep.subr.bf16.mxu0 %v8542_v9  ;;  %v8557_v7 = vld [vmem:[#allocation24] ss:$20 sps:$4 sm:$0xff]  }
 0x53d   :  { %v8565_v8 = vld [vmem:[#allocation24 + $0x2c] ss:$20 sps:$4 sm:$0xff]   ;;  %v8550_v9 = vld [vmem:[#allocation21 + $0x38] ss:$20 sps:$4 sm:$0xff]  }
 0x53f   :  { %2219 = vmatpush1.bf16.msra.mxu1 %v8537_v10  ;;  %2260 = vmatpush1.bf16.msra.mxu0 %v8540_v11  ;;  %v8571_v10 = vld [vmem:[#allocation24 + $0x54] ss:$20 sps:$4 sm:$0xff]   ;;  %v8551_v11 = vld [vmem:[#allocation21 + $0x60] ss:$20 sps:$4 sm:$0xff]  }
 0x540   :  { %2220 = vmatprep.subr.bf16.mxu1 %v8545_v12  ;;  %2261 = vmatprep.subr.bf16.mxu0 %v8548_v13  ;;  %v8569_v12 = vld [vmem:[#allocation24 + $0x50] ss:$20 sps:$4 sm:$0xff]  }
 0x541   :  { %v8577_v13 = vld [vmem:[#allocation24 + $0x7c] ss:$20 sps:$4 sm:$0xff]  }
 0x543   :  { %2221 = vmatpush1.bf16.msra.mxu1 %v8543_v14  ;;  %2262 = vmatpush1.bf16.msra.mxu0 %v8546_v15  ;;  %v8552_v14 = vld [vmem:[#allocation21 + $0x88] ss:$20 sps:$4 sm:$0xff]  }
 0x544   :  { %8138 = vmatprep.subr.bf16.mxu1 %v9983_v0  ;;  %3665 = vmatprep.subr.bf16.mxu0 %v8559_v16  ;;  %v8575_v15 = vld [vmem:[#allocation24 + $0x78] ss:$20 sps:$4 sm:$0xff]  }
 0x545   :  { %v8583_v16 = vld [vmem:[#allocation24 + $0xa4] ss:$20 sps:$4 sm:$0xff]  }
 0x5d8   :  { %v1638_v17 = vpop.f32.mrb[8].mxu0 }
 0x5d9   :  { %v8116_v18 = vpop.f32.mrb[9].mxu0  ;;  %v1639_v57 = vadd.f32 %v1638_v17, %v1431_v53  ;;  %v8553_v17 = vld [vmem:[#allocation21 + $0xb0] ss:$20 sps:$4 sm:$0xff]  }
 0x5da   :  { %v1641_v19 = vpop.f32.mrb[10].mxu0  ;;  %v8581_v18 = vld [vmem:[#allocation24 + $0xa0] ss:$20 sps:$4 sm:$0xff]   ;;  %v8596_v53 = vld [vmem:[#allocation24 + $0xf8] ss:$20 sps:$4 sm:$0xff]  }
 0x5db   :  { %v8117_v20 = vpop.f32.mrb[11].mxu0  ;;  %v8589_v19 = vld [vmem:[#allocation24 + $0xcc] ss:$20 sps:$4 sm:$0xff]  }
 0x5dc   :  { %v8554_v20 = vld [vmem:[#allocation21 + $0xd8] ss:$20 sps:$4 sm:$0xff]  }
 0x5f8   :  { %v1856_v28 = vpop.f32.mrb[12].mxu1  ;;  %v1897_v29 = vpop.f32.mrb[12].mxu0 }
 0x5f9   :  { %v8223_v34 = vadd.f32 %v8222_v26, %v1856_v28  ;;  %v1858_v35 = vpop.f32.mrb[13].mxu1  ;;  %v8136_v37 = vpop.f32.mrb[13].mxu0  ;;  %v1898_v55 = vadd.f32 %v1897_v29, %v1690_v51  ;;  %v8562_v26 = vld [vmem:[#allocation24 + $0xc] ss:$20 sps:$4 sm:$0xff]   ;;  %v8607_v28 = vld [vmem:[#allocation24 + $0x144] ss:$20 sps:$4 sm:$0xff]  }
 0x5fa   :  { %v8225_v38 = vadd.f32 %v8224_v27, %v1858_v35  ;;  %v1860_v39 = vpop.f32.mrb[14].mxu1  ;;  %v1900_v40 = vpop.f32.mrb[14].mxu0  ;;  %v8599_v27 = vld [vmem:[#allocation24 + $0x118] ss:$20 sps:$4 sm:$0xff]   ;;  %v8560_v29 = vld [vmem:[#allocation24 + $0x8] ss:$20 sps:$4 sm:$0xff]  }
 0x5fb   :  { %v1904_v43 = vsub.f32 0.0, %v8223_v34  ;;  %v1861_v44 = vpop.f32.mrb[15].mxu1  ;;  %v8137_v45 = vpop.f32.mrb[15].mxu0  ;;  %v8568_v34 = vld [vmem:[#allocation24 + $0x34] ss:$20 sps:$4 sm:$0xff]  }
 0x5fc   :  { %v1910_v47 = vsub.f32 0.0, %v8225_v38  ;;  %v8605_v35 = vld [vmem:[#allocation24 + $0x140] ss:$20 sps:$4 sm:$0xff]   ;;  %v8566_v38 = vld [vmem:[#allocation24 + $0x30] ss:$20 sps:$4 sm:$0xff]  }
 0x5fd   :  { %v1905_v46 = vmul.f32 1.442695, %v1904_v43  ;;  %v8613_v37 = vld [vmem:[#allocation24 + $0x16c] ss:$20 sps:$4 sm:$0xff]   ;;  %v8574_v39 = vld [vmem:[#allocation24 + $0x5c] ss:$20 sps:$4 sm:$0xff]  }
 0x5fe   :  { %v1911_v48 = vmul.f32 1.442695, %v1910_v47  ;;  %v8611_v40 = vld [vmem:[#allocation24 + $0x168] ss:$20 sps:$4 sm:$0xff]   ;;  %v8572_v44 = vld [vmem:[#allocation24 + $0x58] ss:$20 sps:$4 sm:$0xff]  }
 0x5ff   :  { %9345 = vpow2.f32 %v1905_v46  ;;  %v8619_v43 = vld [vmem:[#allocation24 + $0x194] ss:$20 sps:$4 sm:$0xff]   ;;  %v8580_v45 = vld [vmem:[#allocation24 + $0x84] ss:$20 sps:$4 sm:$0xff]  }
 0x600   :  { %9347 = vpow2.f32 %v1911_v48  ;;  %v8617_v46 = vld [vmem:[#allocation24 + $0x190] ss:$20 sps:$4 sm:$0xff]   ;;  %v8578_v47 = vld [vmem:[#allocation24 + $0x80] ss:$20 sps:$4 sm:$0xff]  }
 0x601   :  { %v8586_v48 = vld [vmem:[#allocation24 + $0xac] ss:$20 sps:$4 sm:$0xff]   ;;  %v8590_v51 = vld [vmem:[#allocation24 + $0xd0] ss:$20 sps:$4 sm:$0xff]  }
 0x609   :  { %v9346_v49 = vpop.eup %9345 }
 0x60a   :  { %v1907_v50 = vadd.f32 1.0, %v9346_v49  ;;  %v9348_v52 = vpop.eup %9347  ;;  %v8584_v49 = vld [vmem:[#allocation24 + $0xa8] ss:$20 sps:$4 sm:$0xff]  }
 0x60b   :  { %v1913_v54 = vadd.f32 1.0, %v9348_v52  ;;  %v8598_v52 = vld [vmem:[#allocation24 + $0xfc] ss:$20 sps:$4 sm:$0xff]  }
 0x60c   :  { %9349 = vrcp.f32 %v1907_v50  ;;  %v8592_v50 = vld [vmem:[#allocation24 + $0xd4] ss:$20 sps:$4 sm:$0xff]  }
 0x60d   :  { %9351 = vrcp.f32 %v1913_v54  ;;  %v8604_v54 = vld [vmem:[#allocation24 + $0x124] ss:$20 sps:$4 sm:$0xff]  }
 0x616   :  { %v9350_v56 = vpop.eup %9349 }
 0x617   :  { %v1915_v58 = vmul.f32 %v9350_v56, %v1898_v55  ;;  %v9352_v62 = vpop.eup %9351  ;;  %v8602_v55 = vld [vmem:[#allocation24 + $0x120] ss:$20 sps:$4 sm:$0xff]  }
 0x618   :  { %v1918_v63 = vsub.f32 1.0, %v9352_v62  ;;  %v1920_v3 = vmul.f32 %v9352_v62, %v10563_v41  ;;  %v8563_v41 = vld [vmem:[#allocation24 + $0x28] ss:$20 sps:$4 sm:$0xff]   ;;  %v8610_v56 = vld [vmem:[#allocation24 + $0x14c] ss:$20 sps:$4 sm:$0xff]  }
 0x619   :  { %v1916_v60 = vadd.f32 %v1915_v58, %v1639_v57  ;;  %v8608_v57 = vld [vmem:[#allocation24 + $0x148] ss:$20 sps:$4 sm:$0xff]  }
 0x61a   :  { %v8616_v58 = vld [vmem:[#allocation24 + $0x174] ss:$20 sps:$4 sm:$0xff]   ;;  %v8622_v62 = vld [vmem:[#allocation24 + $0x19c] ss:$20 sps:$4 sm:$0xff]  }
 0x61b   :  { %9353 = vtanh.f32 %v1916_v60  ;;  %v8614_v60 = vld [vmem:[#allocation24 + $0x170] ss:$20 sps:$4 sm:$0xff]  }
 0x625   :  { %v9354_v1 = vpop.eup %9353 }
 0x626   :  { %v1919_v2 = vmul.f32 %v9354_v1, %v1918_v63  ;;  %v8620_v63 = vld [vmem:[#allocation24 + $0x198] ss:$20 sps:$4 sm:$0xff]   ;;  %v8625_v1 = vld [vmem:[#allocation24 + $0x1bc] ss:$20 sps:$4 sm:$0xff]  }
 0x628   :  { %v1921_v4 = vadd.f32 %v1920_v3, %v1919_v2  ;;  %v8628_v2 = vld [vmem:[#allocation24 + $0x1c4] ss:$20 sps:$4 sm:$0xff]  }
 0x629   :  { %v8623_v3 = vld [vmem:[#allocation24 + $0x1b8] ss:$20 sps:$4 sm:$0xff]  }
 0x62a   :  { %v10578_v6 = vpack.c.bf16 %v1921_v4, %v1921_v4  ;;  %7060 = vst [vmem:[%s10844_s3 + $0x28] sm:$0xff] %v1921_v4  ;;  %v8626_v4 = vld [vmem:[#allocation24 + $0x1c0] ss:$20 sps:$4 sm:$0xff]  }
 0x62c   :  { %2239 = vmatmul.mubr.bf16.vlgmr.msra.gmra.mrb[16].mxu1 %v10578_v6  ;;  %2280 = vmatmul.mubr.bf16.vlgmr.msra.gmra.mrb[16].mxu0 %v10578_v6 }
 0x62d   :  { %8139 = vmatpush3.bf16.msra.mxu1 %v8549_v5  ;;  %8154 = vmatprep.mubr.msk.bf16.mxu1 %vm9984_vm0, %v9983_v0  ;;  %v8631_v5 = vld [vmem:[#allocation24 + $0x1e4] ss:$20 sps:$4 sm:$0xff]  }
 0x62e   :  { %8140 = vmatprep.subr.bf16.mxu1 %v9983_v0  ;;  %3666 = vmatpush1.bf16.msra.mxu0 %v8557_v7  ;;  %v8629_v7 = vld [vmem:[#allocation24 + $0x1e0] ss:$20 sps:$4 sm:$0xff]  }
 0x62f   :  { %3667 = vmatprep.subr.bf16.mxu0 %v8565_v8  ;;  %v8632_v8 = vld [vmem:[#allocation24 + $0x1e8] ss:$20 sps:$4 sm:$0xff]  }
 0x631   :  { %8141 = vmatpush3.bf16.msra.mxu1 %v8550_v9  ;;  %v8637_v9 = vld [vmem:[#allocation24 + $0x20c] ss:$20 sps:$4 sm:$0xff]  }
 0x632   :  { %8142 = vmatprep.subr.bf16.mxu1 %v9983_v0  ;;  %3668 = vmatpush1.bf16.msra.mxu0 %v8563_v41  ;;  %v8640_v41 = vld [vmem:[#allocation24 + $0x214] ss:$20 sps:$4 sm:$0xff]  }
 0x633   :  { %3669 = vmatprep.subr.bf16.mxu0 %v8571_v10  ;;  %v8635_v10 = vld [vmem:[#allocation24 + $0x208] ss:$20 sps:$4 sm:$0xff]  }
 0x635   :  { %8143 = vmatpush3.bf16.msra.mxu1 %v8551_v11  ;;  %v8638_v11 = vld [vmem:[#allocation24 + $0x210] ss:$20 sps:$4 sm:$0xff]  }
 0x636   :  { %8144 = vmatprep.subr.bf16.mxu1 %v9983_v0  ;;  %3670 = vmatpush1.bf16.msra.mxu0 %v8569_v12  ;;  %v8643_v12 = vld [vmem:[#allocation24 + $0x234] ss:$20 sps:$4 sm:$0xff]  }
 0x637   :  { %3671 = vmatprep.subr.bf16.mxu0 %v8577_v13  ;;  %v8646_v13 = vld [vmem:[#allocation24 + $0x23c] ss:$20 sps:$4 sm:$0xff]  }
 0x639   :  { %8145 = vmatpush3.bf16.msra.mxu1 %v8552_v14  ;;  %v8641_v14 = vld [vmem:[#allocation24 + $0x230] ss:$20 sps:$4 sm:$0xff]  }
 0x63a   :  { %8146 = vmatprep.subr.bf16.mxu1 %v9983_v0  ;;  %3672 = vmatpush1.bf16.msra.mxu0 %v8575_v15  ;;  %v8644_v15 = vld [vmem:[#allocation24 + $0x238] ss:$20 sps:$4 sm:$0xff]  }
 0x63b   :  { %3673 = vmatprep.subr.bf16.mxu0 %v8583_v16  ;;  %v8649_v16 = vld [vmem:[#allocation24 + $0x25c] ss:$20 sps:$4 sm:$0xff]  }
 0x63d   :  { %8147 = vmatpush3.bf16.msra.mxu1 %v8553_v17  ;;  %v8652_v17 = vld [vmem:[#allocation24 + $0x264] ss:$20 sps:$4 sm:$0xff]  }
 0x63e   :  { %8148 = vmatprep.subr.bf16.mxu1 %v9983_v0  ;;  %3674 = vmatpush1.bf16.msra.mxu0 %v8581_v18  ;;  %v8647_v18 = vld [vmem:[#allocation24 + $0x258] ss:$20 sps:$4 sm:$0xff]  }
 0x63f   :  { %3675 = vmatprep.subr.bf16.mxu0 %v8589_v19  ;;  %v8650_v19 = vld [vmem:[#allocation24 + $0x260] ss:$20 sps:$4 sm:$0xff]  }
 0x641   :  { %8149 = vmatpush3.bf16.msra.mxu1 %v8554_v20  ;;  %v8655_v20 = vld [vmem:[#allocation24 + $0x284] ss:$20 sps:$4 sm:$0xff]  }
 0x642   :  { %8150 = vmatprep.subr.bf16.mxu1 %v9983_v0  ;;  %3676 = vmatpush1.bf16.msra.mxu0 %v8587_v59  ;;  %v8658_v59 = vld [vmem:[#allocation24 + $0x28c] ss:$20 sps:$4 sm:$0xff]  }
 0x643   :  { %3677 = vmatprep.subr.bf16.mxu0 %v8595_v21  ;;  %v10595_v21 = vld [vmem:[#allocation22] sm:$0x1f] }
 0x645   :  { %8151 = vmatpush3.bf16.msra.mxu1 %v8555_v22  ;;  %v10598_v22 = vsub.s32 3, %v10530_v31 }
 0x646   :  { %8152 = vmatprep.subr.bf16.mxu1 %v9983_v0  ;;  %3678 = vmatpush1.bf16.msra.mxu0 %v8593_v23  ;;  %v1976_v23 = vrot.slane %v10595_v21, %v10533_v32 }
 0x647   :  { %3679 = vmatprep.subr.bf16.mxu0 %v8601_v24  ;;  %v1980_v24 = vrot.slane %v10595_v21, %v10536_v36 }
 0x649   :  { %8153 = vmatpush3.bf16.msra.mxu1 %v8556_v25  ;;  %v1988_v25 = vrot.slane %v10595_v21, %v10598_v22 }
 0x64a   :  { %3788 = vmatprep.subr.bf16.mxu1 %v8562_v26  ;;  %3680 = vmatpush1.bf16.msra.mxu0 %v8599_v27 }
 0x64b   :  { %3681 = vmatprep.subr.bf16.mxu0 %v8607_v28 }
 0x64c   :  { %8155 = vmatmul.mubr.bf16.vlgmr.msra.gmra.mrb[20].mxu1 %v10578_v6  ;;  %v8634_v6 = vld [vmem:[#allocation24 + $0x1ec] ss:$20 sps:$4 sm:$0xff]  }
 0x64d   :  { %3789 = vmatpush1.bf16.msra.mxu1 %v8560_v29 }
 0x64e   :  { %3790 = vmatprep.subr.bf16.mxu1 %v8568_v34  ;;  %3682 = vmatpush1.bf16.msra.mxu0 %v8605_v35 }
 0x64f   :  { %3683 = vmatprep.subr.bf16.mxu0 %v8613_v37 }
 0x651   :  { %3791 = vmatpush1.bf16.msra.mxu1 %v8566_v38 }
 0x652   :  { %3792 = vmatprep.subr.bf16.mxu1 %v8574_v39  ;;  %3684 = vmatpush1.bf16.msra.mxu0 %v8611_v40 }
 0x653   :  { %3685 = vmatprep.subr.bf16.mxu0 %v8619_v43 }
 0x655   :  { %3793 = vmatpush1.bf16.msra.mxu1 %v8572_v44 }
 0x656   :  { %3794 = vmatprep.subr.bf16.mxu1 %v8580_v45  ;;  %3686 = vmatpush1.bf16.msra.mxu0 %v8617_v46 }
 0x657   :  { %3687 = vmatprep.subr.bf16.mxu0 %v8625_v1 }
 0x659   :  { %3795 = vmatpush1.bf16.msra.mxu1 %v8578_v47 }
 0x65a   :  { %3796 = vmatprep.subr.bf16.mxu1 %v8586_v48  ;;  %3688 = vmatpush1.bf16.msra.mxu0 %v8623_v3  ;;  %v8662_v3 = vld [vmem:[#allocation24 + $0x2b0] ss:$20 sps:$4 sm:$0xff]  }
 0x65b   :  { %3689 = vmatprep.subr.bf16.mxu0 %v8631_v5  ;;  %v8670_v5 = vld [vmem:[#allocation24 + $0x2dc] ss:$20 sps:$4 sm:$0xff]  }
 0x65d   :  { %3797 = vmatpush1.bf16.msra.mxu1 %v8584_v49 }
 0x65e   :  { %3798 = vmatprep.subr.bf16.mxu1 %v8592_v50  ;;  %3690 = vmatpush1.bf16.msra.mxu0 %v8629_v7  ;;  %v8668_v7 = vld [vmem:[#allocation24 + $0x2d8] ss:$20 sps:$4 sm:$0xff]  }
 0x65f   :  { %3691 = vmatprep.subr.bf16.mxu0 %v8637_v9  ;;  %v8676_v9 = vld [vmem:[#allocation24 + $0x304] ss:$20 sps:$4 sm:$0xff]  }
 0x661   :  { %3799 = vmatpush1.bf16.msra.mxu1 %v8590_v51 }
 0x662   :  { %3800 = vmatprep.subr.bf16.mxu1 %v8598_v52  ;;  %3692 = vmatpush1.bf16.msra.mxu0 %v8635_v10 }
 0x663   :  { %3693 = vmatprep.subr.bf16.mxu0 %v8643_v12  ;;  %v8674_v12 = vld [vmem:[#allocation24 + $0x300] ss:$20 sps:$4 sm:$0xff]  }
 0x665   :  { %3801 = vmatpush1.bf16.msra.mxu1 %v8596_v53 }
 0x666   :  { %3802 = vmatprep.subr.bf16.mxu1 %v8604_v54  ;;  %3694 = vmatpush1.bf16.msra.mxu0 %v8641_v14  ;;  %v8679_v14 = vld [vmem:[#allocation24 + $0x324] ss:$20 sps:$4 sm:$0xff]  }
 0x667   :  { %3695 = vmatprep.subr.bf16.mxu0 %v8649_v16 }
 0x669   :  { %3803 = vmatpush1.bf16.msra.mxu1 %v8602_v55 }
 0x66a   :  { %3804 = vmatprep.subr.bf16.mxu1 %v8610_v56  ;;  %3696 = vmatpush1.bf16.msra.mxu0 %v8647_v18  ;;  %v8653_v56 = vld [vmem:[#allocation24 + $0x280] ss:$20 sps:$4 sm:$0xff]   ;;  %v8680_v18 = vld [vmem:[#allocation24 + $0x328] ss:$20 sps:$4 sm:$0xff]  }
 0x66b   :  { %3706 = vmatprep.subr.bf16.mxu0 %v8655_v20  ;;  %v8688_v20 = vld [vmem:[#allocation24 + $0x354] ss:$20 sps:$4 sm:$0xff]  }
 0x66d   :  { %3805 = vmatpush1.bf16.msra.mxu1 %v8608_v57  ;;  %v8656_v57 = vld [vmem:[#allocation24 + $0x288] ss:$20 sps:$4 sm:$0xff]  }
 0x66e   :  { %3806 = vmatprep.subr.bf16.mxu1 %v8616_v58 }
 0x671   :  { %3807 = vmatpush1.bf16.msra.mxu1 %v8614_v60 }
 0x672   :  { %3808 = vmatprep.subr.bf16.mxu1 %v8622_v62  ;;  %v8661_v62 = vld [vmem:[#allocation24 + $0x2ac] ss:$20 sps:$4 sm:$0xff]  }
 0x675   :  { %3809 = vmatpush1.bf16.msra.mxu1 %v8620_v63  ;;  %v8664_v63 = vld [vmem:[#allocation24 + $0x2b4] ss:$20 sps:$4 sm:$0xff]  }
 0x676   :  { %3810 = vmatprep.subr.bf16.mxu1 %v8628_v2  ;;  %v8659_v2 = vld [vmem:[#allocation24 + $0x2a8] ss:$20 sps:$4 sm:$0xff]  }
 0x679   :  { %3811 = vmatpush1.bf16.msra.mxu1 %v8626_v4  ;;  %v8667_v4 = vld [vmem:[#allocation24 + $0x2d4] ss:$20 sps:$4 sm:$0xff]  }
 0x67a   :  { %3812 = vmatprep.subr.bf16.mxu1 %v8634_v6  ;;  %v8665_v6 = vld [vmem:[#allocation24 + $0x2d0] ss:$20 sps:$4 sm:$0xff]  }
 0x67d   :  { %3813 = vmatpush1.bf16.msra.mxu1 %v8632_v8  ;;  %v8673_v8 = vld [vmem:[#allocation24 + $0x2fc] ss:$20 sps:$4 sm:$0xff]  }
 0x67e   :  { %3814 = vmatprep.subr.bf16.mxu1 %v8640_v41 }
 0x681   :  { %3815 = vmatpush1.bf16.msra.mxu1 %v8638_v11  ;;  %v8671_v11 = vld [vmem:[#allocation24 + $0x2f8] ss:$20 sps:$4 sm:$0xff]  }
 0x682   :  { %3816 = vmatprep.subr.bf16.mxu1 %v8646_v13 }
 0x685   :  { %3817 = vmatpush1.bf16.msra.mxu1 %v8644_v15  ;;  %v8682_v15 = vld [vmem:[#allocation24 + $0x32c] ss:$20 sps:$4 sm:$0xff]  }
 0x686   :  { %3818 = vmatprep.subr.bf16.mxu1 %v8652_v17  ;;  %v8677_v17 = vld [vmem:[#allocation24 + $0x320] ss:$20 sps:$4 sm:$0xff]  }
 0x689   :  { %3819 = vmatpush1.bf16.msra.mxu1 %v8650_v19  ;;  %v8685_v19 = vld [vmem:[#allocation24 + $0x34c] ss:$20 sps:$4 sm:$0xff]  }
 0x68a   :  { %3829 = vmatprep.subr.bf16.mxu1 %v8658_v59  ;;  %v8683_v59 = vld [vmem:[#allocation24 + $0x348] ss:$20 sps:$4 sm:$0xff]  }
 0x6ff   :  { %v2240_v26 = vpop.f32.mrb[16].mxu1  ;;  %v10606_v27 = vpop.f32.mrb[16].mxu0 }
 0x700   :  { %v2241_v28 = vadd.f32 %v2240_v26, %v1976_v23  ;;  %v2242_v29 = vpop.f32.mrb[17].mxu1  ;;  %v2283_v34 = vpop.f32.mrb[17].mxu0  ;;  %v8686_v23 = vld [vmem:[#allocation24 + $0x350] ss:$20 sps:$4 sm:$0xff]  }
 0x701   :  { %v2243_v35 = vadd.f32 %v2242_v29, %v1980_v24  ;;  %v2284_v37 = vadd.f32 %v2283_v34, %v1988_v25  ;;  %v2244_v38 = vpop.f32.mrb[18].mxu1  ;;  %v2285_v39 = vpop.f32.mrb[18].mxu0  ;;  %v8691_v24 = vld [vmem:[#allocation24 + $0x374] ss:$20 sps:$4 sm:$0xff]   ;;  %v8694_v25 = vld [vmem:[#allocation24 + $0x37c] ss:$20 sps:$4 sm:$0xff]  }
 0x702   :  { %v2333_v40 = vmul.f32 1.442695, %v2241_v28  ;;  %v2245_v45 = vpop.f32.mrb[19].mxu1  ;;  %v2286_v46 = vpop.f32.mrb[19].mxu0  ;;  %vm2328_vm2 = vcmp.gt.f32.partialorder %v2241_v28, 0.0 }
 0x703   :  { %v2335_v43 = vmul.f32 1.442695, %v2243_v35  ;;  %v2339_v44 = vmul.f32 1.442695, %v2284_v37  ;;  %vm2329_vm3 = vcmp.gt.f32.partialorder %v2243_v35, 0.0  ;;  %vm2331_vm4 = vcmp.gt.f32.partialorder %v2284_v37, 0.0 }
 0x704   :  { %9355 = vpow2.f32 %v2333_v40  ;;  %v8689_v26 = vld [vmem:[#allocation24 + $0x370] ss:$20 sps:$4 sm:$0xff]   ;;  %v8706_v39 = vld [vmem:[#allocation24 + $0x3cc] ss:$20 sps:$4 sm:$0xff]   ;;  %v8712_v46 = vld [vmem:[#allocation24 + $0x3f4] ss:$20 sps:$4 sm:$0xff]  }
 0x705   :  { %9357 = vpow2.f32 %v2335_v43  ;;  %v8697_v29 = vld [vmem:[#allocation24 + $0x39c] ss:$20 sps:$4 sm:$0xff]   ;;  %v8700_v34 = vld [vmem:[#allocation24 + $0x3a4] ss:$20 sps:$4 sm:$0xff]   ;;  %v8701_v40 = vld [vmem:[#allocation24 + $0x3c0] ss:$20 sps:$4 sm:$0xff]  }
 0x706   :  { %9359 = vpow2.f32 %v2339_v44  ;;  %v8703_v38 = vld [vmem:[#allocation24 + $0x3c4] ss:$20 sps:$4 sm:$0xff]   ;;  %v8704_v43 = vld [vmem:[#allocation24 + $0x3c8] ss:$20 sps:$4 sm:$0xff]   ;;  %v1984_v44 = vrot.slane %v10595_v21, %v10543_v61  ;;  %v8709_v45 = vld [vmem:[#allocation24 + $0x3ec] ss:$20 sps:$4 sm:$0xff]  }
 0x70e   :  { %v9356_v47 = vpop.eup %9355 }
 0x70f   :  { %v7265_v48 = vadd.f32 -1.0, %v9356_v47  ;;  %v9358_v49 = vpop.eup %9357  ;;  %v8707_v47 = vld [vmem:[#allocation24 + $0x3e8] ss:$20 sps:$4 sm:$0xff]  }
 0x710   :  { %v9360_v50 = vpop.eup %9359  ;;  %v7266_v51 = vadd.f32 -1.0, %v9358_v49  ;;  %v2282_v49 = vadd.f32 %v10606_v27, %v1984_v44  ;;  %v8727_v27 = vld [vmem:[#allocation24 + $0x464] ss:$20 sps:$4 sm:$0xff]   ;;  %v8769_v44 = vld [vmem:[#allocation24 + $0x57c] ss:$20 sps:$4 sm:$0xff]  }
 0x711   :  { %v2348_v52 = vsel %vm2328_vm2, %v2241_v28, %v7265_v48  ;;  %v7268_v53 = vadd.f32 -1.0, %v9360_v50  ;;  %v8692_v28 = vld [vmem:[#allocation24 + $0x378] ss:$20 sps:$4 sm:$0xff]   ;;  %v8710_v48 = vld [vmem:[#allocation24 + $0x3f0] ss:$20 sps:$4 sm:$0xff]  }
 0x712   :  { %v2349_v54 = vsel %vm2329_vm3, %v2243_v35, %v7266_v51  ;;  %v10610_v60 = vpack.c.bf16 %v2348_v52, %v2348_v52  ;;  %v8695_v35 = vld [vmem:[#allocation24 + $0x398] ss:$20 sps:$4 sm:$0xff]   ;;  %v8715_v50 = vld [vmem:[#allocation24 + $0x414] ss:$20 sps:$4 sm:$0xff]   ;;  %v8718_v51 = vld [vmem:[#allocation24 + $0x41c] ss:$20 sps:$4 sm:$0xff]  }
 0x713   :  { %v10608_v55 = vpack.c.bf16 %v2349_v54, %v2349_v54  ;;  %v2351_v58 = vsel %vm2331_vm4, %v2284_v37, %v7268_v53  ;;  %v8698_v37 = vld [vmem:[#allocation24 + $0x3a0] ss:$20 sps:$4 sm:$0xff]   ;;  %v8713_v52 = vld [vmem:[#allocation24 + $0x410] ss:$20 sps:$4 sm:$0xff]   ;;  %v8716_v53 = vld [vmem:[#allocation24 + $0x418] ss:$20 sps:$4 sm:$0xff]  }
 0x714   :  { %v10616_v1 = vpack.c.bf16 %v2351_v58, %v2351_v58  ;;  %v2337_v54 = vmul.f32 1.442695, %v2282_v49  ;;  %v8719_v58 = vld [vmem:[#allocation24 + $0x438] ss:$20 sps:$4 sm:$0xff]   ;;  %vm2330_vm5 = vcmp.gt.f32.partialorder %v2282_v49, 0.0 }
 0x715   :  { %3697 = vmatprep.mubr.bf16.mxu0 %v10608_v55  ;;  %3820 = vmatprep.mubr.bf16.mxu1 %v10608_v55 }
 0x716   :  { %3698 = vmatmul.mubr.bf16.vlgmr.msra.gmra.mrb[20].mxu0 %v10610_v60  ;;  %3821 = vmatmul.mubr.bf16.vlgmr.msra.gmra.mrb[24].mxu1 %v10610_v60  ;;  %9361 = vpow2.f32 %v2337_v54  ;;  %v8782_v54 = vld [vmem:[#allocation24 + $0x5d0] ss:$20 sps:$4 sm:$0xff]  }
 0x717   :  { %3707 = vmatpush1.bf16.msra.mxu0 %v8653_v56  ;;  %3830 = vmatpush1.bf16.msra.mxu1 %v8656_v57  ;;  %v8721_v56 = vld [vmem:[#allocation24 + $0x43c] ss:$20 sps:$4 sm:$0xff]   ;;  %v8724_v57 = vld [vmem:[#allocation24 + $0x444] ss:$20 sps:$4 sm:$0xff]  }
 0x718   :  { %3738 = vmatprep.mubr.bf16.mxu0 %v10616_v1  ;;  %3861 = vmatprep.mubr.bf16.mxu1 %v10616_v1 }
 0x719   :  { %3708 = vmatprep.subr.bf16.mxu0 %v8661_v62  ;;  %3831 = vmatprep.subr.bf16.mxu1 %v8664_v63  ;;  %v8722_v62 = vld [vmem:[#allocation24 + $0x440] ss:$20 sps:$4 sm:$0xff]  }
 0x71a   :  { %v8730_v63 = vld [vmem:[#allocation24 + $0x46c] ss:$20 sps:$4 sm:$0xff]  }
 0x71b   :  { %3709 = vmatpush1.bf16.msra.mxu0 %v8659_v2  ;;  %3832 = vmatpush1.bf16.msra.mxu1 %v8662_v3  ;;  %v8725_v2 = vld [vmem:[#allocation24 + $0x460] ss:$20 sps:$4 sm:$0xff]   ;;  %v8728_v3 = vld [vmem:[#allocation24 + $0x468] ss:$20 sps:$4 sm:$0xff]  }
 0x71c   :  { %3710 = vmatprep.subr.bf16.mxu0 %v8667_v4  ;;  %3833 = vmatprep.subr.bf16.mxu1 %v8670_v5  ;;  %v8733_v4 = vld [vmem:[#allocation24 + $0x48c] ss:$20 sps:$4 sm:$0xff]   ;;  %v8736_v5 = vld [vmem:[#allocation24 + $0x494] ss:$20 sps:$4 sm:$0xff]  }
 0x71f   :  { %v10620_v41 = vpop.f32.mrb[20].mxu1  ;;  %3711 = vmatpush1.bf16.msra.mxu0 %v8665_v6  ;;  %3834 = vmatpush1.bf16.msra.mxu1 %v8668_v7  ;;  %v8731_v6 = vld [vmem:[#allocation24 + $0x488] ss:$20 sps:$4 sm:$0xff]   ;;  %v8734_v7 = vld [vmem:[#allocation24 + $0x490] ss:$20 sps:$4 sm:$0xff]  }
 0x720   :  { %v8156_v10 = vpop.f32.mrb[21].mxu1  ;;  %3712 = vmatprep.subr.bf16.mxu0 %v8673_v8  ;;  %3835 = vmatprep.subr.bf16.mxu1 %v8676_v9  ;;  %v8739_v8 = vld [vmem:[#allocation24 + $0x4b4] ss:$20 sps:$4 sm:$0xff]   ;;  %v8742_v9 = vld [vmem:[#allocation24 + $0x4bc] ss:$20 sps:$4 sm:$0xff]  }
 0x721   :  { %v2325_v13 = vpop.f32.mrb[22].mxu1  ;;  %v9362_v10 = vpop.eup %9361 }
 0x722   :  { %v8157_v16 = vpop.f32.mrb[23].mxu1  ;;  %v8745_v13 = vld [vmem:[#allocation24 + $0x4dc] ss:$20 sps:$4 sm:$0xff]  }
 0x723   :  { %3713 = vmatpush1.bf16.msra.mxu0 %v8671_v11  ;;  %3836 = vmatpush1.bf16.msra.mxu1 %v8674_v12  ;;  %v8737_v11 = vld [vmem:[#allocation24 + $0x4b0] ss:$20 sps:$4 sm:$0xff]   ;;  %v8740_v12 = vld [vmem:[#allocation24 + $0x4b8] ss:$20 sps:$4 sm:$0xff]  }
 0x724   :  { %3714 = vmatprep.subr.bf16.mxu0 %v8679_v14  ;;  %3837 = vmatprep.subr.bf16.mxu1 %v8682_v15  ;;  %v8748_v14 = vld [vmem:[#allocation24 + $0x4e4] ss:$20 sps:$4 sm:$0xff]   ;;  %v7267_v15 = vadd.f32 -1.0, %v9362_v10 }
 0x725   :  { %v8743_v16 = vld [vmem:[#allocation24 + $0x4d8] ss:$20 sps:$4 sm:$0xff]  }
 0x727   :  { %3715 = vmatpush1.bf16.msra.mxu0 %v8677_v17  ;;  %3838 = vmatpush1.bf16.msra.mxu1 %v8680_v18  ;;  %v8746_v17 = vld [vmem:[#allocation24 + $0x4e0] ss:$20 sps:$4 sm:$0xff]   ;;  %v10626_v18 = vsub.s32 4, %v10530_v31 }
 0x728   :  { %3716 = vmatprep.subr.bf16.mxu0 %v8685_v19  ;;  %3839 = vmatprep.subr.bf16.mxu1 %v8688_v20  ;;  %v8751_v19 = vld [vmem:[#allocation24 + $0x504] ss:$20 sps:$4 sm:$0xff]   ;;  %v8754_v20 = vld [vmem:[#allocation24 + $0x50c] ss:$20 sps:$4 sm:$0xff]  }
 0x72b   :  { %3717 = vmatpush1.bf16.msra.mxu0 %v8683_v59  ;;  %3840 = vmatpush1.bf16.msra.mxu1 %v8686_v23  ;;  %v2350_v59 = vsel %vm2330_vm5, %v2282_v49, %v7267_v15  ;;  %v8749_v23 = vld [vmem:[#allocation24 + $0x500] ss:$20 sps:$4 sm:$0xff]   ;;  %v8804_v15 = vld [vmem:[#allocation24 + $0x2b8] ss:$20 sps:$4 sm:$0xff]  }
 0x72c   :  { %3718 = vmatprep.subr.bf16.mxu0 %v8691_v24  ;;  %3841 = vmatprep.subr.bf16.mxu1 %v8694_v25  ;;  %v8752_v24 = vld [vmem:[#allocation24 + $0x508] ss:$20 sps:$4 sm:$0xff]   ;;  %v10628_v25 = vpack.c.bf16 %v2350_v59, %v2350_v59  ;;  %v8773_v49 = vld [vmem:[#allocation24 + $0x5a0] ss:$20 sps:$4 sm:$0xff]  }
 0x72d   :  { %v8809_v59 = vld [vmem:[#allocation24 + $0x1c8] ss:$20 sps:$4 sm:$0xff]  }
 0x72f   :  { %3719 = vmatpush1.bf16.msra.mxu0 %v8689_v26  ;;  %3842 = vmatpush1.bf16.msra.mxu1 %v8692_v28  ;;  %v1992_v26 = vrot.slane %v10595_v21, %v10626_v18  ;;  %v8757_v28 = vld [vmem:[#allocation24 + $0x52c] ss:$20 sps:$4 sm:$0xff]   ;;  %v8761_v21 = vld [vmem:[#allocation24 + $0x550] ss:$20 sps:$4 sm:$0xff]  }
 0x730   :  { %3720 = vmatprep.subr.bf16.mxu0 %v8697_v29  ;;  %3843 = vmatprep.subr.bf16.mxu1 %v8700_v34  ;;  %v8760_v29 = vld [vmem:[#allocation24 + $0x534] ss:$20 sps:$4 sm:$0xff]  }
 0x731   :  { %v8755_v34 = vld [vmem:[#allocation24 + $0x528] ss:$20 sps:$4 sm:$0xff]  }
 0x733   :  { %3721 = vmatpush1.bf16.msra.mxu0 %v8695_v35  ;;  %3844 = vmatpush1.bf16.msra.mxu1 %v8698_v37  ;;  %v8758_v35 = vld [vmem:[#allocation24 + $0x530] ss:$20 sps:$4 sm:$0xff]   ;;  %v2323_v37 = vadd.f32 %v10620_v41, %v1992_v26  ;;  %v8767_v41 = vld [vmem:[#allocation24 + $0x578] ss:$20 sps:$4 sm:$0xff]  }
 0x734   :  { %3722 = vmatprep.subr.bf16.mxu0 %v8703_v38  ;;  %3845 = vmatprep.subr.bf16.mxu1 %v8706_v39  ;;  %v8763_v38 = vld [vmem:[#allocation24 + $0x554] ss:$20 sps:$4 sm:$0xff]   ;;  %v8766_v39 = vld [vmem:[#allocation24 + $0x55c] ss:$20 sps:$4 sm:$0xff]  }
 0x735   :  { %vm2332_vm6 = vcmp.gt.f32.partialorder %v2323_v37, 0.0  ;;  %v8813_v26 = vld [vmem:[#allocation24 + $0x1f0] ss:$20 sps:$4 sm:$0xff]  }
 0x737   :  { %3723 = vmatpush1.bf16.msra.mxu0 %v8701_v40  ;;  %3846 = vmatpush1.bf16.msra.mxu1 %v8704_v43  ;;  %v8764_v40 = vld [vmem:[#allocation24 + $0x558] ss:$20 sps:$4 sm:$0xff]   ;;  %v2341_v43 = vmul.f32 1.442695, %v2323_v37 }
 0x738   :  { %3724 = vmatprep.subr.bf16.mxu0 %v8709_v45  ;;  %3847 = vmatprep.subr.bf16.mxu1 %v8712_v46  ;;  %v8772_v45 = vld [vmem:[#allocation24 + $0x584] ss:$20 sps:$4 sm:$0xff]   ;;  %v8770_v46 = vld [vmem:[#allocation24 + $0x580] ss:$20 sps:$4 sm:$0xff]  }
 0x739   :  { %9363 = vpow2.f32 %v2341_v43  ;;  %v8824_v43 = vld [vmem:[#allocation24 + $0x380] ss:$20 sps:$4 sm:$0xff]  }
 0x73b   :  { %3725 = vmatpush1.bf16.msra.mxu0 %v8707_v47  ;;  %3848 = vmatpush1.bf16.msra.mxu1 %v8710_v48  ;;  %v8775_v47 = vld [vmem:[#allocation24 + $0x5a4] ss:$20 sps:$4 sm:$0xff]   ;;  %v8778_v48 = vld [vmem:[#allocation24 + $0x5ac] ss:$20 sps:$4 sm:$0xff]  }
 0x73c   :  { %3726 = vmatprep.subr.bf16.mxu0 %v8715_v50  ;;  %3849 = vmatprep.subr.bf16.mxu1 %v8718_v51  ;;  %v8776_v50 = vld [vmem:[#allocation24 + $0x5a8] ss:$20 sps:$4 sm:$0xff]   ;;  %v8781_v51 = vld [vmem:[#allocation24 + $0x5cc] ss:$20 sps:$4 sm:$0xff]  }
 0x73f   :  { %3727 = vmatpush1.bf16.msra.mxu0 %v8713_v52  ;;  %3850 = vmatpush1.bf16.msra.mxu1 %v8716_v53  ;;  %v8784_v52 = vld [vmem:[#allocation24 + $0x5d4] ss:$20 sps:$4 sm:$0xff]  }
 0x740   :  { %3728 = vmatprep.subr.bf16.mxu0 %v8721_v56  ;;  %3851 = vmatprep.subr.bf16.mxu1 %v8724_v57  ;;  %v8779_v53 = vld [vmem:[#allocation24 + $0x5c8] ss:$20 sps:$4 sm:$0xff]  }
 0x741   :  { %v8787_v56 = vld [vmem:[#allocation24 + $0x5f4] ss:$20 sps:$4 sm:$0xff]   ;;  %v8790_v57 = vld [vmem:[#allocation24 + $0x5fc] ss:$20 sps:$4 sm:$0xff]  }
 0x743   :  { %3729 = vmatpush1.bf16.msra.mxu0 %v8719_v58  ;;  %3852 = vmatpush1.bf16.msra.mxu1 %v8722_v62  ;;  %v9364_v58 = vpop.eup %9363  ;;  %v8785_v62 = vld [vmem:[#allocation24 + $0x5f0] ss:$20 sps:$4 sm:$0xff]  }
 0x744   :  { %3730 = vmatprep.subr.bf16.mxu0 %v8727_v27  ;;  %3853 = vmatprep.subr.bf16.mxu1 %v8730_v63  ;;  %v8788_v27 = vld [vmem:[#allocation24 + $0x5f8] ss:$20 sps:$4 sm:$0xff]   ;;  %v8793_v63 = vld [vmem:[#allocation24 + $0x61c] ss:$20 sps:$4 sm:$0xff]  }
 0x747   :  { %3731 = vmatpush1.bf16.msra.mxu0 %v8725_v2  ;;  %3854 = vmatpush1.bf16.msra.mxu1 %v8728_v3  ;;  %v8796_v2 = vld [vmem:[#allocation24 + $0x624] ss:$20 sps:$4 sm:$0xff]   ;;  %v7269_v3 = vadd.f32 -1.0, %v9364_v58 }
 0x748   :  { %3732 = vmatprep.subr.bf16.mxu0 %v8733_v4  ;;  %3855 = vmatprep.subr.bf16.mxu1 %v8736_v5  ;;  %v8791_v4 = vld [vmem:[#allocation24 + $0x618] ss:$20 sps:$4 sm:$0xff]   ;;  %v8794_v5 = vld [vmem:[#allocation24 + $0x620] ss:$20 sps:$4 sm:$0xff]  }
 0x749   :  { %v8863_v58 = vld [vmem:[#allocation27 + $0xe4] ss:$28 sps:$4 sm:$0xff]  }
 0x74b   :  { %3733 = vmatpush1.bf16.msra.mxu0 %v8731_v6  ;;  %3856 = vmatpush1.bf16.msra.mxu1 %v8734_v7  ;;  %v8797_v6 = vld [vmem:[#allocation24 + $0x150] ss:$20 sps:$4 sm:$0xff]  }
 0x74c   :  { %3734 = vmatprep.subr.bf16.mxu0 %v8739_v8  ;;  %3857 = vmatprep.subr.bf16.mxu1 %v8742_v9  ;;  %v8798_v7 = vld [vmem:[#allocation24 + $0x3d0] ss:$20 sps:$4 sm:$0xff]   ;;  %v2352_v8 = vsel %vm2332_vm6, %v2323_v37, %v7269_v3  ;;  %v8819_v37 = vld [vmem:[#allocation24 + $0xd8] ss:$20 sps:$4 sm:$0xff]  }
 0x74d   :  { %v8799_v9 = vld [vmem:[#allocation24 + $0x10] ss:$20 sps:$4 sm:$0xff]   ;;  %v10637_v10 = vpack.c.bf16 %v2352_v8, %v2352_v8  ;;  %v8867_v3 = vld [vmem:[#allocation27 + $0x118] ss:$28 sps:$4 sm:$0xff]  }
 0x74e   :  { %v8836_v8 = vld [vmem:[#allocation24 + $0x628] ss:$20 sps:$4 sm:$0xff]  }
 0x74f   :  { %3735 = vmatpush1.bf16.msra.mxu0 %v8737_v11  ;;  %3858 = vmatpush1.bf16.msra.mxu1 %v8740_v12  ;;  %v8800_v11 = vld [vmem:[#allocation24 + $0x290] ss:$20 sps:$4 sm:$0xff]   ;;  %v8801_v12 = vld [vmem:[#allocation24 + $0x178] ss:$20 sps:$4 sm:$0xff]  }
 0x750   :  { %3736 = vmatprep.subr.bf16.mxu0 %v8745_v13  ;;  %3859 = vmatprep.subr.bf16.mxu1 %v8748_v14  ;;  %v8802_v13 = vld [vmem:[#allocation24 + $0x3f8] ss:$20 sps:$4 sm:$0xff]  }
 0x751   :  { %v8803_v14 = vld [vmem:[#allocation24 + $0x38] ss:$20 sps:$4 sm:$0xff]  }
 0x753   :  { %3737 = vmatpush1.bf16.msra.mxu0 %v8743_v16  ;;  %3860 = vmatpush1.bf16.msra.mxu1 %v8746_v17  ;;  %v8805_v16 = vld [vmem:[#allocation24 + $0x1a0] ss:$20 sps:$4 sm:$0xff]  }
 0x754   :  { %3747 = vmatprep.subr.bf16.mxu0 %v8751_v19  ;;  %3870 = vmatprep.subr.bf16.mxu1 %v8754_v20  ;;  %v8806_v17 = vld [vmem:[#allocation24 + $0x420] ss:$20 sps:$4 sm:$0xff]  }
 0x755   :  { %v8807_v19 = vld [vmem:[#allocation24 + $0x60] ss:$20 sps:$4 sm:$0xff]  }
 0x756   :  { %3739 = vmatmul.mubr.bf16.vlgmr.msra.gmra.mrb[20].mxu0 %v10628_v25  ;;  %3862 = vmatmul.mubr.bf16.vlgmr.msra.gmra.mrb[24].mxu1 %v10628_v25  ;;  %v8808_v20 = vld [vmem:[#allocation24 + $0x2e0] ss:$20 sps:$4 sm:$0xff]  }
 0x757   :  { %3748 = vmatpush1.bf16.msra.mxu0 %v8749_v23  ;;  %3871 = vmatpush1.bf16.msra.mxu1 %v8752_v24  ;;  %v8810_v23 = vld [vmem:[#allocation24 + $0x448] ss:$20 sps:$4 sm:$0xff]  }
 0x758   :  { %3749 = vmatprep.subr.bf16.mxu0 %v8757_v28  ;;  %3872 = vmatprep.subr.bf16.mxu1 %v8760_v29  ;;  %v8811_v24 = vld [vmem:[#allocation24 + $0x88] ss:$20 sps:$4 sm:$0xff]   ;;  %v8815_v28 = vld [vmem:[#allocation24 + $0xb0] ss:$20 sps:$4 sm:$0xff]  }
 0x759   :  { %3779 = vmatprep.mubr.bf16.mxu0 %v9985_v42  ;;  %3902 = vmatprep.mubr.bf16.mxu1 %v9985_v42  ;;  %v8816_v29 = vld [vmem:[#allocation24 + $0x330] ss:$20 sps:$4 sm:$0xff]  }
 0x75b   :  { %3750 = vmatpush1.bf16.msra.mxu0 %v8755_v34  ;;  %3873 = vmatpush1.bf16.msra.mxu1 %v8758_v35  ;;  %v8817_v34 = vld [vmem:[#allocation24 + $0x218] ss:$20 sps:$4 sm:$0xff]  }
 0x75c   :  { %3751 = vmatprep.subr.bf16.mxu0 %v8763_v38  ;;  %3874 = vmatprep.subr.bf16.mxu1 %v8766_v39  ;;  %v8818_v35 = vld [vmem:[#allocation24 + $0x498] ss:$20 sps:$4 sm:$0xff]   ;;  %v8821_v39 = vld [vmem:[#allocation24 + $0x240] ss:$20 sps:$4 sm:$0xff]  }
 0x75d   :  { %v8820_v38 = vld [vmem:[#allocation24 + $0x358] ss:$20 sps:$4 sm:$0xff]  }
 0x75f   :  { %3752 = vmatpush1.bf16.msra.mxu0 %v8761_v21  ;;  %3875 = vmatpush1.bf16.msra.mxu1 %v8764_v40  ;;  %v8822_v21 = vld [vmem:[#allocation24 + $0x4c0] ss:$20 sps:$4 sm:$0xff]  }
 0x760   :  { %3753 = vmatprep.subr.bf16.mxu0 %v8769_v44  ;;  %3876 = vmatprep.subr.bf16.mxu1 %v8772_v45  ;;  %v8823_v40 = vld [vmem:[#allocation24 + $0x100] ss:$20 sps:$4 sm:$0xff]   ;;  %v8825_v44 = vld [vmem:[#allocation24 + $0x268] ss:$20 sps:$4 sm:$0xff]  }
 0x761   :  { %v8826_v45 = vld [vmem:[#allocation24 + $0x4e8] ss:$20 sps:$4 sm:$0xff]  }
 0x763   :  { %3754 = vmatpush1.bf16.msra.mxu0 %v8767_v41  ;;  %3877 = vmatpush1.bf16.msra.mxu1 %v8770_v46  ;;  %v8827_v41 = vld [vmem:[#allocation24 + $0x128] ss:$20 sps:$4 sm:$0xff]  }
 0x764   :  { %3755 = vmatprep.subr.bf16.mxu0 %v8775_v47  ;;  %3878 = vmatprep.subr.bf16.mxu1 %v8778_v48  ;;  %v8828_v46 = vld [vmem:[#allocation24 + $0x3a8] ss:$20 sps:$4 sm:$0xff]   ;;  %v8829_v48 = vld [vmem:[#allocation24 + $0x510] ss:$20 sps:$4 sm:$0xff]  }
 0x765   :  { %v8839_v47 = vld [vmem:[#allocation27 + $0x4] ss:$28 sps:$4 sm:$0xff]  }
 0x767   :  { %3756 = vmatpush1.bf16.msra.mxu0 %v8773_v49  ;;  %3879 = vmatpush1.bf16.msra.mxu1 %v8776_v50  ;;  %v8837_v49 = vld [vmem:[#allocation27] ss:$28 sps:$4 sm:$0xff]  }
 0x768   :  { %3757 = vmatprep.subr.bf16.mxu0 %v8781_v51  ;;  %3880 = vmatprep.subr.bf16.mxu1 %v8784_v52  ;;  %v8845_v50 = vld [vmem:[#allocation27 + $0x3c] ss:$28 sps:$4 sm:$0xff]   ;;  %v8830_v51 = vld [vmem:[#allocation24 + $0x538] ss:$20 sps:$4 sm:$0xff]  }
 0x769   :  { %v8843_v52 = vld [vmem:[#allocation27 + $0x38] ss:$28 sps:$4 sm:$0xff]  }
 0x76b   :  { %3758 = vmatpush1.bf16.msra.mxu0 %v8779_v53  ;;  %3881 = vmatpush1.bf16.msra.mxu1 %v8782_v54  ;;  %v8851_v53 = vld [vmem:[#allocation27 + $0x74] ss:$28 sps:$4 sm:$0xff]  }
 0x76c   :  { %3759 = vmatprep.subr.bf16.mxu0 %v8787_v56  ;;  %3882 = vmatprep.subr.bf16.mxu1 %v8790_v57  ;;  %v8831_v54 = vld [vmem:[#allocation24 + $0x560] ss:$20 sps:$4 sm:$0xff]   ;;  %v8855_v57 = vld [vmem:[#allocation27 + $0xa8] ss:$28 sps:$4 sm:$0xff]  }
 0x76d   :  { %v8857_v56 = vld [vmem:[#allocation27 + $0xac] ss:$28 sps:$4 sm:$0xff]  }
 0x76f   :  { %3760 = vmatpush1.bf16.msra.mxu0 %v8785_v62  ;;  %3883 = vmatpush1.bf16.msra.mxu1 %v8788_v27  ;;  %v8833_v62 = vld [vmem:[#allocation24 + $0x5b0] ss:$20 sps:$4 sm:$0xff]  }
 0x770   :  { %3761 = vmatprep.subr.bf16.mxu0 %v8793_v63  ;;  %3884 = vmatprep.subr.bf16.mxu1 %v8796_v2  ;;  %v8861_v27 = vld [vmem:[#allocation27 + $0xe0] ss:$28 sps:$4 sm:$0xff]   ;;  %v8834_v2 = vld [vmem:[#allocation24 + $0x5d8] ss:$20 sps:$4 sm:$0xff]  }
 0x771   :  { %v8869_v63 = vld [vmem:[#allocation27 + $0x11c] ss:$28 sps:$4 sm:$0xff]  }
 0x773   :  { %3762 = vmatpush1.bf16.msra.mxu0 %v8791_v4  ;;  %3885 = vmatpush1.bf16.msra.mxu1 %v8794_v5  ;;  %v8875_v4 = vld [vmem:[#allocation27 + $0x154] ss:$28 sps:$4 sm:$0xff]  }
 0x774   :  { %7921 = vmatprep.subr.bf16.mxu0 %v8797_v6  ;;  %7943 = vmatprep.subr.bf16.mxu1 %v8798_v7  ;;  %v8835_v5 = vld [vmem:[#allocation24 + $0x600] ss:$20 sps:$4 sm:$0xff]  }
 0x775   :  { %v8873_v6 = vld [vmem:[#allocation27 + $0x150] ss:$28 sps:$4 sm:$0xff]  }
 0x776   :  { %3780 = vmatmul.mubr.bf16.vlgmr.msra.gmra.mrb[20].mxu0 %v10637_v10  ;;  %3903 = vmatmul.mubr.bf16.vlgmr.msra.gmra.mrb[24].mxu1 %v10637_v10  ;;  %v8881_v7 = vld [vmem:[#allocation27 + $0x18c] ss:$28 sps:$4 sm:$0xff]  }
 0x777   :  { %7922 = vmatpush3.bf16.msra.mxu0 %v8799_v9  ;;  %3943 = vmatprep.mubr.bf16.mxu0 %v10608_v55  ;;  %v8812_v55 = vld [vmem:[#allocation24 + $0x308] ss:$20 sps:$4 sm:$0xff]   ;;  %v8842_v9 = vld [vmem:[#allocation27 + $0xc] ss:$28 sps:$4 sm:$0xff]  }
 0x778   :  { %7944 = vmatpush3.bf16.msra.mxu1 %v8800_v11  ;;  %3983 = vmatprep.mubr.bf16.mxu1 %v10616_v1  ;;  %v8814_v1 = vld [vmem:[#allocation24 + $0x470] ss:$20 sps:$4 sm:$0xff]  }
 0x779   :  { %7923 = vmatprep.subr.bf16.mxu0 %v8801_v12  ;;  %7945 = vmatprep.subr.bf16.mxu1 %v8802_v13  ;;  %v8879_v11 = vld [vmem:[#allocation27 + $0x188] ss:$28 sps:$4 sm:$0xff]  }
 0x77a   :  { %v8887_v12 = vld [vmem:[#allocation27 + $0x1c4] ss:$28 sps:$4 sm:$0xff]  }
 0x77b   :  { %7924 = vmatpush3.bf16.msra.mxu0 %v8803_v14  ;;  %v8840_v13 = vld [vmem:[#allocation27 + $0x8] ss:$28 sps:$4 sm:$0xff]  }
 0x77c   :  { %7946 = vmatpush3.bf16.msra.mxu1 %v8804_v15  ;;  %7925 = vmatprep.subr.bf16.mxu0 %v8805_v16  ;;  %v8848_v14 = vld [vmem:[#allocation27 + $0x44] ss:$28 sps:$4 sm:$0xff]   ;;  %v8893_v16 = vld [vmem:[#allocation27 + $0x1fc] ss:$28 sps:$4 sm:$0xff]  }
 0x77d   :  { %7947 = vmatprep.subr.bf16.mxu1 %v8806_v17  ;;  %v8885_v15 = vld [vmem:[#allocation27 + $0x1c0] ss:$28 sps:$4 sm:$0xff]  }
 0x77e   :  { %v8846_v17 = vld [vmem:[#allocation27 + $0x40] ss:$28 sps:$4 sm:$0xff]  }
 0x77f   :  { %7926 = vmatpush3.bf16.msra.mxu0 %v8807_v19  ;;  %v8854_v19 = vld [vmem:[#allocation27 + $0x7c] ss:$28 sps:$4 sm:$0xff]  }
 0x780   :  { %7948 = vmatpush3.bf16.msra.mxu1 %v8808_v20  ;;  %7927 = vmatprep.subr.bf16.mxu0 %v8809_v59  ;;  %v8891_v20 = vld [vmem:[#allocation27 + $0x1f8] ss:$28 sps:$4 sm:$0xff]  }
 0x781   :  { %7949 = vmatprep.subr.bf16.mxu1 %v8810_v23  ;;  %v8899_v59 = vld [vmem:[#allocation27 + $0x234] ss:$28 sps:$4 sm:$0xff]  }
 0x782   :  { %v8852_v23 = vld [vmem:[#allocation27 + $0x78] ss:$28 sps:$4 sm:$0xff]  }
 0x783   :  { %7928 = vmatpush3.bf16.msra.mxu0 %v8811_v24  ;;  %v8860_v24 = vld [vmem:[#allocation27 + $0xb4] ss:$28 sps:$4 sm:$0xff]  }
 0x784   :  { %7950 = vmatpush3.bf16.msra.mxu1 %v8812_v55  ;;  %7929 = vmatprep.subr.bf16.mxu0 %v8813_v26  ;;  %v8897_v55 = vld [vmem:[#allocation27 + $0x230] ss:$28 sps:$4 sm:$0xff]  }
 0x785   :  { %7951 = vmatprep.subr.bf16.mxu1 %v8814_v1  ;;  %v8858_v26 = vld [vmem:[#allocation27 + $0xb0] ss:$28 sps:$4 sm:$0xff]   ;;  %v8864_v1 = vld [vmem:[#allocation27 + $0xe8] ss:$28 sps:$4 sm:$0xff]  }
 0x787   :  { %7930 = vmatpush3.bf16.msra.mxu0 %v8815_v28  ;;  %v8872_v28 = vld [vmem:[#allocation27 + $0x124] ss:$28 sps:$4 sm:$0xff]  }
 0x788   :  { %7952 = vmatpush3.bf16.msra.mxu1 %v8816_v29  ;;  %7931 = vmatprep.subr.bf16.mxu0 %v8817_v34  ;;  %v8870_v29 = vld [vmem:[#allocation27 + $0x120] ss:$28 sps:$4 sm:$0xff]  }
 0x789   :  { %7953 = vmatprep.subr.bf16.mxu1 %v8818_v35  ;;  %v8878_v34 = vld [vmem:[#allocation27 + $0x15c] ss:$28 sps:$4 sm:$0xff]  }
 0x78a   :  { %v8876_v35 = vld [vmem:[#allocation27 + $0x158] ss:$28 sps:$4 sm:$0xff]  }
 0x78b   :  { %7932 = vmatpush3.bf16.msra.mxu0 %v8819_v37  ;;  %v8905_v37 = vld [vmem:[#allocation27 + $0x26c] ss:$28 sps:$4 sm:$0xff]  }
 0x78c   :  { %7954 = vmatpush3.bf16.msra.mxu1 %v8820_v38  ;;  %7933 = vmatprep.subr.bf16.mxu0 %v8821_v39  ;;  %v8884_v38 = vld [vmem:[#allocation27 + $0x194] ss:$28 sps:$4 sm:$0xff]   ;;  %v8903_v39 = vld [vmem:[#allocation27 + $0x268] ss:$28 sps:$4 sm:$0xff]  }
 0x78d   :  { %7955 = vmatprep.subr.bf16.mxu1 %v8822_v21  ;;  %v8882_v21 = vld [vmem:[#allocation27 + $0x190] ss:$28 sps:$4 sm:$0xff]  }
 0x78f   :  { %7934 = vmatpush3.bf16.msra.mxu0 %v8823_v40  ;;  %v8911_v40 = vld [vmem:[#allocation27 + $0x2a4] ss:$28 sps:$4 sm:$0xff]  }
 0x790   :  { %7956 = vmatpush3.bf16.msra.mxu1 %v8824_v43  ;;  %7935 = vmatprep.subr.bf16.mxu0 %v8825_v44  ;;  %v8890_v43 = vld [vmem:[#allocation27 + $0x1cc] ss:$28 sps:$4 sm:$0xff]   ;;  %v8909_v44 = vld [vmem:[#allocation27 + $0x2a0] ss:$28 sps:$4 sm:$0xff]  }
 0x791   :  { %7957 = vmatprep.subr.bf16.mxu1 %v8826_v45  ;;  %v8888_v45 = vld [vmem:[#allocation27 + $0x1c8] ss:$28 sps:$4 sm:$0xff]  }
 0x793   :  { %7936 = vmatpush3.bf16.msra.mxu0 %v8827_v41  ;;  %v8917_v41 = vld [vmem:[#allocation27 + $0x2dc] ss:$28 sps:$4 sm:$0xff]  }
 0x794   :  { %7958 = vmatpush3.bf16.msra.mxu1 %v8828_v46  ;;  %8158 = vmatprep.subr.bf16.mxu0 %v9983_v0  ;;  %v8896_v46 = vld [vmem:[#allocation27 + $0x204] ss:$28 sps:$4 sm:$0xff]  }
 0x795   :  { %5858 = vmatprep.subr.bf16.mxu1 %v8839_v47  ;;  %v8915_v47 = vld [vmem:[#allocation27 + $0x2d8] ss:$28 sps:$4 sm:$0xff]  }
 0x796   :  { %3944 = vmatmul.mubr.bf16.vlgmr.msra.gmra.mrb[24].mxu0 %v10610_v60  ;;  %v8849_v60 = vld [vmem:[#allocation27 + $0x70] ss:$28 sps:$4 sm:$0xff]  }
 0x797   :  { %3984 = vmatmul.mubr.bf16.vlgmr.msra.gmra.mrb[28].mxu1 %v10628_v25  ;;  %8159 = vmatpush3.bf16.msra.mxu0 %v8829_v48  ;;  %v8832_v25 = vld [vmem:[#allocation24 + $0x588] ss:$20 sps:$4 sm:$0xff]  }
 0x798   :  { %8160 = vmatprep.subr.bf16.mxu0 %v9983_v0  ;;  %8174 = vmatprep.mubr.msk.bf16.mxu0 %vm9984_vm0, %v9983_v0  ;;  %v8894_v48 = vld [vmem:[#allocation27 + $0x200] ss:$28 sps:$4 sm:$0xff]  }
 0x799   :  { %5859 = vmatpush1.bf16.msra.mxu1 %v8837_v49  ;;  %v8923_v49 = vld [vmem:[#allocation27 + $0x314] ss:$28 sps:$4 sm:$0xff]  }
 0x79a   :  { %5860 = vmatprep.subr.bf16.mxu1 %v8845_v50  ;;  %v8902_v50 = vld [vmem:[#allocation27 + $0x23c] ss:$28 sps:$4 sm:$0xff]  }
 0x79b   :  { %8161 = vmatpush3.bf16.msra.mxu0 %v8830_v51  ;;  %v8921_v51 = vld [vmem:[#allocation27 + $0x310] ss:$28 sps:$4 sm:$0xff]  }
 0x79c   :  { %8162 = vmatprep.subr.bf16.mxu0 %v9983_v0 }
 0x79d   :  { %5861 = vmatpush1.bf16.msra.mxu1 %v8843_v52  ;;  %v8900_v52 = vld [vmem:[#allocation27 + $0x238] ss:$28 sps:$4 sm:$0xff]  }
 0x79e   :  { %5862 = vmatprep.subr.bf16.mxu1 %v8851_v53  ;;  %v8929_v53 = vld [vmem:[#allocation27 + $0x34c] ss:$28 sps:$4 sm:$0xff]  }
 0x79f   :  { %8163 = vmatpush3.bf16.msra.mxu0 %v8831_v54  ;;  %v8908_v54 = vld [vmem:[#allocation27 + $0x274] ss:$28 sps:$4 sm:$0xff]  }
 0x7a0   :  { %8164 = vmatprep.subr.bf16.mxu0 %v9983_v0 }
 0x7a1   :  { %5863 = vmatpush1.bf16.msra.mxu1 %v8849_v60  ;;  %v8927_v60 = vld [vmem:[#allocation27 + $0x348] ss:$28 sps:$4 sm:$0xff]  }
 0x7a2   :  { %5864 = vmatprep.subr.bf16.mxu1 %v8857_v56  ;;  %v8906_v56 = vld [vmem:[#allocation27 + $0x270] ss:$28 sps:$4 sm:$0xff]  }
 0x7a3   :  { %8165 = vmatpush3.bf16.msra.mxu0 %v8832_v25  ;;  %v8935_v25 = vld [vmem:[#allocation27 + $0x384] ss:$28 sps:$4 sm:$0xff]  }
 0x7a4   :  { %8166 = vmatprep.subr.bf16.mxu0 %v9983_v0 }
 0x7a5   :  { %5865 = vmatpush1.bf16.msra.mxu1 %v8855_v57  ;;  %v8914_v57 = vld [vmem:[#allocation27 + $0x2ac] ss:$28 sps:$4 sm:$0xff]  }
 0x7a6   :  { %5866 = vmatprep.subr.bf16.mxu1 %v8863_v58  ;;  %v8912_v58 = vld [vmem:[#allocation27 + $0x2a8] ss:$28 sps:$4 sm:$0xff]  }
 0x7a7   :  { %8167 = vmatpush3.bf16.msra.mxu0 %v8833_v62  ;;  %v8920_v62 = vld [vmem:[#allocation27 + $0x2e4] ss:$28 sps:$4 sm:$0xff]  }
 0x7a8   :  { %8168 = vmatprep.subr.bf16.mxu0 %v9983_v0 }
 0x7a9   :  { %5867 = vmatpush1.bf16.msra.mxu1 %v8861_v27  ;;  %v8918_v27 = vld [vmem:[#allocation27 + $0x2e0] ss:$28 sps:$4 sm:$0xff]  }
 0x7aa   :  { %5868 = vmatprep.subr.bf16.mxu1 %v8869_v63  ;;  %v8926_v63 = vld [vmem:[#allocation27 + $0x31c] ss:$28 sps:$4 sm:$0xff]  }
 0x7ab   :  { %8169 = vmatpush3.bf16.msra.mxu0 %v8834_v2  ;;  %v8924_v2 = vld [vmem:[#allocation27 + $0x318] ss:$28 sps:$4 sm:$0xff]  }
 0x7ac   :  { %8170 = vmatprep.subr.bf16.mxu0 %v9983_v0 }
 0x7ad   :  { %5869 = vmatpush1.bf16.msra.mxu1 %v8867_v3  ;;  %v8932_v3 = vld [vmem:[#allocation27 + $0x354] ss:$28 sps:$4 sm:$0xff]  }
 0x7ae   :  { %5870 = vmatprep.subr.bf16.mxu1 %v8875_v4  ;;  %v8930_v4 = vld [vmem:[#allocation27 + $0x350] ss:$28 sps:$4 sm:$0xff]  }
 0x7af   :  { %8171 = vmatpush3.bf16.msra.mxu0 %v8835_v5  ;;  %v8938_v5 = vld [vmem:[#allocation27 + $0x38c] ss:$28 sps:$4 sm:$0xff]  }
 0x7b0   :  { %8172 = vmatprep.subr.bf16.mxu0 %v9983_v0 }
 0x7b1   :  { %5871 = vmatpush1.bf16.msra.mxu1 %v8873_v6  ;;  %v10656_v6 = vld [vmem:[#allocation25] sm:$0x1f] }
 0x7b2   :  { %5872 = vmatprep.subr.bf16.mxu1 %v8881_v7  ;;  %v2603_v7 = vrot.slane %v10656_v6, %v10533_v32 }
 0x7b3   :  { %8173 = vmatpush3.bf16.msra.mxu0 %v8836_v8  ;;  %v2607_v8 = vrot.slane %v10656_v6, %v10536_v36 }
 0x7b4   :  { %5981 = vmatprep.subr.bf16.mxu0 %v8842_v9  ;;  %v2615_v9 = vrot.slane %v10656_v6, %v10598_v22 }
 0x7b5   :  { %5873 = vmatpush1.bf16.msra.mxu1 %v8879_v11 }
 0x7b6   :  { %8175 = vmatmul.mubr.bf16.vlgmr.msra.gmra.mrb[28].mxu0 %v10637_v10  ;;  %5874 = vmatprep.subr.bf16.mxu1 %v8887_v12  ;;  %v8866_v10 = vld [vmem:[#allocation27 + $0xec] ss:$28 sps:$4 sm:$0xff]  }
 0x7b7   :  { %5982 = vmatpush1.bf16.msra.mxu0 %v8840_v13 }
 0x7b8   :  { %5983 = vmatprep.subr.bf16.mxu0 %v8848_v14 }
 0x7b9   :  { %5875 = vmatpush1.bf16.msra.mxu1 %v8885_v15 }
 0x7ba   :  { %5876 = vmatprep.subr.bf16.mxu1 %v8893_v16 }
 0x7bb   :  { %5984 = vmatpush1.bf16.msra.mxu0 %v8846_v17 }
 0x7bc   :  { %5985 = vmatprep.subr.bf16.mxu0 %v8854_v19 }
 0x7bd   :  { %5877 = vmatpush1.bf16.msra.mxu1 %v8891_v20 }
 0x7be   :  { %5878 = vmatprep.subr.bf16.mxu1 %v8899_v59 }
 0x7bf   :  { %5986 = vmatpush1.bf16.msra.mxu0 %v8852_v23 }
 0x7c0   :  { %5987 = vmatprep.subr.bf16.mxu0 %v8860_v24 }
 0x7c1   :  { %5879 = vmatpush1.bf16.msra.mxu1 %v8897_v55 }
 0x7c2   :  { %5880 = vmatprep.subr.bf16.mxu1 %v8905_v37 }
 0x7c3   :  { %5988 = vmatpush1.bf16.msra.mxu0 %v8858_v26 }
 0x7c4   :  { %5989 = vmatprep.subr.bf16.mxu0 %v8866_v10 }
 0x7c5   :  { %5881 = vmatpush1.bf16.msra.mxu1 %v8903_v39 }
 0x7c6   :  { %5882 = vmatprep.subr.bf16.mxu1 %v8911_v40  ;;  %v8933_v40 = vld [vmem:[#allocation27 + $0x380] ss:$28 sps:$4 sm:$0xff]  }
 0x7c7   :  { %5990 = vmatpush1.bf16.msra.mxu0 %v8864_v1 }
 0x7c8   :  { %5991 = vmatprep.subr.bf16.mxu0 %v8872_v28 }
 0x7c9   :  { %5883 = vmatpush1.bf16.msra.mxu1 %v8909_v44 }
 0x7ca   :  { %5884 = vmatprep.subr.bf16.mxu1 %v8917_v41  ;;  %v8944_v41 = vld [vmem:[#allocation27 + $0x3c4] ss:$28 sps:$4 sm:$0xff]  }
 0x7cb   :  { %5992 = vmatpush1.bf16.msra.mxu0 %v8870_v29 }
 0x7cc   :  { %5993 = vmatprep.subr.bf16.mxu0 %v8878_v34 }
 0x7cd   :  { %5885 = vmatpush1.bf16.msra.mxu1 %v8915_v47  ;;  %v8939_v47 = vld [vmem:[#allocation27 + $0x3b8] ss:$28 sps:$4 sm:$0xff]  }
 0x7ce   :  { %5886 = vmatprep.subr.bf16.mxu1 %v8923_v49  ;;  %v8947_v49 = vld [vmem:[#allocation27 + $0x3f4] ss:$28 sps:$4 sm:$0xff]  }
 0x7cf   :  { %5994 = vmatpush1.bf16.msra.mxu0 %v8876_v35 }
 0x7d0   :  { %5995 = vmatprep.subr.bf16.mxu0 %v8884_v38 }
 0x7d1   :  { %5887 = vmatpush1.bf16.msra.mxu1 %v8921_v51  ;;  %v8945_v51 = vld [vmem:[#allocation27 + $0x3f0] ss:$28 sps:$4 sm:$0xff]  }
 0x7d2   :  { %5888 = vmatprep.subr.bf16.mxu1 %v8929_v53  ;;  %v8953_v53 = vld [vmem:[#allocation27 + $0x42c] ss:$28 sps:$4 sm:$0xff]  }
 0x7d3   :  { %5996 = vmatpush1.bf16.msra.mxu0 %v8882_v21 }
 0x7d4   :  { %5997 = vmatprep.subr.bf16.mxu0 %v8890_v43  ;;  %v8936_v43 = vld [vmem:[#allocation27 + $0x388] ss:$28 sps:$4 sm:$0xff]  }
 0x7d5   :  { %5889 = vmatpush1.bf16.msra.mxu1 %v8927_v60 }
 0x7d6   :  { %5899 = vmatprep.subr.bf16.mxu1 %v8935_v25 }
 0x7d7   :  { %5998 = vmatpush1.bf16.msra.mxu0 %v8888_v45  ;;  %v8941_v45 = vld [vmem:[#allocation27 + $0x3bc] ss:$28 sps:$4 sm:$0xff]  }
 0x7d8   :  { %5999 = vmatprep.subr.bf16.mxu0 %v8896_v46 }
 0x7db   :  { %6000 = vmatpush1.bf16.msra.mxu0 %v8894_v48  ;;  %v8942_v48 = vld [vmem:[#allocation27 + $0x3c0] ss:$28 sps:$4 sm:$0xff]  }
 0x7dc   :  { %6001 = vmatprep.subr.bf16.mxu0 %v8902_v50  ;;  %v8950_v50 = vld [vmem:[#allocation27 + $0x3fc] ss:$28 sps:$4 sm:$0xff]  }
 0x7df   :  { %6002 = vmatpush1.bf16.msra.mxu0 %v8900_v52  ;;  %v8948_v52 = vld [vmem:[#allocation27 + $0x3f8] ss:$28 sps:$4 sm:$0xff]  }
 0x7e0   :  { %6003 = vmatprep.subr.bf16.mxu0 %v8908_v54  ;;  %v8956_v54 = vld [vmem:[#allocation27 + $0x434] ss:$28 sps:$4 sm:$0xff]  }
 0x7e3   :  { %6004 = vmatpush1.bf16.msra.mxu0 %v8906_v56  ;;  %v2619_v56 = vrot.slane %v10656_v6, %v10626_v18 }
 0x7e4   :  { %6005 = vmatprep.subr.bf16.mxu0 %v8914_v57 }
 0x7e7   :  { %6006 = vmatpush1.bf16.msra.mxu0 %v8912_v58  ;;  %v8951_v58 = vld [vmem:[#allocation27 + $0x428] ss:$28 sps:$4 sm:$0xff]  }
 0x7e8   :  { %6007 = vmatprep.subr.bf16.mxu0 %v8920_v62  ;;  %v8954_v62 = vld [vmem:[#allocation27 + $0x430] ss:$28 sps:$4 sm:$0xff]  }
 0x7eb   :  { %6008 = vmatpush1.bf16.msra.mxu0 %v8918_v27 }
 0x7ec   :  { %6009 = vmatprep.subr.bf16.mxu0 %v8926_v63 }
 0x7ef   :  { %6010 = vmatpush1.bf16.msra.mxu0 %v8924_v2 }
 0x7f0   :  { %6011 = vmatprep.subr.bf16.mxu0 %v8932_v3  ;;  %v8959_v3 = vld [vmem:[#allocation27 + $0x464] ss:$28 sps:$4 sm:$0xff]  }
 0x7f3   :  { %6012 = vmatpush1.bf16.msra.mxu0 %v8930_v4  ;;  %v8962_v4 = vld [vmem:[#allocation27 + $0x46c] ss:$28 sps:$4 sm:$0xff]  }
 0x7f4   :  { %6022 = vmatprep.subr.bf16.mxu0 %v8938_v5 }
 0x849   :  { %v3781_v11 = vpop.f32.mrb[20].mxu0  ;;  %v10664_v12 = vpop.f32.mrb[24].mxu1 }
 0x84a   :  { %v8226_v13 = vadd.f32 %v3781_v11, %v2603_v7  ;;  %v3783_v14 = vpop.f32.mrb[21].mxu0  ;;  %v3906_v15 = vpop.f32.mrb[25].mxu1 }
 0x84b   :  { %v8227_v16 = vadd.f32 %v3783_v14, %v2607_v8  ;;  %v8229_v17 = vadd.f32 %v3906_v15, %v2615_v9  ;;  %v3785_v19 = vpop.f32.mrb[22].mxu0  ;;  %v3908_v20 = vpop.f32.mrb[26].mxu1  ;;  %v8960_v14 = vld [vmem:[#allocation27 + $0x468] ss:$28 sps:$4 sm:$0xff]   ;;  %v8965_v15 = vld [vmem:[#allocation27 + $0x49c] ss:$28 sps:$4 sm:$0xff]  }
 0x84c   :  { %v4036_v59 = vmul.f32 1.442695, %v8226_v13  ;;  %v3786_v55 = vpop.f32.mrb[23].mxu0  ;;  %v3909_v26 = vpop.f32.mrb[27].mxu1  ;;  %vm4031_vm7 = vcmp.gt.f32.partialorder %v8226_v13, 0.0 }
 0x84d   :  { %v4038_v23 = vmul.f32 1.442695, %v8227_v16  ;;  %v4042_v24 = vmul.f32 1.442695, %v8229_v17  ;;  %vm4032_vm8 = vcmp.gt.f32.partialorder %v8227_v16, 0.0  ;;  %vm4034_vm9 = vcmp.gt.f32.partialorder %v8229_v17, 0.0 }
 0x84e   :  { %9365 = vpow2.f32 %v4036_v59  ;;  %v8963_v19 = vld [vmem:[#allocation27 + $0x498] ss:$28 sps:$4 sm:$0xff]   ;;  %v8966_v20 = vld [vmem:[#allocation27 + $0x4a0] ss:$28 sps:$4 sm:$0xff]   ;;  %v8977_v26 = vld [vmem:[#allocation27 + $0x50c] ss:$28 sps:$4 sm:$0xff]  }
 0x84f   :  { %9367 = vpow2.f32 %v4038_v23  ;;  %v8971_v59 = vld [vmem:[#allocation27 + $0x4d4] ss:$28 sps:$4 sm:$0xff]   ;;  %v8974_v23 = vld [vmem:[#allocation27 + $0x4dc] ss:$28 sps:$4 sm:$0xff]  }
 0x850   :  { %9369 = vpow2.f32 %v4042_v24  ;;  %v8969_v24 = vld [vmem:[#allocation27 + $0x4d0] ss:$28 sps:$4 sm:$0xff]   ;;  %v8972_v55 = vld [vmem:[#allocation27 + $0x4d8] ss:$28 sps:$4 sm:$0xff]  }
 0x858   :  { %v9366_v10 = vpop.eup %9365 }
 0x859   :  { %v7470_v1 = vadd.f32 -1.0, %v9366_v10  ;;  %v9368_v28 = vpop.eup %9367  ;;  %v8980_v10 = vld [vmem:[#allocation27 + $0x514] ss:$28 sps:$4 sm:$0xff]  }
 0x85a   :  { %v9370_v29 = vpop.eup %9369  ;;  %v7471_v34 = vadd.f32 -1.0, %v9368_v28  ;;  %v8978_v28 = vld [vmem:[#allocation27 + $0x510] ss:$28 sps:$4 sm:$0xff]  }
 0x85b   :  { %v4051_v35 = vsel %vm4031_vm7, %v8226_v13, %v7470_v1  ;;  %v7473_v37 = vadd.f32 -1.0, %v9370_v29  ;;  %v8957_v13 = vld [vmem:[#allocation27 + $0x460] ss:$28 sps:$4 sm:$0xff]   ;;  %v8975_v1 = vld [vmem:[#allocation27 + $0x508] ss:$28 sps:$4 sm:$0xff]  }
 0x85c   :  { %v4052_v38 = vsel %vm4032_vm8, %v8227_v16, %v7471_v34  ;;  %v10668_v44 = vpack.c.bf16 %v4051_v35, %v4051_v35  ;;  %v8968_v16 = vld [vmem:[#allocation27 + $0x4a4] ss:$28 sps:$4 sm:$0xff]   ;;  %v8986_v34 = vld [vmem:[#allocation27 + $0x54c] ss:$28 sps:$4 sm:$0xff]  }
 0x85d   :  { %v10666_v39 = vpack.c.bf16 %v4052_v38, %v4052_v38  ;;  %v4054_v21 = vsel %vm4034_vm9, %v8229_v17, %v7473_v37  ;;  %v8983_v29 = vld [vmem:[#allocation27 + $0x544] ss:$28 sps:$4 sm:$0xff]   ;;  %v2611_v38 = vrot.slane %v10656_v6, %v10543_v61 }
 0x85e   :  { %v10672_v46 = vpack.c.bf16 %v4054_v21, %v4054_v21  ;;  %v8981_v35 = vld [vmem:[#allocation27 + $0x540] ss:$28 sps:$4 sm:$0xff]   ;;  %v8984_v37 = vld [vmem:[#allocation27 + $0x548] ss:$28 sps:$4 sm:$0xff]  }
 0x85f   :  { %5890 = vmatprep.mubr.bf16.mxu1 %v10666_v39  ;;  %6013 = vmatprep.mubr.bf16.mxu0 %v10666_v39  ;;  %v8989_v21 = vld [vmem:[#allocation27 + $0x57c] ss:$28 sps:$4 sm:$0xff]  }
 0x860   :  { %5891 = vmatmul.mubr.bf16.vlgmr.msra.gmra.mrb[32].mxu1 %v10668_v44  ;;  %6014 = vmatmul.mubr.bf16.vlgmr.msra.gmra.mrb[32].mxu0 %v10668_v44 }
 0x861   :  { %5900 = vmatpush1.bf16.msra.mxu1 %v8933_v40  ;;  %6023 = vmatpush1.bf16.msra.mxu0 %v8936_v43  ;;  %v8992_v40 = vld [vmem:[#allocation27 + $0x584] ss:$28 sps:$4 sm:$0xff]   ;;  %v8987_v43 = vld [vmem:[#allocation27 + $0x578] ss:$28 sps:$4 sm:$0xff]  }
 0x862   :  { %5931 = vmatprep.mubr.bf16.mxu1 %v10672_v46  ;;  %6054 = vmatprep.mubr.bf16.mxu0 %v10672_v46 }
 0x863   :  { %5901 = vmatprep.subr.bf16.mxu1 %v8941_v45  ;;  %6024 = vmatprep.subr.bf16.mxu0 %v8944_v41  ;;  %v8990_v45 = vld [vmem:[#allocation27 + $0x580] ss:$28 sps:$4 sm:$0xff]   ;;  %v10683_v41 = vadd.f32 %v10664_v12, %v2611_v38  ;;  %v9044_v38 = vld [vmem:[#allocation27 + $0x778] ss:$28 sps:$4 sm:$0xff]  }
 0x865   :  { %5902 = vmatpush1.bf16.msra.mxu1 %v8939_v47  ;;  %6025 = vmatpush1.bf16.msra.mxu0 %v8942_v48  ;;  %v8995_v47 = vld [vmem:[#allocation27 + $0x5b4] ss:$28 sps:$4 sm:$0xff]   ;;  %v8998_v48 = vld [vmem:[#allocation27 + $0x5bc] ss:$28 sps:$4 sm:$0xff]   ;;  %v4040_v6 = vmul.f32 1.442695, %v10683_v41 }
 0x866   :  { %5903 = vmatprep.subr.bf16.mxu1 %v8947_v49  ;;  %6026 = vmatprep.subr.bf16.mxu0 %v8950_v50  ;;  %v8993_v49 = vld [vmem:[#allocation27 + $0x5b0] ss:$28 sps:$4 sm:$0xff]   ;;  %v8996_v50 = vld [vmem:[#allocation27 + $0x5b8] ss:$28 sps:$4 sm:$0xff]   ;;  %vm4033_vm10 = vcmp.gt.f32.partialorder %v10683_v41, 0.0 }
 0x867   :  { %9371 = vpow2.f32 %v4040_v6  ;;  %v9061_v6 = vld [vmem:[#allocation27 + $0x81c] ss:$28 sps:$4 sm:$0xff]  }
 0x869   :  { %v7937_v60 = vpop.f32.mrb[24].mxu0  ;;  %5904 = vmatpush1.bf16.msra.mxu1 %v8945_v51  ;;  %6027 = vmatpush1.bf16.msra.mxu0 %v8948_v52  ;;  %v9001_v51 = vld [vmem:[#allocation27 + $0x5ec] ss:$28 sps:$4 sm:$0xff]   ;;  %v9004_v52 = vld [vmem:[#allocation27 + $0x5f4] ss:$28 sps:$4 sm:$0xff]  }
 0x86a   :  { %v7959_v25 = vpop.f32.mrb[28].mxu1  ;;  %v7938_v57 = vpop.f32.mrb[25].mxu0  ;;  %5905 = vmatprep.subr.bf16.mxu1 %v8953_v53  ;;  %6028 = vmatprep.subr.bf16.mxu0 %v8956_v54 }
 0x86b   :  { %v7939_v27 = vadd.f32 %v7938_v57, %v7937_v60  ;;  %v7960_v63 = vpop.f32.mrb[29].mxu1  ;;  %v7940_v2 = vpop.f32.mrb[26].mxu0  ;;  %v8999_v60 = vld [vmem:[#allocation27 + $0x5e8] ss:$28 sps:$4 sm:$0xff]  }
 0x86c   :  { %v7961_v5 = vadd.f32 %v7960_v63, %v7959_v25  ;;  %v7962_v7 = vpop.f32.mrb[30].mxu1  ;;  %v7941_v8 = vpop.f32.mrb[27].mxu0  ;;  %v9007_v57 = vld [vmem:[#allocation27 + $0x624] ss:$28 sps:$4 sm:$0xff]   ;;  %v9013_v2 = vld [vmem:[#allocation27 + $0x65c] ss:$28 sps:$4 sm:$0xff]  }
 0x86d   :  { %v3946_v9 = vadd.f32 %v7939_v27, %v2619_v56  ;;  %v7963_v11 = vpop.f32.mrb[31].mxu1  ;;  %5906 = vmatpush1.bf16.msra.mxu1 %v8951_v58  ;;  %6029 = vmatpush1.bf16.msra.mxu0 %v8954_v62  ;;  %v9002_v56 = vld [vmem:[#allocation27 + $0x5f0] ss:$28 sps:$4 sm:$0xff]   ;;  %v9005_v27 = vld [vmem:[#allocation27 + $0x620] ss:$28 sps:$4 sm:$0xff]  }
 0x86e   :  { %5907 = vmatprep.subr.bf16.mxu1 %v8959_v3  ;;  %6030 = vmatprep.subr.bf16.mxu0 %v8962_v4  ;;  %v9010_v58 = vld [vmem:[#allocation27 + $0x62c] ss:$28 sps:$4 sm:$0xff]   ;;  %v9016_v3 = vld [vmem:[#allocation27 + $0x664] ss:$28 sps:$4 sm:$0xff]   ;;  %v9011_v4 = vld [vmem:[#allocation27 + $0x658] ss:$28 sps:$4 sm:$0xff]  }
 0x86f   :  { %v3986_v17 = vadd.f32 %v7961_v5, %v3946_v9  ;;  %v9008_v63 = vld [vmem:[#allocation27 + $0x628] ss:$28 sps:$4 sm:$0xff]   ;;  %v9014_v5 = vld [vmem:[#allocation27 + $0x660] ss:$28 sps:$4 sm:$0xff]   ;;  %v9019_v7 = vld [vmem:[#allocation27 + $0x694] ss:$28 sps:$4 sm:$0xff]  }
 0x870   :  { %v9022_v8 = vld [vmem:[#allocation27 + $0x69c] ss:$28 sps:$4 sm:$0xff]   ;;  %v9017_v11 = vld [vmem:[#allocation27 + $0x690] ss:$28 sps:$4 sm:$0xff]  }
 0x871   :  { %5908 = vmatpush1.bf16.msra.mxu1 %v8957_v13  ;;  %6031 = vmatpush1.bf16.msra.mxu0 %v8960_v14  ;;  %v9372_v9 = vpop.eup %9371  ;;  %v9020_v13 = vld [vmem:[#allocation27 + $0x698] ss:$28 sps:$4 sm:$0xff]   ;;  %v9025_v14 = vld [vmem:[#allocation27 + $0x6cc] ss:$28 sps:$4 sm:$0xff]  }
 0x872   :  { %5909 = vmatprep.subr.bf16.mxu1 %v8965_v15  ;;  %6032 = vmatprep.subr.bf16.mxu0 %v8968_v16  ;;  %v9028_v15 = vld [vmem:[#allocation27 + $0x6d4] ss:$28 sps:$4 sm:$0xff]   ;;  %v7472_v16 = vadd.f32 -1.0, %v9372_v9 }
 0x873   :  { %v9080_v9 = vld [vmem:[#allocation27 + $0x390] ss:$28 sps:$4 sm:$0xff]  }
 0x875   :  { %5910 = vmatpush1.bf16.msra.mxu1 %v8963_v19  ;;  %6033 = vmatpush1.bf16.msra.mxu0 %v8966_v20  ;;  %v9026_v19 = vld [vmem:[#allocation27 + $0x6d0] ss:$28 sps:$4 sm:$0xff]   ;;  %v9031_v20 = vld [vmem:[#allocation27 + $0x704] ss:$28 sps:$4 sm:$0xff]  }
 0x876   :  { %5911 = vmatprep.subr.bf16.mxu1 %v8971_v59  ;;  %6034 = vmatprep.subr.bf16.mxu0 %v8974_v23  ;;  %v9034_v59 = vld [vmem:[#allocation27 + $0x70c] ss:$28 sps:$4 sm:$0xff]   ;;  %v4053_v23 = vsel %vm4033_vm10, %v10683_v41, %v7472_v16  ;;  %v9094_v16 = vld [vmem:[#allocation27 + $0x404] ss:$28 sps:$4 sm:$0xff]  }
 0x877   :  { %v9050_v41 = vld [vmem:[#allocation27 + $0x7b0] ss:$28 sps:$4 sm:$0xff]  }
 0x879   :  { %5912 = vmatpush1.bf16.msra.mxu1 %v8969_v24  ;;  %6035 = vmatpush1.bf16.msra.mxu0 %v8972_v55  ;;  %v9029_v24 = vld [vmem:[#allocation27 + $0x700] ss:$28 sps:$4 sm:$0xff]   ;;  %v9032_v55 = vld [vmem:[#allocation27 + $0x708] ss:$28 sps:$4 sm:$0xff]  }
 0x87a   :  { %5913 = vmatprep.subr.bf16.mxu1 %v8977_v26  ;;  %6036 = vmatprep.subr.bf16.mxu0 %v8980_v10  ;;  %v10690_v26 = vpack.c.bf16 %v4053_v23, %v4053_v23  ;;  %v9037_v10 = vld [vmem:[#allocation27 + $0x73c] ss:$28 sps:$4 sm:$0xff]  }
 0x87b   :  { %v9095_v23 = vld [vmem:[#allocation27 + $0xb8] ss:$28 sps:$4 sm:$0xff]  }
 0x87d   :  { %5914 = vmatpush1.bf16.msra.mxu1 %v8975_v1  ;;  %6037 = vmatpush1.bf16.msra.mxu0 %v8978_v28  ;;  %v9040_v1 = vld [vmem:[#allocation27 + $0x744] ss:$28 sps:$4 sm:$0xff]   ;;  %v9035_v28 = vld [vmem:[#allocation27 + $0x738] ss:$28 sps:$4 sm:$0xff]  }
 0x87e   :  { %5915 = vmatprep.subr.bf16.mxu1 %v8983_v29  ;;  %6038 = vmatprep.subr.bf16.mxu0 %v8986_v34  ;;  %v9038_v29 = vld [vmem:[#allocation27 + $0x740] ss:$28 sps:$4 sm:$0xff]   ;;  %v9043_v34 = vld [vmem:[#allocation27 + $0x774] ss:$28 sps:$4 sm:$0xff]  }
 0x881   :  { %5916 = vmatpush1.bf16.msra.mxu1 %v8981_v35  ;;  %6039 = vmatpush1.bf16.msra.mxu0 %v8984_v37  ;;  %v9046_v35 = vld [vmem:[#allocation27 + $0x77c] ss:$28 sps:$4 sm:$0xff]   ;;  %v9041_v37 = vld [vmem:[#allocation27 + $0x770] ss:$28 sps:$4 sm:$0xff]  }
 0x882   :  { %5917 = vmatprep.subr.bf16.mxu1 %v8989_v21  ;;  %6040 = vmatprep.subr.bf16.mxu0 %v8992_v40  ;;  %v9049_v40 = vld [vmem:[#allocation27 + $0x7ac] ss:$28 sps:$4 sm:$0xff]  }
 0x885   :  { %5918 = vmatpush1.bf16.msra.mxu1 %v8987_v43  ;;  %6041 = vmatpush1.bf16.msra.mxu0 %v8990_v45  ;;  %v9052_v43 = vld [vmem:[#allocation27 + $0x7b4] ss:$28 sps:$4 sm:$0xff]   ;;  %v9047_v45 = vld [vmem:[#allocation27 + $0x7a8] ss:$28 sps:$4 sm:$0xff]  }
 0x886   :  { %5919 = vmatprep.subr.bf16.mxu1 %v8995_v47  ;;  %6042 = vmatprep.subr.bf16.mxu0 %v8998_v48  ;;  %v9055_v47 = vld [vmem:[#allocation27 + $0x7e4] ss:$28 sps:$4 sm:$0xff]   ;;  %v9058_v48 = vld [vmem:[#allocation27 + $0x7ec] ss:$28 sps:$4 sm:$0xff]  }
 0x889   :  { %v4025_v53 = vpop.f32.mrb[28].mxu0  ;;  %5920 = vmatpush1.bf16.msra.mxu1 %v8993_v49  ;;  %6043 = vmatpush1.bf16.msra.mxu0 %v8996_v50  ;;  %v9053_v49 = vld [vmem:[#allocation27 + $0x7e0] ss:$28 sps:$4 sm:$0xff]   ;;  %v9056_v50 = vld [vmem:[#allocation27 + $0x7e8] ss:$28 sps:$4 sm:$0xff]  }
 0x88a   :  { %v10686_v54 = vadd.f32 %v4025_v53, %v3986_v17  ;;  %v8176_v12 = vpop.f32.mrb[29].mxu0  ;;  %5921 = vmatprep.subr.bf16.mxu1 %v9001_v51  ;;  %6044 = vmatprep.subr.bf16.mxu0 %v9004_v52  ;;  %v9023_v17 = vld [vmem:[#allocation27 + $0x6c8] ss:$28 sps:$4 sm:$0xff]   ;;  %v9059_v52 = vld [vmem:[#allocation27 + $0x818] ss:$28 sps:$4 sm:$0xff]  }
 0x88b   :  { %v4028_v25 = vpop.f32.mrb[30].mxu0  ;;  %v9064_v51 = vld [vmem:[#allocation27 + $0x824] ss:$28 sps:$4 sm:$0xff]   ;;  %v9067_v12 = vld [vmem:[#allocation27 + $0x854] ss:$28 sps:$4 sm:$0xff]  }
 0x88c   :  { %v8177_v62 = vpop.f32.mrb[31].mxu0  ;;  %v4044_v21 = vmul.f32 1.442695, %v10686_v54  ;;  %v9062_v53 = vld [vmem:[#allocation27 + $0x820] ss:$28 sps:$4 sm:$0xff]   ;;  %vm4035_vm11 = vcmp.gt.f32.partialorder %v10686_v54, 0.0 }
 0x88d   :  { %5922 = vmatpush1.bf16.msra.mxu1 %v8999_v60  ;;  %6045 = vmatpush1.bf16.msra.mxu0 %v9002_v56  ;;  %v9070_v60 = vld [vmem:[#allocation27 + $0x85c] ss:$28 sps:$4 sm:$0xff]   ;;  %v9065_v25 = vld [vmem:[#allocation27 + $0x850] ss:$28 sps:$4 sm:$0xff]  }
 0x88e   :  { %5923 = vmatprep.subr.bf16.mxu1 %v9007_v57  ;;  %6046 = vmatprep.subr.bf16.mxu0 %v9010_v58  ;;  %9373 = vpow2.f32 %v4044_v21  ;;  %v9068_v57 = vld [vmem:[#allocation27 + $0x858] ss:$28 sps:$4 sm:$0xff]   ;;  %v9073_v58 = vld [vmem:[#allocation27 + $0x88c] ss:$28 sps:$4 sm:$0xff]   ;;  %v9118_v21 = vld [vmem:[#allocation27 + $0x4e4] ss:$28 sps:$4 sm:$0xff]  }
 0x88f   :  { %v9076_v62 = vld [vmem:[#allocation27 + $0x894] ss:$28 sps:$4 sm:$0xff]  }
 0x891   :  { %5924 = vmatpush1.bf16.msra.mxu1 %v9005_v27  ;;  %6047 = vmatpush1.bf16.msra.mxu0 %v9008_v63  ;;  %v9071_v63 = vld [vmem:[#allocation27 + $0x888] ss:$28 sps:$4 sm:$0xff]  }
 0x892   :  { %5925 = vmatprep.subr.bf16.mxu1 %v9013_v2  ;;  %6048 = vmatprep.subr.bf16.mxu0 %v9016_v3  ;;  %v9074_v2 = vld [vmem:[#allocation27 + $0x890] ss:$28 sps:$4 sm:$0xff]  }
 0x893   :  { %v9079_v3 = vld [vmem:[#allocation27 + $0x14] ss:$28 sps:$4 sm:$0xff]  }
 0x895   :  { %5926 = vmatpush1.bf16.msra.mxu1 %v9011_v4  ;;  %6049 = vmatpush1.bf16.msra.mxu0 %v9014_v5  ;;  %v9082_v4 = vld [vmem:[#allocation27 + $0x394] ss:$28 sps:$4 sm:$0xff]  }
 0x896   :  { %5927 = vmatprep.subr.bf16.mxu1 %v9019_v7  ;;  %6050 = vmatprep.subr.bf16.mxu0 %v9022_v8  ;;  %v9077_v7 = vld [vmem:[#allocation27 + $0x10] ss:$28 sps:$4 sm:$0xff]  }
 0x898   :  { %v9374_v56 = vpop.eup %9373 }
 0x899   :  { %5928 = vmatpush1.bf16.msra.mxu1 %v9017_v11  ;;  %6051 = vmatpush1.bf16.msra.mxu0 %v9020_v13  ;;  %v7474_v27 = vadd.f32 -1.0, %v9374_v56  ;;  %v9085_v11 = vld [vmem:[#allocation27 + $0x4c] ss:$28 sps:$4 sm:$0xff]   ;;  %v9139_v56 = vld [vmem:[#allocation27 + $0x244] ss:$28 sps:$4 sm:$0xff]  }
 0x89a   :  { %5929 = vmatprep.subr.bf16.mxu1 %v9025_v14  ;;  %6052 = vmatprep.subr.bf16.mxu0 %v9028_v15  ;;  %v9088_v13 = vld [vmem:[#allocation27 + $0x3cc] ss:$28 sps:$4 sm:$0xff]   ;;  %v9091_v15 = vld [vmem:[#allocation27 + $0x84] ss:$28 sps:$4 sm:$0xff]  }
 0x89b   :  { %v4055_v5 = vsel %vm4035_vm11, %v10686_v54, %v7474_v27  ;;  %v9083_v14 = vld [vmem:[#allocation27 + $0x48] ss:$28 sps:$4 sm:$0xff]   ;;  %v9148_v27 = vld [vmem:[#allocation27 + $0x5fc] ss:$28 sps:$4 sm:$0xff]  }
 0x89c   :  { %v10699_v8 = vpack.c.bf16 %v4055_v5, %v4055_v5  ;;  %v9086_v54 = vld [vmem:[#allocation27 + $0x3c8] ss:$28 sps:$4 sm:$0xff]   ;;  %v9149_v5 = vld [vmem:[#allocation27 + $0x2b0] ss:$28 sps:$4 sm:$0xff]  }
 0x89d   :  { %5930 = vmatpush1.bf16.msra.mxu1 %v9023_v17  ;;  %6053 = vmatpush1.bf16.msra.mxu0 %v9026_v19  ;;  %v9089_v17 = vld [vmem:[#allocation27 + $0x80] ss:$28 sps:$4 sm:$0xff]  }
 0x89e   :  { %5940 = vmatprep.subr.bf16.mxu1 %v9031_v20  ;;  %6063 = vmatprep.subr.bf16.mxu0 %v9034_v59  ;;  %v9092_v19 = vld [vmem:[#allocation27 + $0x400] ss:$28 sps:$4 sm:$0xff]  }
 0x89f   :  { %v9097_v20 = vld [vmem:[#allocation27 + $0xbc] ss:$28 sps:$4 sm:$0xff]  }
 0x8a0   :  { %5932 = vmatmul.mubr.bf16.vlgmr.msra.gmra.mrb[32].mxu1 %v10690_v26  ;;  %6055 = vmatmul.mubr.bf16.vlgmr.msra.gmra.mrb[32].mxu0 %v10690_v26  ;;  %v9100_v59 = vld [vmem:[#allocation27 + $0x43c] ss:$28 sps:$4 sm:$0xff]  }
 0x8a1   :  { %5941 = vmatpush1.bf16.msra.mxu1 %v9029_v24  ;;  %6064 = vmatpush1.bf16.msra.mxu0 %v9032_v55  ;;  %v9098_v24 = vld [vmem:[#allocation27 + $0x438] ss:$28 sps:$4 sm:$0xff]  }
 0x8a2   :  { %5942 = vmatprep.subr.bf16.mxu1 %v9037_v10  ;;  %6065 = vmatprep.subr.bf16.mxu0 %v9040_v1  ;;  %v9103_v55 = vld [vmem:[#allocation27 + $0xf4] ss:$28 sps:$4 sm:$0xff]  }
 0x8a3   :  { %5972 = vmatprep.mubr.bf16.mxu1 %v9985_v42  ;;  %6095 = vmatprep.mubr.bf16.mxu0 %v9985_v42  ;;  %v9106_v10 = vld [vmem:[#allocation27 + $0x474] ss:$28 sps:$4 sm:$0xff]  }
 0x8a4   :  { %v9101_v1 = vld [vmem:[#allocation27 + $0xf0] ss:$28 sps:$4 sm:$0xff]  }
 0x8a5   :  { %5943 = vmatpush1.bf16.msra.mxu1 %v9035_v28  ;;  %6066 = vmatpush1.bf16.msra.mxu0 %v9038_v29  ;;  %v9104_v28 = vld [vmem:[#allocation27 + $0x470] ss:$28 sps:$4 sm:$0xff]  }
 0x8a6   :  { %5944 = vmatprep.subr.bf16.mxu1 %v9043_v34  ;;  %6067 = vmatprep.subr.bf16.mxu0 %v9046_v35  ;;  %v9109_v29 = vld [vmem:[#allocation27 + $0x12c] ss:$28 sps:$4 sm:$0xff]  }
 0x8a7   :  { %v9112_v34 = vld [vmem:[#allocation27 + $0x4ac] ss:$28 sps:$4 sm:$0xff]  }
 0x8a8   :  { %v9107_v35 = vld [vmem:[#allocation27 + $0x128] ss:$28 sps:$4 sm:$0xff]  }
 0x8a9   :  { %5945 = vmatpush1.bf16.msra.mxu1 %v9041_v37  ;;  %6068 = vmatpush1.bf16.msra.mxu0 %v9044_v38  ;;  %v9110_v37 = vld [vmem:[#allocation27 + $0x4a8] ss:$28 sps:$4 sm:$0xff]  }
 0x8aa   :  { %5946 = vmatprep.subr.bf16.mxu1 %v9049_v40  ;;  %6069 = vmatprep.subr.bf16.mxu0 %v9052_v43  ;;  %v9115_v38 = vld [vmem:[#allocation27 + $0x164] ss:$28 sps:$4 sm:$0xff]  }
 0x8ab   :  { %v9113_v40 = vld [vmem:[#allocation27 + $0x160] ss:$28 sps:$4 sm:$0xff]  }
 0x8ac   :  { %v9116_v43 = vld [vmem:[#allocation27 + $0x4e0] ss:$28 sps:$4 sm:$0xff]  }
 0x8ad   :  { %5947 = vmatpush1.bf16.msra.mxu1 %v9047_v45  ;;  %6070 = vmatpush1.bf16.msra.mxu0 %v9050_v41  ;;  %v9121_v45 = vld [vmem:[#allocation27 + $0x19c] ss:$28 sps:$4 sm:$0xff]  }
 0x8ae   :  { %5948 = vmatprep.subr.bf16.mxu1 %v9055_v47  ;;  %6071 = vmatprep.subr.bf16.mxu0 %v9058_v48  ;;  %v9124_v41 = vld [vmem:[#allocation27 + $0x51c] ss:$28 sps:$4 sm:$0xff]  }
 0x8af   :  { %v9119_v47 = vld [vmem:[#allocation27 + $0x198] ss:$28 sps:$4 sm:$0xff]  }
 0x8b0   :  { %v9122_v48 = vld [vmem:[#allocation27 + $0x518] ss:$28 sps:$4 sm:$0xff]  }
 0x8b1   :  { %5949 = vmatpush1.bf16.msra.mxu1 %v9053_v49  ;;  %6072 = vmatpush1.bf16.msra.mxu0 %v9056_v50  ;;  %v9127_v49 = vld [vmem:[#allocation27 + $0x1d4] ss:$28 sps:$4 sm:$0xff]  }
 0x8b2   :  { %5950 = vmatprep.subr.bf16.mxu1 %v9061_v6  ;;  %6073 = vmatprep.subr.bf16.mxu0 %v9064_v51  ;;  %v9130_v50 = vld [vmem:[#allocation27 + $0x554] ss:$28 sps:$4 sm:$0xff]  }
 0x8b3   :  { %v9125_v6 = vld [vmem:[#allocation27 + $0x1d0] ss:$28 sps:$4 sm:$0xff]  }
 0x8b4   :  { %v9128_v51 = vld [vmem:[#allocation27 + $0x550] ss:$28 sps:$4 sm:$0xff]  }
 0x8b5   :  { %5951 = vmatpush1.bf16.msra.mxu1 %v9059_v52  ;;  %6074 = vmatpush1.bf16.msra.mxu0 %v9062_v53  ;;  %v9133_v52 = vld [vmem:[#allocation27 + $0x20c] ss:$28 sps:$4 sm:$0xff]  }
 0x8b6   :  { %5952 = vmatprep.subr.bf16.mxu1 %v9067_v12  ;;  %6075 = vmatprep.subr.bf16.mxu0 %v9070_v60  ;;  %v9136_v53 = vld [vmem:[#allocation27 + $0x58c] ss:$28 sps:$4 sm:$0xff]  }
 0x8b7   :  { %v9131_v12 = vld [vmem:[#allocation27 + $0x208] ss:$28 sps:$4 sm:$0xff]  }
 0x8b8   :  { %v9134_v60 = vld [vmem:[#allocation27 + $0x588] ss:$28 sps:$4 sm:$0xff]  }
 0x8b9   :  { %5953 = vmatpush1.bf16.msra.mxu1 %v9065_v25  ;;  %6076 = vmatpush1.bf16.msra.mxu0 %v9068_v57  ;;  %v9142_v25 = vld [vmem:[#allocation27 + $0x5c4] ss:$28 sps:$4 sm:$0xff]  }
 0x8ba   :  { %5954 = vmatprep.subr.bf16.mxu1 %v9073_v58  ;;  %6077 = vmatprep.subr.bf16.mxu0 %v9076_v62  ;;  %v9137_v57 = vld [vmem:[#allocation27 + $0x240] ss:$28 sps:$4 sm:$0xff]  }
 0x8bb   :  { %v9140_v58 = vld [vmem:[#allocation27 + $0x5c0] ss:$28 sps:$4 sm:$0xff]  }
 0x8bc   :  { %v9145_v62 = vld [vmem:[#allocation27 + $0x27c] ss:$28 sps:$4 sm:$0xff]  }
 0x8bd   :  { %5955 = vmatpush1.bf16.msra.mxu1 %v9071_v63  ;;  %6078 = vmatpush1.bf16.msra.mxu0 %v9074_v2  ;;  %v9143_v63 = vld [vmem:[#allocation27 + $0x278] ss:$28 sps:$4 sm:$0xff]  }
 0x8be   :  { %6104 = vmatprep.subr.bf16.mxu1 %v9079_v3  ;;  %6145 = vmatprep.subr.bf16.mxu0 %v9082_v4  ;;  %v9146_v2 = vld [vmem:[#allocation27 + $0x5f8] ss:$28 sps:$4 sm:$0xff]  }
 0x8bf   :  { %v9151_v3 = vld [vmem:[#allocation27 + $0x2b4] ss:$28 sps:$4 sm:$0xff]  }
 0x8c0   :  { %5973 = vmatmul.mubr.bf16.vlgmr.msra.gmra.mrb[32].mxu1 %v10699_v8  ;;  %6096 = vmatmul.mubr.bf16.vlgmr.msra.gmra.mrb[32].mxu0 %v10699_v8  ;;  %v9154_v4 = vld [vmem:[#allocation27 + $0x634] ss:$28 sps:$4 sm:$0xff]  }
 0x8c1   :  { %6105 = vmatpush1.bf16.msra.mxu1 %v9077_v7  ;;  %6136 = vmatprep.mubr.bf16.mxu1 %v10666_v39  ;;  %v9152_v7 = vld [vmem:[#allocation27 + $0x630] ss:$28 sps:$4 sm:$0xff]  }
 0x8c2   :  { %6146 = vmatpush1.bf16.msra.mxu0 %v9080_v9  ;;  %6177 = vmatprep.mubr.bf16.mxu0 %v10672_v46  ;;  %v9157_v9 = vld [vmem:[#allocation27 + $0x2ec] ss:$28 sps:$4 sm:$0xff]  }
 0x8c3   :  { %6106 = vmatprep.subr.bf16.mxu1 %v9085_v11  ;;  %6147 = vmatprep.subr.bf16.mxu0 %v9088_v13  ;;  %v9160_v11 = vld [vmem:[#allocation27 + $0x66c] ss:$28 sps:$4 sm:$0xff]  }
 0x8c4   :  { %v9155_v13 = vld [vmem:[#allocation27 + $0x2e8] ss:$28 sps:$4 sm:$0xff]  }
 0x8c5   :  { %6107 = vmatpush1.bf16.msra.mxu1 %v9083_v14  ;;  %v9158_v14 = vld [vmem:[#allocation27 + $0x668] ss:$28 sps:$4 sm:$0xff]  }
 0x8c6   :  { %6148 = vmatpush1.bf16.msra.mxu0 %v9086_v54  ;;  %6108 = vmatprep.subr.bf16.mxu1 %v9091_v15  ;;  %v9163_v54 = vld [vmem:[#allocation27 + $0x324] ss:$28 sps:$4 sm:$0xff]  }
 0x8c7   :  { %6149 = vmatprep.subr.bf16.mxu0 %v9094_v16  ;;  %v9166_v15 = vld [vmem:[#allocation27 + $0x6a4] ss:$28 sps:$4 sm:$0xff]  }
 0x8c8   :  { %v9161_v16 = vld [vmem:[#allocation27 + $0x320] ss:$28 sps:$4 sm:$0xff]  }
 0x8c9   :  { %6109 = vmatpush1.bf16.msra.mxu1 %v9089_v17  ;;  %v9164_v17 = vld [vmem:[#allocation27 + $0x6a0] ss:$28 sps:$4 sm:$0xff]  }
 0x8ca   :  { %6150 = vmatpush1.bf16.msra.mxu0 %v9092_v19  ;;  %6110 = vmatprep.subr.bf16.mxu1 %v9097_v20  ;;  %v9169_v19 = vld [vmem:[#allocation27 + $0x35c] ss:$28 sps:$4 sm:$0xff]  }
 0x8cb   :  { %6151 = vmatprep.subr.bf16.mxu0 %v9100_v59  ;;  %v9172_v20 = vld [vmem:[#allocation27 + $0x6dc] ss:$28 sps:$4 sm:$0xff]  }
 0x8cc   :  { %v9167_v59 = vld [vmem:[#allocation27 + $0x358] ss:$28 sps:$4 sm:$0xff]  }
 0x8cd   :  { %6111 = vmatpush1.bf16.msra.mxu1 %v9095_v23  ;;  %v9170_v23 = vld [vmem:[#allocation27 + $0x6d8] ss:$28 sps:$4 sm:$0xff]  }
 0x8ce   :  { %6152 = vmatpush1.bf16.msra.mxu0 %v9098_v24  ;;  %6112 = vmatprep.subr.bf16.mxu1 %v9103_v55  ;;  %v9175_v24 = vld [vmem:[#allocation27 + $0x714] ss:$28 sps:$4 sm:$0xff]  }
 0x8cf   :  { %6153 = vmatprep.subr.bf16.mxu0 %v9106_v10  ;;  %v9176_v55 = vld [vmem:[#allocation27 + $0x1d8] ss:$28 sps:$4 sm:$0xff]   ;;  %v9173_v10 = vld [vmem:[#allocation27 + $0x710] ss:$28 sps:$4 sm:$0xff]  }
 0x8d1   :  { %6113 = vmatpush1.bf16.msra.mxu1 %v9101_v1  ;;  %v9177_v1 = vld [vmem:[#allocation27 + $0x18] ss:$28 sps:$4 sm:$0xff]  }
 0x8d2   :  { %6154 = vmatpush1.bf16.msra.mxu0 %v9104_v28  ;;  %6114 = vmatprep.subr.bf16.mxu1 %v9109_v29  ;;  %v9180_v28 = vld [vmem:[#allocation27 + $0x74c] ss:$28 sps:$4 sm:$0xff]  }
 0x8d3   :  { %6155 = vmatprep.subr.bf16.mxu0 %v9112_v34  ;;  %v9181_v29 = vld [vmem:[#allocation27 + $0x210] ss:$28 sps:$4 sm:$0xff]   ;;  %v9178_v34 = vld [vmem:[#allocation27 + $0x748] ss:$28 sps:$4 sm:$0xff]  }
 0x8d5   :  { %6115 = vmatpush1.bf16.msra.mxu1 %v9107_v35  ;;  %v9182_v35 = vld [vmem:[#allocation27 + $0x50] ss:$28 sps:$4 sm:$0xff]  }
 0x8d6   :  { %6156 = vmatpush1.bf16.msra.mxu0 %v9110_v37  ;;  %6116 = vmatprep.subr.bf16.mxu1 %v9115_v38  ;;  %v9185_v37 = vld [vmem:[#allocation27 + $0x784] ss:$28 sps:$4 sm:$0xff]  }
 0x8d7   :  { %6157 = vmatprep.subr.bf16.mxu0 %v9118_v21  ;;  %v9186_v38 = vld [vmem:[#allocation27 + $0x248] ss:$28 sps:$4 sm:$0xff]   ;;  %v9183_v21 = vld [vmem:[#allocation27 + $0x780] ss:$28 sps:$4 sm:$0xff]  }
 0x8d9   :  { %6117 = vmatpush1.bf16.msra.mxu1 %v9113_v40  ;;  %v9187_v40 = vld [vmem:[#allocation27 + $0x88] ss:$28 sps:$4 sm:$0xff]  }
 0x8da   :  { %6158 = vmatpush1.bf16.msra.mxu0 %v9116_v43  ;;  %6118 = vmatprep.subr.bf16.mxu1 %v9121_v45  ;;  %v9190_v43 = vld [vmem:[#allocation27 + $0x7bc] ss:$28 sps:$4 sm:$0xff]  }
 0x8db   :  { %6159 = vmatprep.subr.bf16.mxu0 %v9124_v41  ;;  %v9191_v45 = vld [vmem:[#allocation27 + $0x280] ss:$28 sps:$4 sm:$0xff]   ;;  %v9188_v41 = vld [vmem:[#allocation27 + $0x7b8] ss:$28 sps:$4 sm:$0xff]  }
 0x8dd   :  { %6119 = vmatpush1.bf16.msra.mxu1 %v9119_v47  ;;  %v9195_v47 = vld [vmem:[#allocation27 + $0x7f4] ss:$28 sps:$4 sm:$0xff]  }
 0x8de   :  { %6160 = vmatpush1.bf16.msra.mxu0 %v9122_v48  ;;  %6120 = vmatprep.subr.bf16.mxu1 %v9127_v49  ;;  %v9196_v48 = vld [vmem:[#allocation27 + $0x2b8] ss:$28 sps:$4 sm:$0xff]   ;;  %v9193_v49 = vld [vmem:[#allocation27 + $0x7f0] ss:$28 sps:$4 sm:$0xff]  }
 0x8df   :  { %6161 = vmatprep.subr.bf16.mxu0 %v9130_v50  ;;  %v9197_v50 = vld [vmem:[#allocation27 + $0xf8] ss:$28 sps:$4 sm:$0xff]  }
 0x8e1   :  { %6121 = vmatpush1.bf16.msra.mxu1 %v9125_v6  ;;  %v9200_v6 = vld [vmem:[#allocation27 + $0x82c] ss:$28 sps:$4 sm:$0xff]  }
 0x8e2   :  { %6162 = vmatpush1.bf16.msra.mxu0 %v9128_v51  ;;  %6122 = vmatprep.subr.bf16.mxu1 %v9133_v52  ;;  %v9201_v51 = vld [vmem:[#allocation27 + $0x2f0] ss:$28 sps:$4 sm:$0xff]   ;;  %v9198_v52 = vld [vmem:[#allocation27 + $0x828] ss:$28 sps:$4 sm:$0xff]  }
 0x8e3   :  { %6163 = vmatprep.subr.bf16.mxu0 %v9136_v53  ;;  %v9202_v53 = vld [vmem:[#allocation27 + $0x130] ss:$28 sps:$4 sm:$0xff]  }
 0x8e5   :  { %6123 = vmatpush1.bf16.msra.mxu1 %v9131_v12  ;;  %v9205_v12 = vld [vmem:[#allocation27 + $0x864] ss:$28 sps:$4 sm:$0xff]  }
 0x8e6   :  { %6164 = vmatpush1.bf16.msra.mxu0 %v9134_v60  ;;  %6124 = vmatprep.subr.bf16.mxu1 %v9139_v56  ;;  %v9206_v60 = vld [vmem:[#allocation27 + $0x328] ss:$28 sps:$4 sm:$0xff]   ;;  %v9203_v56 = vld [vmem:[#allocation27 + $0x860] ss:$28 sps:$4 sm:$0xff]  }
 0x8e7   :  { %6165 = vmatprep.subr.bf16.mxu0 %v9142_v25  ;;  %v9207_v25 = vld [vmem:[#allocation27 + $0x168] ss:$28 sps:$4 sm:$0xff]  }
 0x8e9   :  { %6125 = vmatpush1.bf16.msra.mxu1 %v9137_v57  ;;  %v9210_v57 = vld [vmem:[#allocation27 + $0x89c] ss:$28 sps:$4 sm:$0xff]  }
 0x8ea   :  { %6166 = vmatpush1.bf16.msra.mxu0 %v9140_v58  ;;  %6126 = vmatprep.subr.bf16.mxu1 %v9145_v62  ;;  %v9211_v58 = vld [vmem:[#allocation27 + $0x360] ss:$28 sps:$4 sm:$0xff]   ;;  %v9208_v62 = vld [vmem:[#allocation27 + $0x898] ss:$28 sps:$4 sm:$0xff]  }
 0x8eb   :  { %6167 = vmatprep.subr.bf16.mxu0 %v9148_v27  ;;  %v9212_v27 = vld [vmem:[#allocation27 + $0x1a0] ss:$28 sps:$4 sm:$0xff]  }
 0x8ed   :  { %6127 = vmatpush1.bf16.msra.mxu1 %v9143_v63  ;;  %v9213_v63 = vld [vmem:[#allocation27 + $0x558] ss:$28 sps:$4 sm:$0xff]  }
 0x8ee   :  { %6168 = vmatpush1.bf16.msra.mxu0 %v9146_v2  ;;  %6128 = vmatprep.subr.bf16.mxu1 %v9151_v3  ;;  %v9214_v2 = vld [vmem:[#allocation27 + $0x398] ss:$28 sps:$4 sm:$0xff]  }
 0x8ef   :  { %6169 = vmatprep.subr.bf16.mxu0 %v9154_v4  ;;  %v9215_v3 = vld [vmem:[#allocation27 + $0x718] ss:$28 sps:$4 sm:$0xff]   ;;  %v9216_v4 = vld [vmem:[#allocation27 + $0x590] ss:$28 sps:$4 sm:$0xff]  }
 0x8f1   :  { %6129 = vmatpush1.bf16.msra.mxu1 %v9149_v5  ;;  %v9217_v5 = vld [vmem:[#allocation27 + $0x3d0] ss:$28 sps:$4 sm:$0xff]  }
 0x8f2   :  { %6170 = vmatpush1.bf16.msra.mxu0 %v9152_v7  ;;  %6130 = vmatprep.subr.bf16.mxu1 %v9157_v9  ;;  %v9218_v7 = vld [vmem:[#allocation27 + $0x750] ss:$28 sps:$4 sm:$0xff]   ;;  %v9219_v9 = vld [vmem:[#allocation27 + $0x5c8] ss:$28 sps:$4 sm:$0xff]  }
 0x8f3   :  { %6171 = vmatprep.subr.bf16.mxu0 %v9160_v11  ;;  %v9220_v11 = vld [vmem:[#allocation27 + $0x408] ss:$28 sps:$4 sm:$0xff]  }
 0x8f5   :  { %6131 = vmatpush1.bf16.msra.mxu1 %v9155_v13  ;;  %v9221_v13 = vld [vmem:[#allocation27 + $0x788] ss:$28 sps:$4 sm:$0xff]  }
 0x8f6   :  { %6172 = vmatpush1.bf16.msra.mxu0 %v9158_v14  ;;  %6132 = vmatprep.subr.bf16.mxu1 %v9163_v54  ;;  %v9222_v14 = vld [vmem:[#allocation27 + $0x600] ss:$28 sps:$4 sm:$0xff]   ;;  %v9225_v54 = vld [vmem:[#allocation27 + $0x638] ss:$28 sps:$4 sm:$0xff]  }
 0x8f7   :  { %6173 = vmatprep.subr.bf16.mxu0 %v9166_v15  ;;  %v9226_v15 = vld [vmem:[#allocation27 + $0x478] ss:$28 sps:$4 sm:$0xff]  }
 0x8f9   :  { %6133 = vmatpush1.bf16.msra.mxu1 %v9161_v16  ;;  %v9227_v16 = vld [vmem:[#allocation27 + $0x7f8] ss:$28 sps:$4 sm:$0xff]  }
 0x8fa   :  { %6174 = vmatpush1.bf16.msra.mxu0 %v9164_v17  ;;  %6134 = vmatprep.subr.bf16.mxu1 %v9169_v19  ;;  %v9228_v17 = vld [vmem:[#allocation27 + $0x670] ss:$28 sps:$4 sm:$0xff]  }
 0x8fb   :  { %6175 = vmatprep.subr.bf16.mxu0 %v9172_v20  ;;  %v9229_v19 = vld [vmem:[#allocation27 + $0x4b0] ss:$28 sps:$4 sm:$0xff]  }
 0x8fc   :  { %v9230_v20 = vld [vmem:[#allocation27 + $0x830] ss:$28 sps:$4 sm:$0xff]  }
 0x8fd   :  { %6135 = vmatpush1.bf16.msra.mxu1 %v9167_v59  ;;  %v9231_v59 = vld [vmem:[#allocation27 + $0x6a8] ss:$28 sps:$4 sm:$0xff]  }
 0x8fe   :  { %6176 = vmatpush1.bf16.msra.mxu0 %v9170_v23  ;;  %6186 = vmatprep.subr.bf16.mxu1 %v9175_v24  ;;  %v9232_v23 = vld [vmem:[#allocation27 + $0x4e8] ss:$28 sps:$4 sm:$0xff]  }
 0x8ff   :  { %7974 = vmatprep.subr.bf16.mxu0 %v9176_v55  ;;  %v9233_v24 = vld [vmem:[#allocation27 + $0x868] ss:$28 sps:$4 sm:$0xff]   ;;  %v9234_v55 = vld [vmem:[#allocation27 + $0x6e0] ss:$28 sps:$4 sm:$0xff]  }
 0x900   :  { %6137 = vmatmul.mubr.bf16.vlgmr.msra.gmra.mrb[36].mxu1 %v10668_v44 }
 0x901   :  { %6178 = vmatmul.mubr.bf16.vlgmr.msra.gmra.mrb[36].mxu0 %v10690_v26  ;;  %6187 = vmatpush1.bf16.msra.mxu1 %v9173_v10  ;;  %v9235_v10 = vld [vmem:[#allocation27 + $0x520] ss:$28 sps:$4 sm:$0xff]  }
 0x902   :  { %7975 = vmatpush3.bf16.msra.mxu0 %v9177_v1  ;;  %6259 = vmatprep.mubr.bf16.mxu0 %v10666_v39  ;;  %v9192_v39 = vld [vmem:[#allocation27 + $0xc0] ss:$28 sps:$4 sm:$0xff]  }
 0x903   :  { %6188 = vmatprep.subr.bf16.mxu1 %v9180_v28  ;;  %7976 = vmatprep.subr.bf16.mxu0 %v9181_v29  ;;  %v9236_v1 = vld [vmem:[#allocation27 + $0x8a0] ss:$28 sps:$4 sm:$0xff]   ;;  %v9239_v28 = vld [vmem:[#allocation30 + $0x4] ss:$8 sps:$4 sm:$0xff]   ;;  %v9237_v29 = vld [vmem:[#allocation30] ss:$8 sps:$4 sm:$0xff]  }
 0x904   :  { %6218 = vmatprep.mubr.bf16.mxu1 %v9985_v42 }
 0x905   :  { %6189 = vmatpush1.bf16.msra.mxu1 %v9178_v34  ;;  %v9242_v34 = vld [vmem:[#allocation30 + $0x14] ss:$8 sps:$4 sm:$0xff]  }
 0x906   :  { %7977 = vmatpush3.bf16.msra.mxu0 %v9182_v35  ;;  %6190 = vmatprep.subr.bf16.mxu1 %v9185_v37  ;;  %v9240_v35 = vld [vmem:[#allocation30 + $0x10] ss:$8 sps:$4 sm:$0xff]   ;;  %v9245_v37 = vld [vmem:[#allocation30 + $0x24] ss:$8 sps:$4 sm:$0xff]  }
 0x907   :  { %7978 = vmatprep.subr.bf16.mxu0 %v9186_v38  ;;  %v9243_v38 = vld [vmem:[#allocation30 + $0x20] ss:$8 sps:$4 sm:$0xff]  }
 0x909   :  { %6191 = vmatpush1.bf16.msra.mxu1 %v9183_v21  ;;  %v9248_v21 = vld [vmem:[#allocation30 + $0x34] ss:$8 sps:$4 sm:$0xff]  }
 0x90a   :  { %7979 = vmatpush3.bf16.msra.mxu0 %v9187_v40  ;;  %6192 = vmatprep.subr.bf16.mxu1 %v9190_v43  ;;  %v9246_v40 = vld [vmem:[#allocation30 + $0x30] ss:$8 sps:$4 sm:$0xff]   ;;  %v9251_v43 = vld [vmem:[#allocation30 + $0x44] ss:$8 sps:$4 sm:$0xff]  }
 0x90b   :  { %7980 = vmatprep.subr.bf16.mxu0 %v9191_v45  ;;  %v9249_v45 = vld [vmem:[#allocation30 + $0x40] ss:$8 sps:$4 sm:$0xff]  }
 0x90d   :  { %6193 = vmatpush1.bf16.msra.mxu1 %v9188_v41  ;;  %v9254_v41 = vld [vmem:[#allocation30 + $0x54] ss:$8 sps:$4 sm:$0xff]  }
 0x90e   :  { %7981 = vmatpush3.bf16.msra.mxu0 %v9192_v39  ;;  %6194 = vmatprep.subr.bf16.mxu1 %v9195_v47  ;;  %v9255_v39 = vld [vmem:[#allocation30 + $0x60] ss:$8 sps:$4 sm:$0xff]   ;;  %v9260_v47 = vld [vmem:[#allocation30 + $0x74] ss:$8 sps:$4 sm:$0xff]  }
 0x90f   :  { %7982 = vmatprep.subr.bf16.mxu0 %v9196_v48  ;;  %v9258_v48 = vld [vmem:[#allocation30 + $0x70] ss:$8 sps:$4 sm:$0xff]  }
 0x911   :  { %6195 = vmatpush1.bf16.msra.mxu1 %v9193_v49  ;;  %v9263_v49 = vld [vmem:[#allocation30 + $0x84] ss:$8 sps:$4 sm:$0xff]  }
 0x912   :  { %7983 = vmatpush3.bf16.msra.mxu0 %v9197_v50  ;;  %6196 = vmatprep.subr.bf16.mxu1 %v9200_v6  ;;  %v9261_v50 = vld [vmem:[#allocation30 + $0x80] ss:$8 sps:$4 sm:$0xff]   ;;  %v9266_v6 = vld [vmem:[#allocation30 + $0x94] ss:$8 sps:$4 sm:$0xff]  }
 0x913   :  { %7984 = vmatprep.subr.bf16.mxu0 %v9201_v51  ;;  %v9264_v51 = vld [vmem:[#allocation30 + $0x90] ss:$8 sps:$4 sm:$0xff]  }
 0x915   :  { %6197 = vmatpush1.bf16.msra.mxu1 %v9198_v52  ;;  %v9269_v52 = vld [vmem:[#allocation30 + $0xa4] ss:$8 sps:$4 sm:$0xff]  }
 0x916   :  { %7985 = vmatpush3.bf16.msra.mxu0 %v9202_v53  ;;  %6198 = vmatprep.subr.bf16.mxu1 %v9205_v12  ;;  %v9267_v53 = vld [vmem:[#allocation30 + $0xa0] ss:$8 sps:$4 sm:$0xff]   ;;  %v9272_v12 = vld [vmem:[#allocation30 + $0xb4] ss:$8 sps:$4 sm:$0xff]  }
 0x917   :  { %7986 = vmatprep.subr.bf16.mxu0 %v9206_v60  ;;  %v9270_v60 = vld [vmem:[#allocation30 + $0xb0] ss:$8 sps:$4 sm:$0xff]  }
 0x919   :  { %6199 = vmatpush1.bf16.msra.mxu1 %v9203_v56  ;;  %v9275_v56 = vld [vmem:[#allocation30 + $0xc4] ss:$8 sps:$4 sm:$0xff]  }
 0x91a   :  { %7987 = vmatpush3.bf16.msra.mxu0 %v9207_v25  ;;  %6200 = vmatprep.subr.bf16.mxu1 %v9210_v57  ;;  %v9273_v25 = vld [vmem:[#allocation30 + $0xc0] ss:$8 sps:$4 sm:$0xff]   ;;  %v9278_v57 = vld [vmem:[#allocation30 + $0xd4] ss:$8 sps:$4 sm:$0xff]  }
 0x91b   :  { %7988 = vmatprep.subr.bf16.mxu0 %v9211_v58  ;;  %v9276_v58 = vld [vmem:[#allocation30 + $0xd0] ss:$8 sps:$4 sm:$0xff]  }
 0x91d   :  { %6201 = vmatpush1.bf16.msra.mxu1 %v9208_v62  ;;  %v9281_v62 = vld [vmem:[#allocation30 + $0xe4] ss:$8 sps:$4 sm:$0xff]  }
 0x91e   :  { %7989 = vmatpush3.bf16.msra.mxu0 %v9212_v27  ;;  %7996 = vmatprep.subr.bf16.mxu1 %v9213_v63  ;;  %v9279_v27 = vld [vmem:[#allocation30 + $0xe0] ss:$8 sps:$4 sm:$0xff]   ;;  %v9284_v63 = vld [vmem:[#allocation30 + $0xf4] ss:$8 sps:$4 sm:$0xff]  }
 0x91f   :  { %8178 = vmatprep.subr.bf16.mxu0 %v9983_v0 }
 0x920   :  { %6219 = vmatmul.mubr.bf16.vlgmr.msra.gmra.mrb[40].mxu1 %v10699_v8 }
 0x921   :  { %6260 = vmatmul.mubr.bf16.vlgmr.msra.gmra.mrb[40].mxu0 %v10668_v44  ;;  %7997 = vmatpush3.bf16.msra.mxu1 %v9214_v2  ;;  %v9223_v44 = vld [vmem:[#allocation27 + $0x440] ss:$28 sps:$4 sm:$0xff]  }
 0x922   :  { %6299 = vmatprep.mubr.bf16.mxu1 %v10672_v46  ;;  %8179 = vmatpush3.bf16.msra.mxu0 %v9215_v3  ;;  %v9224_v46 = vld [vmem:[#allocation27 + $0x7c0] ss:$28 sps:$4 sm:$0xff]   ;;  %v9287_v3 = vld [vmem:[#allocation30 + $0x104] ss:$8 sps:$4 sm:$0xff]  }
 0x923   :  { %7998 = vmatprep.subr.bf16.mxu1 %v9216_v4  ;;  %8180 = vmatprep.subr.bf16.mxu0 %v9983_v0  ;;  %v9282_v2 = vld [vmem:[#allocation30 + $0xf0] ss:$8 sps:$4 sm:$0xff]  }
 0x924   :  { %8194 = vmatprep.mubr.msk.bf16.mxu0 %vm9984_vm0, %v9983_v0  ;;  %v10724_v4 = vld [vmem:[#allocation28] sm:$0xff] }
 0x925   :  { %7999 = vmatpush3.bf16.msra.mxu1 %v9217_v5  ;;  %v4386_v5 = vrot.slane %v10724_v4, %v10533_v32 }
 0x926   :  { %8181 = vmatpush3.bf16.msra.mxu0 %v9218_v7  ;;  %8000 = vmatprep.subr.bf16.mxu1 %v9219_v9  ;;  %v4390_v7 = vrot.slane %v10724_v4, %v10536_v36 }
 0x927   :  { %8182 = vmatprep.subr.bf16.mxu0 %v9983_v0 }
 0x929   :  { %8001 = vmatpush3.bf16.msra.mxu1 %v9220_v11 }
 0x92a   :  { %8183 = vmatpush3.bf16.msra.mxu0 %v9221_v13  ;;  %8002 = vmatprep.subr.bf16.mxu1 %v9222_v14 }
 0x92b   :  { %8184 = vmatprep.subr.bf16.mxu0 %v9983_v0 }
 0x92d   :  { %8003 = vmatpush3.bf16.msra.mxu1 %v9223_v44 }
 0x92e   :  { %8185 = vmatpush3.bf16.msra.mxu0 %v9224_v46  ;;  %8004 = vmatprep.subr.bf16.mxu1 %v9225_v54 }
 0x92f   :  { %8186 = vmatprep.subr.bf16.mxu0 %v9983_v0 }
 0x931   :  { %8005 = vmatpush3.bf16.msra.mxu1 %v9226_v15 }
 0x932   :  { %8187 = vmatpush3.bf16.msra.mxu0 %v9227_v16  ;;  %8006 = vmatprep.subr.bf16.mxu1 %v9228_v17 }
 0x933   :  { %8188 = vmatprep.subr.bf16.mxu0 %v9983_v0 }
 0x935   :  { %8007 = vmatpush3.bf16.msra.mxu1 %v9229_v19 }
 0x936   :  { %8189 = vmatpush3.bf16.msra.mxu0 %v9230_v20  ;;  %8008 = vmatprep.subr.bf16.mxu1 %v9231_v59  ;;  %v9285_v59 = vld [vmem:[#allocation30 + $0x100] ss:$8 sps:$4 sm:$0xff]  }
 0x937   :  { %8190 = vmatprep.subr.bf16.mxu0 %v9983_v0 }
 0x939   :  { %8009 = vmatpush3.bf16.msra.mxu1 %v9232_v23 }
 0x93a   :  { %8191 = vmatpush3.bf16.msra.mxu0 %v9233_v24  ;;  %8010 = vmatprep.subr.bf16.mxu1 %v9234_v55  ;;  %v9290_v24 = vld [vmem:[#allocation30 + $0x114] ss:$8 sps:$4 sm:$0xff]   ;;  %v9288_v55 = vld [vmem:[#allocation30 + $0x110] ss:$8 sps:$4 sm:$0xff]  }
 0x93b   :  { %8192 = vmatprep.subr.bf16.mxu0 %v9983_v0 }
 0x93d   :  { %8011 = vmatpush3.bf16.msra.mxu1 %v9235_v10  ;;  %v9309_v10 = vld [vmem:[#allocation33 + $0x40] sm:$0xff]  }
 0x93e   :  { %8193 = vmatpush3.bf16.msra.mxu0 %v9236_v1  ;;  %6655 = vmatprep.subr.bf16.mxu1 %v9239_v28  ;;  %v9310_v1 = vld [vmem:[#allocation33] sm:$0xff]   ;;  %v9311_v28 = vld [vmem:[#allocation33 + $0x48] sm:$0xff]  }
 0x93f   :  { %8027 = vmatprep.subr.bf16.mxu0 %v9309_v10 }
 0x940   :  { %6300 = vmatmul.mubr.bf16.vlgmr.msra.gmra.mrb[44].mxu1 %v10690_v26  ;;  %v9252_v26 = vld [vmem:[#allocation30 + $0x50] ss:$8 sps:$4 sm:$0xff]  }
 0x941   :  { %8195 = vmatmul.mubr.bf16.vlgmr.msra.gmra.mrb[44].mxu0 %v10699_v8  ;;  %6656 = vmatpush1.bf16.msra.mxu1 %v9237_v29  ;;  %v9257_v8 = vld [vmem:[#allocation30 + $0x64] ss:$8 sps:$4 sm:$0xff]  }
 0x942   :  { %6657 = vmatprep.subr.bf16.mxu1 %v9242_v34  ;;  %v9293_v29 = vld [vmem:[#allocation30 + $0x124] ss:$8 sps:$4 sm:$0xff]   ;;  %8028 = vmatpush3.bf16.msra.mxu0 %v9310_v1 }
 0x943   :  { %v9312_v34 = vld [vmem:[#allocation33 + $0x8] sm:$0xff]   ;;  %8029 = vmatprep.subr.bf16.mxu0 %v9311_v28 }
 0x945   :  { %6658 = vmatpush1.bf16.msra.mxu1 %v9240_v35  ;;  %v9291_v35 = vld [vmem:[#allocation30 + $0x120] ss:$8 sps:$4 sm:$0xff]  }
 0x946   :  { %6659 = vmatprep.subr.bf16.mxu1 %v9245_v37  ;;  %v9313_v37 = vld [vmem:[#allocation33 + $0x50] sm:$0xff]   ;;  %8030 = vmatpush3.bf16.msra.mxu0 %v9312_v34 }
 0x947   :  { %8031 = vmatprep.subr.bf16.mxu0 %v9313_v37 }
 0x949   :  { %6660 = vmatpush1.bf16.msra.mxu1 %v9243_v38  ;;  %v9296_v38 = vld [vmem:[#allocation30 + $0x134] ss:$8 sps:$4 sm:$0xff]  }
 0x94a   :  { %6661 = vmatprep.subr.bf16.mxu1 %v9248_v21 }
 0x94d   :  { %6662 = vmatpush1.bf16.msra.mxu1 %v9246_v40 }
 0x94e   :  { %6663 = vmatprep.subr.bf16.mxu1 %v9251_v43  ;;  %v9297_v43 = vld [vmem:[#allocation30 + $0x140] ss:$8 sps:$4 sm:$0xff]  }
 0x951   :  { %6664 = vmatpush1.bf16.msra.mxu1 %v9249_v45  ;;  %v9302_v45 = vld [vmem:[#allocation30 + $0x154] ss:$8 sps:$4 sm:$0xff]  }
 0x952   :  { %6665 = vmatprep.subr.bf16.mxu1 %v9254_v41  ;;  %v9300_v41 = vld [vmem:[#allocation30 + $0x150] ss:$8 sps:$4 sm:$0xff]  }
 0x955   :  { %6666 = vmatpush1.bf16.msra.mxu1 %v9252_v26  ;;  %v9305_v26 = vld [vmem:[#allocation30 + $0x164] ss:$8 sps:$4 sm:$0xff]  }
 0x956   :  { %6667 = vmatprep.subr.bf16.mxu1 %v9257_v8  ;;  %v9303_v8 = vld [vmem:[#allocation30 + $0x160] ss:$8 sps:$4 sm:$0xff]  }
 0x959   :  { %6668 = vmatpush1.bf16.msra.mxu1 %v9255_v39  ;;  %v9308_v39 = vld [vmem:[#allocation30 + $0x174] ss:$8 sps:$4 sm:$0xff]  }
 0x95a   :  { %6669 = vmatprep.subr.bf16.mxu1 %v9260_v47 }
 0x95d   :  { %6670 = vmatpush1.bf16.msra.mxu1 %v9258_v48  ;;  %v9306_v48 = vld [vmem:[#allocation30 + $0x170] ss:$8 sps:$4 sm:$0xff]  }
 0x95e   :  { %6671 = vmatprep.subr.bf16.mxu1 %v9263_v49 }
 0x961   :  { %6672 = vmatpush1.bf16.msra.mxu1 %v9261_v50 }
 0x962   :  { %6673 = vmatprep.subr.bf16.mxu1 %v9266_v6  ;;  %v4394_v6 = vrot.slane %v10724_v4, %v10543_v61 }
 0x965   :  { %6674 = vmatpush1.bf16.msra.mxu1 %v9264_v51  ;;  %v4398_v51 = vrot.slane %v10724_v4, %v10598_v22 }
 0x966   :  { %6675 = vmatprep.subr.bf16.mxu1 %v9269_v52 }
 0x969   :  { %6676 = vmatpush1.bf16.msra.mxu1 %v9267_v53 }
 0x96a   :  { %6677 = vmatprep.subr.bf16.mxu1 %v9272_v12  ;;  %v4405_v12 = vsub.s32 5, %v10530_v31 }
 0x96d   :  { %6678 = vmatpush1.bf16.msra.mxu1 %v9270_v60 }
 0x96e   :  { %6679 = vmatprep.subr.bf16.mxu1 %v9275_v56 }
 0x971   :  { %6680 = vmatpush1.bf16.msra.mxu1 %v9273_v25  ;;  %v4406_v25 = vrot.slane %v10724_v4, %v4405_v12 }
 0x972   :  { %6681 = vmatprep.subr.bf16.mxu1 %v9278_v57 }
 0x975   :  { %6682 = vmatpush1.bf16.msra.mxu1 %v9276_v58 }
 0x976   :  { %6683 = vmatprep.subr.bf16.mxu1 %v9281_v62 }
 0x979   :  { %6684 = vmatpush1.bf16.msra.mxu1 %v9279_v27 }
 0x97a   :  { %6685 = vmatprep.subr.bf16.mxu1 %v9284_v63 }
 0x97d   :  { %6686 = vmatpush1.bf16.msra.mxu1 %v9282_v2 }
 0x97e   :  { %6696 = vmatprep.subr.bf16.mxu1 %v9287_v3 }
 0x993   :  { %v5974_v9 = vpop.f32.mrb[32].mxu1  ;;  %v10730_v11 = vpop.f32.mrb[32].mxu0 }
 0x994   :  { %v8230_v13 = vadd.f32 %v5974_v9, %v4386_v5  ;;  %v5976_v14 = vpop.f32.mrb[33].mxu1  ;;  %v10732_v44 = vpop.f32.mrb[33].mxu0  ;;  %v8232_v52 = vadd.f32 %v10730_v11, %v4394_v6 }
 0x995   :  { %v8231_v46 = vadd.f32 %v5976_v14, %v4390_v7  ;;  %v5978_v54 = vpop.f32.mrb[34].mxu1  ;;  %v6101_v15 = vpop.f32.mrb[34].mxu0  ;;  %v8233_v53 = vadd.f32 %v10732_v44, %v4398_v51 }
 0x996   :  { %v6347_v16 = vsub.f32 0.0, %v8230_v13  ;;  %v5979_v17 = vpop.f32.mrb[35].mxu1  ;;  %v6102_v19 = vpop.f32.mrb[35].mxu0  ;;  %v7041_v60 = vsub.f32 0.0, %v8232_v52  ;;  %v9319_v52 = vld [vmem:[#allocation33 + $0x68] sm:$0xff]  }
 0x997   :  { %v6353_v20 = vpack.c.bf16 %v8231_v46, %v8231_v46  ;;  %v7042_v56 = vsub.f32 0.0, %v8233_v53  ;;  %v9393_v19 = vld [vmem:[%s10841_s13] sm:$0xff] }
 0x998   :  { %v6348_v23 = vmul.f32 1.442695, %v6347_v16  ;;  %v7043_v57 = vmul.f32 1.442695, %v7041_v60  ;;  %v9320_v60 = vld [vmem:[#allocation33 + $0x28] sm:$0xff]  }
 0x999   :  { %6687 = vmatprep.mubr.bf16.mxu1 %v6353_v20  ;;  %v7045_v58 = vmul.f32 1.442695, %v7042_v56  ;;  %v9321_v56 = vld [vmem:[#allocation33 + $0x70] sm:$0xff]  }
 0x99a   :  { %9375 = vpow2.f32 %v6348_v23  ;;  %6688 = vmatmul.mubr.bf16.vlgmr.msra.gmra.mrb[48].mxu1 %v10495_v33  ;;  %v9294_v33 = vld [vmem:[#allocation30 + $0x130] ss:$8 sps:$4 sm:$0xff]  }
 0x99b   :  { %6697 = vmatpush1.bf16.msra.mxu1 %v9285_v59  ;;  %6728 = vmatprep.mubr.bf16.mxu1 %v9985_v42  ;;  %v9299_v42 = vld [vmem:[#allocation30 + $0x144] ss:$8 sps:$4 sm:$0xff]  }
 0x99c   :  { %6698 = vmatprep.subr.bf16.mxu1 %v9290_v24 }
 0x99f   :  { %6699 = vmatpush1.bf16.msra.mxu1 %v9288_v55  ;;  %v9394_v55 = vld [vmem:[%s10841_s13 + $0x8] sm:$0xff] }
 0x9a0   :  { %6700 = vmatprep.subr.bf16.mxu1 %v9293_v29 }
 0x9a3   :  { %6701 = vmatpush1.bf16.msra.mxu1 %v9291_v35 }
 0x9a4   :  { %v9376_v21 = vpop.eup %9375  ;;  %6702 = vmatprep.subr.bf16.mxu1 %v9296_v38 }
 0x9a5   :  { %v6350_v40 = vadd.f32 1.0, %v9376_v21  ;;  %v9314_v21 = vld [vmem:[#allocation33 + $0x10] sm:$0xff]  }
 0x9a6   :  { %8032 = vmatpush3.bf16.msra.mxu0 %v9314_v21 }
 0x9a7   :  { %9377 = vrcp.f32 %v6350_v40  ;;  %6703 = vmatpush1.bf16.msra.mxu1 %v9294_v33  ;;  %v9315_v40 = vld [vmem:[#allocation33 + $0x58] sm:$0xff]  }
 0x9a8   :  { %6704 = vmatprep.subr.bf16.mxu1 %v9299_v42  ;;  %9379 = vpow2.f32 %v7043_v57  ;;  %v4409_v42 = vsub.s32 6, %v10530_v31  ;;  %8033 = vmatprep.subr.bf16.mxu0 %v9315_v40  ;;  %v9324_v57 = vld [vmem:[#allocation33 + $0x38] sm:$0xff]  }
 0x9a9   :  { %9381 = vpow2.f32 %v7045_v58  ;;  %v6403_v58 = vld [vmem:[#allocation31] sm:$0x3] }
 0x9ab   :  { %6705 = vmatpush1.bf16.msra.mxu1 %v9297_v43  ;;  %v9316_v43 = vld [vmem:[#allocation33 + $0x18] sm:$0xff]  }
 0x9ac   :  { %6706 = vmatprep.subr.bf16.mxu1 %v9302_v45  ;;  %v4410_v45 = vrot.slane %v10724_v4, %v4409_v42  ;;  %8034 = vmatpush3.bf16.msra.mxu0 %v9316_v43  ;;  %v7823_v42 = vld [vmem:[#allocation37] ss:$0 sm:$0xff] }
 0x9af   :  { %6707 = vmatpush1.bf16.msra.mxu1 %v9300_v41  ;;  %v9317_v41 = vld [vmem:[#allocation33 + $0x60] sm:$0xff]  }
 0x9b0   :  { %6708 = vmatprep.subr.bf16.mxu1 %v9305_v26  ;;  %8035 = vmatprep.subr.bf16.mxu0 %v9317_v41 }
 0x9b1   :  { %v9378_v47 = vpop.eup %9377 }
 0x9b2   :  { %v6352_v49 = vmul.f32 %v9378_v47, %v10493_v30  ;;  %v4402_v30 = vrot.slane %v10724_v4, %v10626_v18  ;;  %v9380_v14 = vpop.eup %9379 }
 0x9b3   :  { %6709 = vmatpush1.bf16.msra.mxu1 %v9303_v8  ;;  %v9382_v18 = vpop.eup %9381  ;;  %v7047_v44 = vadd.f32 1.0, %v9380_v14  ;;  %v9318_v8 = vld [vmem:[#allocation33 + $0x20] sm:$0xff]  }
 0x9b4   :  { %6710 = vmatprep.subr.bf16.mxu1 %v9308_v39  ;;  %v6354_v50 = vpack.c.bf16 %v6352_v49, %v6352_v49  ;;  %v7048_v46 = vadd.f32 1.0, %v9382_v18  ;;  %8036 = vmatpush3.bf16.msra.mxu0 %v9318_v8 }
 0x9b5   :  { %9383 = vrcp.f32 %v7047_v44  ;;  %8037 = vmatprep.subr.bf16.mxu0 %v9319_v52 }
 0x9b6   :  { %9385 = vrcp.f32 %v7048_v46 }
 0x9b7   :  { %6711 = vmatpush1.bf16.msra.mxu1 %v9306_v48 }
 0x9b8   :  { %8038 = vmatpush3.bf16.msra.mxu0 %v9320_v60 }
 0x9b9   :  { %8039 = vmatprep.subr.bf16.mxu0 %v9321_v56 }
 0x9ba   :  { %6729 = vmatmul.mubr.bf16.vlgmr.msra.gmra.mrb[48].mxu1 %v6354_v50 }
 0x9bf   :  { %v9384_v54 = vpop.eup %9383 }
 0x9c0   :  { %v9386_v15 = vpop.eup %9385  ;;  %v7051_v20 = vmul.f32 %v9393_v19, %v9384_v54  ;;  %v9329_v19 = vld [vmem:[#allocation36 + $0x20] sm:$0xff]  }
 0x9c1   :  { %v7052_v10 = vmul.f32 %v9394_v55, %v9386_v15  ;;  %v9326_v15 = vld [vmem:[#allocation36 + $0x8] sm:$0xff]   ;;  %v7805_v55 = vld [vmem:[#allocation34] ss:$0 sm:$0xff] }
 0x9d3   :  { %v6138_v62 = vpop.f32.mrb[36].mxu1 }
 0x9d4   :  { %v6139_v61 = vadd.f32 %v6138_v62, %v4402_v30  ;;  %v6179_v27 = vpop.f32.mrb[36].mxu0  ;;  %v6140_v63 = vpop.f32.mrb[37].mxu1  ;;  %v9322_v30 = vld [vmem:[#allocation33 + $0x30] sm:$0xff]   ;;  %v6408_v62 = vrot.slane %v6403_v58, %v10533_v32 }
 0x9d5   :  { %v6141_v22 = vadd.f32 %v6140_v63, %v4406_v25  ;;  %v6181_v2 = vpop.f32.mrb[37].mxu0  ;;  %v6142_v3 = vpop.f32.mrb[38].mxu1  ;;  %8040 = vmatpush3.bf16.msra.mxu0 %v9322_v30  ;;  %v9323_v25 = vld [vmem:[#allocation33 + $0x78] sm:$0xff]  }
 0x9d6   :  { %v6180_v5 = vadd.f32 %v6179_v27, %v6139_v61  ;;  %v6183_v7 = vpop.f32.mrb[38].mxu0  ;;  %v6143_v9 = vpop.f32.mrb[39].mxu1  ;;  %8041 = vmatprep.subr.bf16.mxu0 %v9323_v25  ;;  %v6412_v61 = vrot.slane %v6403_v58, %v10536_v36  ;;  %v9325_v36 = vld [vmem:[#allocation36] sm:$0xff]  }
 0x9d7   :  { %v6182_v11 = vadd.f32 %v6181_v2, %v6141_v22  ;;  %v6184_v13 = vpop.f32.mrb[39].mxu0 }
 0x9d9   :  { %8042 = vmatpush3.bf16.msra.mxu0 %v9324_v57 }
 0x9da   :  { %8198 = vmatprep.subr.bf16.mxu0 %v9983_v0 }
 0x9f3   :  { %v6220_v16 = vpop.f32.mrb[40].mxu1 }
 0x9f4   :  { %v6221_v17 = vadd.f32 %v6220_v16, %v6180_v5  ;;  %v7990_v59 = vpop.f32.mrb[40].mxu0  ;;  %v6222_v23 = vpop.f32.mrb[41].mxu1  ;;  %v9327_v16 = vld [vmem:[#allocation36 + $0x10] sm:$0xff]  }
 0x9f5   :  { %v6223_v24 = vadd.f32 %v6222_v23, %v6182_v11  ;;  %v7991_v1 = vpop.f32.mrb[41].mxu0  ;;  %v6224_v28 = vpop.f32.mrb[42].mxu1  ;;  %v9332_v23 = vld [vmem:[#allocation36 + $0x38] sm:$0xff]  }
 0x9f6   :  { %v7053_v29 = vadd.f32 %v7051_v20, %v6221_v17  ;;  %v7992_v34 = vadd.f32 %v7991_v1, %v7990_v59  ;;  %v7993_v35 = vpop.f32.mrb[42].mxu0  ;;  %v6225_v37 = vpop.f32.mrb[43].mxu1  ;;  %v9328_v17 = vld [vmem:[#allocation36 + $0x18] sm:$0xff]   ;;  %v9330_v20 = vld [vmem:[#allocation36 + $0x28] sm:$0xff]   ;;  %v9331_v59 = vld [vmem:[#allocation36 + $0x30] sm:$0xff]  }
 0x9f7   :  { %v7054_v38 = vadd.f32 %v7052_v10, %v6223_v24  ;;  %v7994_v33 = vpop.f32.mrb[43].mxu0 }
 0x9f8   :  { %7056 = vst [vmem:[%s10844_s3 + $0x8] sm:$0xff] %v7053_v29  ;;  %v6262_v48 = vadd.f32 %v7992_v34, %v4410_v45 }
 0x9f9   :  { %7057 = vst [vmem:[%s10844_s3 + $0x10] sm:$0xff] %v7054_v38 }
 0xa13   :  { %v8012_v26 = vpop.f32.mrb[44].mxu1 }
 0xa14   :  { %v6341_v39 = vpop.f32.mrb[44].mxu0  ;;  %v8013_v47 = vpop.f32.mrb[45].mxu1 }
 0xa15   :  { %v8014_v49 = vadd.f32 %v8013_v47, %v8012_v26  ;;  %v8196_v50 = vpop.f32.mrb[45].mxu0  ;;  %v8015_v6 = vpop.f32.mrb[46].mxu1 }
 0xa16   :  { %v6344_v51 = vpop.f32.mrb[46].mxu0  ;;  %v8016_v31 = vpop.f32.mrb[47].mxu1 }
 0xa17   :  { %v6302_v53 = vadd.f32 %v8014_v49, %v6262_v48  ;;  %v8197_v12 = vpop.f32.mrb[47].mxu0 }
 0xa19   :  { %v6342_v4 = vadd.f32 %v6341_v39, %v6302_v53 }
 0xa1b   :  { %7058 = vst [vmem:[%s10844_s3 + $0x18] sm:$0xff] %v6342_v4 }
 0xa8d   :  { %v6730_v27 = vpop.f32.mrb[48].mxu1 }
 0xa8e   :  { %v8234_v63 = vadd.f32 %v6730_v27, %v6408_v62  ;;  %v6732_v22 = vpop.f32.mrb[49].mxu1 }
 0xa8f   :  { %v8235_v2 = vadd.f32 %v6732_v22, %v6412_v61  ;;  %v6734_v3 = vpop.f32.mrb[50].mxu1 }
 0xa90   :  { %v6739_v5 = vmul.f32 1.442695, %v8234_v63  ;;  %v6735_v7 = vpop.f32.mrb[51].mxu1  ;;  %vm6737_vm12 = vcmp.gt.f32.partialorder %v8234_v63, 0.0 }
 0xa91   :  { %v6741_v9 = vmul.f32 1.442695, %v8235_v2  ;;  %vm6738_vm13 = vcmp.gt.f32.partialorder %v8235_v2, 0.0 }
 0xa92   :  { %9387 = vpow2.f32 %v6739_v5 }
 0xa93   :  { %9389 = vpow2.f32 %v6741_v9 }
 0xa9c   :  { %v9388_v11 = vpop.eup %9387 }
 0xa9d   :  { %v9390_v13 = vpop.eup %9389  ;;  %v7803_v14 = vadd.f32 -1.0, %v9388_v11 }
 0xa9e   :  { %v7804_v18 = vadd.f32 -1.0, %v9390_v13 }
 0xa9f   :  { %v6745_v44 = vsel %vm6737_vm12, %v8234_v63, %v7803_v14 }
 0xaa0   :  { %v6746_v32 = vsel %vm6738_vm13, %v8235_v2, %v7804_v18  ;;  %v6747_v54 = vpack.c.bf16 %v6745_v44, %v6745_v44 }
 0xaa1   :  { %v6748_v46 = vpack.c.bf16 %v6746_v32, %v6746_v32 }
 0xaa3   :  { %6916 = vmatprep.mubr.bf16.mxu0 %v6748_v46 }
 0xaa4   :  { %6917 = vmatmul.mubr.bf16.vlgmr.msra.gmra.mrb[48].mxu0 %v6747_v54 }
 0xaa5   :  { %8199 = vmatpush3.bf16.msra.mxu0 %v9325_v36  ;;  %8214 = vmatprep.mubr.msk.bf16.mxu0 %vm9984_vm0, %v9983_v0 }
 0xaa6   :  { %8200 = vmatprep.subr.bf16.mxu0 %v9983_v0 }
 0xaa9   :  { %8201 = vmatpush3.bf16.msra.mxu0 %v9326_v15 }
 0xaaa   :  { %8202 = vmatprep.subr.bf16.mxu0 %v9983_v0 }
 0xaad   :  { %8203 = vmatpush3.bf16.msra.mxu0 %v9327_v16 }
 0xaae   :  { %8204 = vmatprep.subr.bf16.mxu0 %v9983_v0 }
 0xab1   :  { %8205 = vmatpush3.bf16.msra.mxu0 %v9328_v17 }
 0xab2   :  { %8206 = vmatprep.subr.bf16.mxu0 %v9983_v0 }
 0xab5   :  { %8207 = vmatpush3.bf16.msra.mxu0 %v9329_v19 }
 0xab6   :  { %8208 = vmatprep.subr.bf16.mxu0 %v9983_v0 }
 0xab9   :  { %8209 = vmatpush3.bf16.msra.mxu0 %v9330_v20 }
 0xaba   :  { %8210 = vmatprep.subr.bf16.mxu0 %v9983_v0 }
 0xabd   :  { %8211 = vmatpush3.bf16.msra.mxu0 %v9331_v59 }
 0xabe   :  { %8212 = vmatprep.subr.bf16.mxu0 %v9983_v0 }
 0xac1   :  { %8213 = vmatpush3.bf16.msra.mxu0 %v9332_v23 }
 0xb77   :  { %v8043_v24 = vpop.f32.mrb[48].mxu0 }
 0xb78   :  { %v8044_v10 = vpop.f32.mrb[49].mxu0 }
 0xb79   :  { %v8045_v1 = vadd.f32 %v8044_v10, %v8043_v24  ;;  %v8046_v28 = vpop.f32.mrb[50].mxu0 }
 0xb7a   :  { %v8047_v29 = vpop.f32.mrb[51].mxu0 }
 0xb7b   :  { %v6919_v34 = vadd.f32 %v8045_v1, %v7805_v55 }
 0xb7d   :  { %v6925_v35 = vmul.f32 1.442695, %v6919_v34  ;;  %vm6924_vm14 = vcmp.gt.f32.partialorder %v6919_v34, 0.0 }
 0xb7f   :  { %9391 = vpow2.f32 %v6925_v35 }
 0xb89   :  { %v9392_v37 = vpop.eup %9391 }
 0xb8a   :  { %v7822_v38 = vadd.f32 -1.0, %v9392_v37 }
 0xb8c   :  { %v6928_v33 = vsel %vm6924_vm14, %v6919_v34, %v7822_v38 }
 0xb8d   :  { %v6929_v21 = vpack.c.bf16 %v6928_v33, %v6928_v33 }
 0xb8f   :  { %8215 = vmatmul.mubr.bf16.vlgmr.msra.gmra.mrb[52].mxu0 %v6929_v21 }
 0xc62   :  { %v7035_v40 = vpop.f32.mrb[52].mxu0 }
 0xc63   :  { %v7036_v0 = vadd.f32 %v7823_v42, %v7035_v40  ;;  %v8216_v43 = vpop.f32.mrb[53].mxu0 }
 0xc64   :  { %v7038_v45 = vpop.f32.mrb[54].mxu0 }
 0xc65   :  { %7055 = vst [vmem:[%s10844_s3] sm:$0xff] %v7036_v0  ;;  %v8217_v41 = vpop.f32.mrb[55].mxu0 }
 0xc66   :  { %7065 = vsyncpa [#allocation3], 1 }
 0xc67   :  { %7066 = vsyncpa [#allocation5], 1 }
 0xc68   :  { %7067 = vsyncpa [#allocation8], 1 }
 0xc69   :  { %7068 = vsyncpa [#allocation11], 1 }
 0xc6a   :  { %7069 = vsyncpa [#allocation14], 1 }
 0xc6b   :  { %7070 = vsyncpa [#allocation17], 1 }
 0xc6c   :  { %7071 = vsyncpa [#allocation20], 1 }
 0xc6d   :  { %7072 = vsyncpa [#allocation23], 1 }
 0xc6e   :  { %7073 = vsyncpa [#allocation26], 1 }
 0xc6f   :  { %7074 = vsyncpa [#allocation29], 1 }
 0xc70   :  { %7075 = vsyncpa [#allocation32], 1 }
 0xc71   :  { %7076 = vsyncpa [#allocation35], 1 }
 0xc72   :  { %7077 = vsyncpa [#allocation38], 1 }

</bundles_post_ra>
